<compile_context>
chip_gen: v7x
topology: tpu7x:2x2x1
jax: 0.10.0
libtpu: 0.0.40
codegen_flags: <defaults>
</compile_context>

<pallas_src>
import jax
import jax.numpy as jnp
from jax.experimental import pallas as pl
from jax.experimental.pallas import tpu as pltpu

# Problem sizes (small, consistent with the module's forward)
B = 8        # graphs per call
N = 16       # nodes per graph
DIN = 32     # in_feats
H = 4        # num_heads
F = 16       # out_feats per head
HF = H * F
ALPHA = 0.2  # LeakyReLU negative slope

GB = 8       # graphs per grid block (8 * 16 = 128 nodes -> full lane / MXU width)
NB = GB * N  # nodes per grid block


def gat_kernel(x_ref, w_ref, alar_ref, bias_ref, o_ref):
    # One grid step == GB graphs, flattened into an NB=128-node block-diagonal problem.
    feat = jnp.dot(x_ref[...], w_ref[...],
                   preferred_element_type=jnp.float32)          # (NB, HF)

    # el / er for all heads with one tiny matmul: elr[:, :H] = el, elr[:, H:] = er
    elr = jnp.dot(feat, alar_ref[...],
                  preferred_element_type=jnp.float32)           # (NB, 2H)
    elr_t = elr.T                                               # (2H, NB): one small XLU transpose

    bias = bias_ref[...]                                        # (NB, NB) additive edge mask
                                                                # 0 on intra-graph edges, -1e30 else

    for h in range(H):                                          # H small; static unrolled
        el_row = elr_t[h:h + 1, :]                              # (1, NB)  el[u, h] on lanes
        er_col = elr[:, H + h:H + h + 1]                        # (NB, 1)  er[v, h] on sublanes
        # e[v, u] = leaky_relu(el[u, h] + er[v, h]) on edges u -> v (dst-major)
        e = er_col + el_row                                     # (NB, NB) full 128-lane vregs
        e = jnp.where(e >= 0, e, ALPHA * e)                     # LeakyReLU
        e = e + bias                                            # mask non-edges / cross-graph pairs
        m = jnp.max(e, axis=-1, keepdims=True)                  # per-dst max (full lane reduce)
        p = jnp.exp(e - m)                                      # masked entries underflow to 0
        l = jnp.sum(p, axis=-1, keepdims=True)
        a = p / l                                               # edge softmax (incoming edges)
        # message passing: rst[v] = sum_u a[v, u] * feat_h[u]; 128-deep MXU contraction.
        o_ref[:, h * F:(h + 1) * F] = jnp.dot(
            a, feat[:, h * F:(h + 1) * F],
            preferred_element_type=jnp.float32)                 # (NB, F) lane slice of output


def make_alar(attn_l, attn_r):
    """Fused block-diagonal attention matrix (HF, 2H); precompute once."""
    eye = jnp.eye(H, dtype=jnp.float32)
    al = (attn_l[:, :, None] * eye[:, None, :]).reshape(HF, H)
    ar = (attn_r[:, :, None] * eye[:, None, :]).reshape(HF, H)
    return jnp.concatenate([al, ar], axis=1)


def make_bias_blocks(adj):
    """(C, NB, NB) additive masks: 0 on intra-graph edges (dst-major), -1e30 elsewhere."""
    b = adj.shape[0]
    c = b // GB
    adj_t = jnp.swapaxes(adj, -1, -2)                 # (B, N, N): [b, v, u] dst-major
    adj_t = adj_t.reshape(c, GB, N, N)
    eye_g = jnp.eye(GB, dtype=adj.dtype)
    # block-diagonal per chunk: bd[c, g*N+v, g2*N+u] = adj_t[c, g, v, u] * (g == g2)
    bd = (adj_t[:, :, :, None, :] * eye_g[None, :, None, :, None]).reshape(c, NB, NB)
    return jnp.where(bd > 0, jnp.float32(0.0), jnp.float32(-1e30))


def gat_layer_forward(x, W, alar, adj):
    """Batched GATLayer forward (agg_mode='flatten'); returns (B, N, H*F) f32."""
    b = x.shape[0]
    assert b % GB == 0, "batch must be a multiple of GB graphs per block"
    c = b // GB

    x_flat = x.reshape(b * N, DIN)        # fuse the batch into the matmul rows
    bias = make_bias_blocks(adj)          # (C, NB, NB) additive mask, built in the wrapper

    out = pl.pallas_call(
        gat_kernel,
        out_shape=jax.ShapeDtypeStruct((b * N, HF), jnp.float32),
        grid=(c,),                                                   # 1 step for B=8
        in_specs=[
            pl.BlockSpec((NB, DIN), lambda i: (i, 0)),               # 128-node chunk of x
            pl.BlockSpec((DIN, HF), lambda i: (0, 0)),               # W (resident)
            pl.BlockSpec((HF, 2 * H), lambda i: (0, 0)),             # alar (resident)
            pl.BlockSpec((None, NB, NB), lambda i: (i, 0, 0)),       # chunk's additive mask
        ],
        out_specs=pl.BlockSpec((NB, HF), lambda i: (i, 0)),
        compiler_params=pltpu.CompilerParams(
            dimension_semantics=("parallel",)),   # no-op at C=1; shards chunks on v7x if B grows
    )(x_flat, W, alar, bias)

    return out.reshape(b, N, HF)


def ref_forward(x, W, attn_l, attn_r, adj):
    """Pure-JAX reference mirroring the PyTorch/DGL GATConv forward (batched)."""
    b = x.shape[0]
    feat = (x @ W).reshape(b, N, H, F)
    el = (feat * attn_l[None, None]).sum(-1)       # (B, N, H)
    er = (feat * attn_r[None, None]).sum(-1)       # (B, N, H)
    e = el[:, :, None, :] + er[:, None, :, :]      # (B, u, v, h)
    e = jnp.where(e >= 0, e, ALPHA * e)
    e = jnp.where(adj[..., None] > 0, e, -1e30)
    e = e - e.max(axis=1, keepdims=True)
    p = jnp.exp(e) * adj[..., None]
    a = p / p.sum(axis=1, keepdims=True)
    rst = jnp.einsum('buvh,buhf->bvhf', a, feat)
    return rst.reshape(b, N, HF)                   # flatten(1)


if __name__ == "__main__":
    key = jax.random.PRNGKey(0)
    k_x, k_w, k_al, k_ar, k_adj = jax.random.split(key, 5)

    # Node features for B graphs
    x = jax.random.normal(k_x, (B, N, DIN), jnp.float32)

    # Deterministic "xavier_normal_(gain=sqrt(2))"-style parameter init
    gain = jnp.sqrt(2.0)
    std_w = gain * jnp.sqrt(2.0 / (DIN + HF))
    W = std_w * jax.random.normal(k_w, (DIN, HF), jnp.float32)      # fc.weight.T
    std_a = gain * jnp.sqrt(2.0 / (F + H * F))
    attn_l = std_a * jax.random.normal(k_al, (H, F), jnp.float32)   # attn_l (1,H,F) squeezed
    attn_r = std_a * jax.random.normal(k_ar, (H, F), jnp.float32)   # attn_r (1,H,F) squeezed

    # Random sparse graphs + self loops (every dst has >= 1 incoming edge)
    adj = (jax.random.uniform(k_adj, (B, N, N)) < 0.3).astype(jnp.float32)
    adj = jnp.maximum(adj, jnp.eye(N, dtype=jnp.float32)[None])

    # Hoisted off the per-call path: fused attention matrix built once.
    alar = make_alar(attn_l, attn_r)

    fwd = jax.jit(gat_layer_forward)
    out = jax.block_until_ready(fwd(x, W, alar, adj))

    ref = ref_forward(x, W, attn_l, attn_r, adj)
    assert out.shape == (B, N, HF)
    # Tolerance covers default-precision MXU matmuls vs the XLA reference.
    assert jnp.allclose(out, ref, rtol=1e-2, atol=1e-2), (
        f"mismatch vs reference, max abs err = {jnp.max(jnp.abs(out - ref))}")

    print("KERNEL_OK")
</pallas_src>

<mosaic_0001>
module attributes {stable_mosaic.version = 11 : i64} {
  func.func @gat_kernel(%arg0: i32, %arg1: memref<128x32xf32, #tpu.memory_space<vmem>>, %arg2: memref<32x64xf32, #tpu.memory_space<vmem>>, %arg3: memref<64x8xf32, #tpu.memory_space<vmem>>, %arg4: memref<1x128x128xf32, #tpu.memory_space<vmem>>, %arg5: memref<128x64xf32, #tpu.memory_space<vmem>>) attributes {dimension_semantics = [#tpu.dimension_semantics<parallel>], iteration_bounds = array<i64: 1>, scalar_prefetch = 0 : i64, scratch_operands = 0 : i64, tpu.core_type = #tpu.core_type<tc>, window_params = [{transform_indices = @transform_0, window_bounds = array<i64: 128, 32>}, {pipeline_mode = #tpu.pipeline_mode<synchronous>, transform_indices = @transform_1, window_bounds = array<i64: 32, 64>}, {pipeline_mode = #tpu.pipeline_mode<synchronous>, transform_indices = @transform_2, window_bounds = array<i64: 64, 8>}, {transform_indices = @transform_3, window_bounds = array<i64: 1, 128, 128>}, {transform_indices = @transform_4, window_bounds = array<i64: 128, 64>}]} {
    %c0 = arith.constant 0 : index
    %c0_0 = arith.constant 0 : index
    %0 = vector.load %arg1[%c0, %c0_0] : memref<128x32xf32, #tpu.memory_space<vmem>>, vector<128x32xf32>
    %c0_1 = arith.constant 0 : index
    %c0_2 = arith.constant 0 : index
    %1 = vector.load %arg2[%c0_1, %c0_2] : memref<32x64xf32, #tpu.memory_space<vmem>>, vector<32x64xf32>
    %cst = arith.constant dense<0.000000e+00> : vector<128x64xf32>
    %2 = tpu.matmul %0, %1, %cst {dimension_numbers = #tpu.dot_dimension_numbers<[1], [0], [0], [1], [0, 0, 1, 1], [], []>} : vector<128x32xf32>, vector<32x64xf32>, vector<128x64xf32> -> vector<128x64xf32>
    %c0_3 = arith.constant 0 : index
    %c0_4 = arith.constant 0 : index
    %3 = vector.load %arg3[%c0_3, %c0_4] : memref<64x8xf32, #tpu.memory_space<vmem>>, vector<64x8xf32>
    %cst_5 = arith.constant dense<0.000000e+00> : vector<128x8xf32>
    %4 = tpu.matmul %2, %3, %cst_5 {dimension_numbers = #tpu.dot_dimension_numbers<[1], [0], [0], [1], [0, 0, 1, 1], [], []>} : vector<128x64xf32>, vector<64x8xf32>, vector<128x8xf32> -> vector<128x8xf32>
    %5 = tpu.transpose %4, [1, 0] : vector<128x8xf32> -> vector<8x128xf32>
    %c0_6 = arith.constant 0 : index
    %c0_7 = arith.constant 0 : index
    %c0_8 = arith.constant 0 : index
    %6 = vector.load %arg4[%c0_6, %c0_7, %c0_8] : memref<1x128x128xf32, #tpu.memory_space<vmem>>, vector<1x128x128xf32>
    %7 = vector.shape_cast %6 : vector<1x128x128xf32> to vector<128x128xf32>
    %8 = vector.extract_strided_slice %5 {offsets = [0, 0], sizes = [1, 128], strides = [1, 1]} : vector<8x128xf32> to vector<1x128xf32>
    %9 = vector.extract_strided_slice %4 {offsets = [0, 4], sizes = [128, 1], strides = [1, 1]} : vector<128x8xf32> to vector<128x1xf32>
    %10 = vector.broadcast %9 : vector<128x1xf32> to vector<128x128xf32>
    %11 = vector.broadcast %8 : vector<1x128xf32> to vector<128x128xf32>
    %12 = arith.addf %10, %11 : vector<128x128xf32>
    %cst_9 = arith.constant 0.000000e+00 : f32
    %13 = vector.broadcast %cst_9 : f32 to vector<128x128xf32>
    %14 = arith.cmpf oge, %12, %13 : vector<128x128xf32>
    %cst_10 = arith.constant 2.000000e-01 : f32
    %15 = vector.broadcast %cst_10 : f32 to vector<128x128xf32>
    %16 = arith.mulf %15, %12 : vector<128x128xf32>
    %17 = arith.select %14, %12, %16 : vector<128x128xi1>, vector<128x128xf32>
    %18 = arith.addf %17, %7 : vector<128x128xf32>
    %cst_11 = arith.constant dense<0xFF800000> : vector<128xf32>
    %19 = vector.multi_reduction <maximumf>, %18, %cst_11 [1] : vector<128x128xf32> to vector<128xf32>
    %20 = vector.shape_cast %19 : vector<128xf32> to vector<128x1xf32>
    %21 = vector.broadcast %20 : vector<128x1xf32> to vector<128x128xf32>
    %22 = arith.subf %18, %21 : vector<128x128xf32>
    %23 = math.exp %22 : vector<128x128xf32>
    %cst_12 = arith.constant dense<0.000000e+00> : vector<128xf32>
    %24 = vector.multi_reduction <add>, %23, %cst_12 [1] : vector<128x128xf32> to vector<128xf32>
    %25 = vector.shape_cast %24 : vector<128xf32> to vector<128x1xf32>
    %26 = vector.broadcast %25 : vector<128x1xf32> to vector<128x128xf32>
    %27 = arith.divf %23, %26 : vector<128x128xf32>
    %28 = vector.extract_strided_slice %2 {offsets = [0, 0], sizes = [128, 16], strides = [1, 1]} : vector<128x64xf32> to vector<128x16xf32>
    %cst_13 = arith.constant dense<0.000000e+00> : vector<128x16xf32>
    %29 = tpu.matmul %27, %28, %cst_13 {dimension_numbers = #tpu.dot_dimension_numbers<[1], [0], [0], [1], [0, 0, 1, 1], [], []>} : vector<128x128xf32>, vector<128x16xf32>, vector<128x16xf32> -> vector<128x16xf32>
    %c0_14 = arith.constant 0 : index
    %c0_15 = arith.constant 0 : index
    %30 = vector.load %arg5[%c0_14, %c0_15] : memref<128x64xf32, #tpu.memory_space<vmem>>, vector<128x16xf32>
    tpu.vector_store %arg5[%c0_14, %c0_15], %29 {strides = array<i32>} : memref<128x64xf32, #tpu.memory_space<vmem>>, vector<128x16xf32>,
    %31 = vector.extract_strided_slice %5 {offsets = [1, 0], sizes = [1, 128], strides = [1, 1]} : vector<8x128xf32> to vector<1x128xf32>
    %32 = vector.extract_strided_slice %4 {offsets = [0, 5], sizes = [128, 1], strides = [1, 1]} : vector<128x8xf32> to vector<128x1xf32>
    %33 = vector.broadcast %32 : vector<128x1xf32> to vector<128x128xf32>
    %34 = vector.broadcast %31 : vector<1x128xf32> to vector<128x128xf32>
    %35 = arith.addf %33, %34 : vector<128x128xf32>
    %cst_16 = arith.constant 0.000000e+00 : f32
    %36 = vector.broadcast %cst_16 : f32 to vector<128x128xf32>
    %37 = arith.cmpf oge, %35, %36 : vector<128x128xf32>
    %cst_17 = arith.constant 2.000000e-01 : f32
    %38 = vector.broadcast %cst_17 : f32 to vector<128x128xf32>
    %39 = arith.mulf %38, %35 : vector<128x128xf32>
    %40 = arith.select %37, %35, %39 : vector<128x128xi1>, vector<128x128xf32>
    %41 = arith.addf %40, %7 : vector<128x128xf32>
    %cst_18 = arith.constant dense<0xFF800000> : vector<128xf32>
    %42 = vector.multi_reduction <maximumf>, %41, %cst_18 [1] : vector<128x128xf32> to vector<128xf32>
    %43 = vector.shape_cast %42 : vector<128xf32> to vector<128x1xf32>
    %44 = vector.broadcast %43 : vector<128x1xf32> to vector<128x128xf32>
    %45 = arith.subf %41, %44 : vector<128x128xf32>
    %46 = math.exp %45 : vector<128x128xf32>
    %cst_19 = arith.constant dense<0.000000e+00> : vector<128xf32>
    %47 = vector.multi_reduction <add>, %46, %cst_19 [1] : vector<128x128xf32> to vector<128xf32>
    %48 = vector.shape_cast %47 : vector<128xf32> to vector<128x1xf32>
    %49 = vector.broadcast %48 : vector<128x1xf32> to vector<128x128xf32>
    %50 = arith.divf %46, %49 : vector<128x128xf32>
    %51 = vector.extract_strided_slice %2 {offsets = [0, 16], sizes = [128, 16], strides = [1, 1]} : vector<128x64xf32> to vector<128x16xf32>
    %cst_20 = arith.constant dense<0.000000e+00> : vector<128x16xf32>
    %52 = tpu.matmul %50, %51, %cst_20 {dimension_numbers = #tpu.dot_dimension_numbers<[1], [0], [0], [1], [0, 0, 1, 1], [], []>} : vector<128x128xf32>, vector<128x16xf32>, vector<128x16xf32> -> vector<128x16xf32>
    %c0_21 = arith.constant 0 : index
    %c16 = arith.constant 16 : index
    %53 = vector.load %arg5[%c0_21, %c16] : memref<128x64xf32, #tpu.memory_space<vmem>>, vector<128x16xf32>
    tpu.vector_store %arg5[%c0_21, %c16], %52 {strides = array<i32>} : memref<128x64xf32, #tpu.memory_space<vmem>>, vector<128x16xf32>,
    %54 = vector.extract_strided_slice %5 {offsets = [2, 0], sizes = [1, 128], strides = [1, 1]} : vector<8x128xf32> to vector<1x128xf32>
    %55 = vector.extract_strided_slice %4 {offsets = [0, 6], sizes = [128, 1], strides = [1, 1]} : vector<128x8xf32> to vector<128x1xf32>
    %56 = vector.broadcast %55 : vector<128x1xf32> to vector<128x128xf32>
    %57 = vector.broadcast %54 : vector<1x128xf32> to vector<128x128xf32>
    %58 = arith.addf %56, %57 : vector<128x128xf32>
    %cst_22 = arith.constant 0.000000e+00 : f32
    %59 = vector.broadcast %cst_22 : f32 to vector<128x128xf32>
    %60 = arith.cmpf oge, %58, %59 : vector<128x128xf32>
    %cst_23 = arith.constant 2.000000e-01 : f32
    %61 = vector.broadcast %cst_23 : f32 to vector<128x128xf32>
    %62 = arith.mulf %61, %58 : vector<128x128xf32>
    %63 = arith.select %60, %58, %62 : vector<128x128xi1>, vector<128x128xf32>
    %64 = arith.addf %63, %7 : vector<128x128xf32>
    %cst_24 = arith.constant dense<0xFF800000> : vector<128xf32>
    %65 = vector.multi_reduction <maximumf>, %64, %cst_24 [1] : vector<128x128xf32> to vector<128xf32>
    %66 = vector.shape_cast %65 : vector<128xf32> to vector<128x1xf32>
    %67 = vector.broadcast %66 : vector<128x1xf32> to vector<128x128xf32>
    %68 = arith.subf %64, %67 : vector<128x128xf32>
    %69 = math.exp %68 : vector<128x128xf32>
    %cst_25 = arith.constant dense<0.000000e+00> : vector<128xf32>
    %70 = vector.multi_reduction <add>, %69, %cst_25 [1] : vector<128x128xf32> to vector<128xf32>
    %71 = vector.shape_cast %70 : vector<128xf32> to vector<128x1xf32>
    %72 = vector.broadcast %71 : vector<128x1xf32> to vector<128x128xf32>
    %73 = arith.divf %69, %72 : vector<128x128xf32>
    %74 = vector.extract_strided_slice %2 {offsets = [0, 32], sizes = [128, 16], strides = [1, 1]} : vector<128x64xf32> to vector<128x16xf32>
    %cst_26 = arith.constant dense<0.000000e+00> : vector<128x16xf32>
    %75 = tpu.matmul %73, %74, %cst_26 {dimension_numbers = #tpu.dot_dimension_numbers<[1], [0], [0], [1], [0, 0, 1, 1], [], []>} : vector<128x128xf32>, vector<128x16xf32>, vector<128x16xf32> -> vector<128x16xf32>
    %c0_27 = arith.constant 0 : index
    %c32 = arith.constant 32 : index
    %76 = vector.load %arg5[%c0_27, %c32] : memref<128x64xf32, #tpu.memory_space<vmem>>, vector<128x16xf32>
    tpu.vector_store %arg5[%c0_27, %c32], %75 {strides = array<i32>} : memref<128x64xf32, #tpu.memory_space<vmem>>, vector<128x16xf32>,
    %77 = vector.extract_strided_slice %5 {offsets = [3, 0], sizes = [1, 128], strides = [1, 1]} : vector<8x128xf32> to vector<1x128xf32>
    %78 = vector.extract_strided_slice %4 {offsets = [0, 7], sizes = [128, 1], strides = [1, 1]} : vector<128x8xf32> to vector<128x1xf32>
    %79 = vector.broadcast %78 : vector<128x1xf32> to vector<128x128xf32>
    %80 = vector.broadcast %77 : vector<1x128xf32> to vector<128x128xf32>
    %81 = arith.addf %79, %80 : vector<128x128xf32>
    %cst_28 = arith.constant 0.000000e+00 : f32
    %82 = vector.broadcast %cst_28 : f32 to vector<128x128xf32>
    %83 = arith.cmpf oge, %81, %82 : vector<128x128xf32>
    %cst_29 = arith.constant 2.000000e-01 : f32
    %84 = vector.broadcast %cst_29 : f32 to vector<128x128xf32>
    %85 = arith.mulf %84, %81 : vector<128x128xf32>
    %86 = arith.select %83, %81, %85 : vector<128x128xi1>, vector<128x128xf32>
    %87 = arith.addf %86, %7 : vector<128x128xf32>
    %cst_30 = arith.constant dense<0xFF800000> : vector<128xf32>
    %88 = vector.multi_reduction <maximumf>, %87, %cst_30 [1] : vector<128x128xf32> to vector<128xf32>
    %89 = vector.shape_cast %88 : vector<128xf32> to vector<128x1xf32>
    %90 = vector.broadcast %89 : vector<128x1xf32> to vector<128x128xf32>
    %91 = arith.subf %87, %90 : vector<128x128xf32>
    %92 = math.exp %91 : vector<128x128xf32>
    %cst_31 = arith.constant dense<0.000000e+00> : vector<128xf32>
    %93 = vector.multi_reduction <add>, %92, %cst_31 [1] : vector<128x128xf32> to vector<128xf32>
    %94 = vector.shape_cast %93 : vector<128xf32> to vector<128x1xf32>
    %95 = vector.broadcast %94 : vector<128x1xf32> to vector<128x128xf32>
    %96 = arith.divf %92, %95 : vector<128x128xf32>
    %97 = vector.extract_strided_slice %2 {offsets = [0, 48], sizes = [128, 16], strides = [1, 1]} : vector<128x64xf32> to vector<128x16xf32>
    %cst_32 = arith.constant dense<0.000000e+00> : vector<128x16xf32>
    %98 = tpu.matmul %96, %97, %cst_32 {dimension_numbers = #tpu.dot_dimension_numbers<[1], [0], [0], [1], [0, 0, 1, 1], [], []>} : vector<128x128xf32>, vector<128x16xf32>, vector<128x16xf32> -> vector<128x16xf32>
    %c0_33 = arith.constant 0 : index
    %c48 = arith.constant 48 : index
    %99 = vector.load %arg5[%c0_33, %c48] : memref<128x64xf32, #tpu.memory_space<vmem>>, vector<128x16xf32>
    tpu.vector_store %arg5[%c0_33, %c48], %98 {strides = array<i32>} : memref<128x64xf32, #tpu.memory_space<vmem>>, vector<128x16xf32>,
    return
  }
  func.func @transform_0(%arg0: i32) -> (i32, i32) {
    %c0_i32 = arith.constant 0 : i32
    %c0_i32_0 = arith.constant 0 : i32
    return %arg0, %c0_i32 : i32, i32
  }
  func.func @transform_1(%arg0: i32) -> (i32, i32) {
    %c0_i32 = arith.constant 0 : i32
    %c0_i32_0 = arith.constant 0 : i32
    %c0_i32_1 = arith.constant 0 : i32
    return %c0_i32, %c0_i32_0 : i32, i32
  }
  func.func @transform_2(%arg0: i32) -> (i32, i32) {
    %c0_i32 = arith.constant 0 : i32
    %c0_i32_0 = arith.constant 0 : i32
    %c0_i32_1 = arith.constant 0 : i32
    return %c0_i32, %c0_i32_0 : i32, i32
  }
  func.func @transform_3(%arg0: i32) -> (i32, i32, i32) {
    %c0_i32 = arith.constant 0 : i32
    %c0_i32_0 = arith.constant 0 : i32
    %c0_i32_1 = arith.constant 0 : i32
    return %arg0, %c0_i32, %c0_i32_0 : i32, i32, i32
  }
  func.func @transform_4(%arg0: i32) -> (i32, i32) {
    %c0_i32 = arith.constant 0 : i32
    %c0_i32_0 = arith.constant 0 : i32
    return %arg0, %c0_i32 : i32, i32
  }
}

</mosaic_0001>

<bundles_post_ra>
// kernel: gat_layer_forward.1
= control target key start
LH: loop header
LB: loop body
LE: loop exit
PB: predicated region body
PF: predicated region fallthrough
CT: control target
= control target key end

     0   :  { %vm38_vm0 = vcmask 261120   ;;  %s5400_s0 = inlined_call_operand.vmem [shape: f32[128,32], index: 0, kind: input, shape index: {}]   ;;  %s5401_s1 = inlined_call_operand.vmem [shape: f32[32,64], index: 1, kind: input, shape index: {}]   ;;  %s5402_s2 = inlined_call_operand.vmem [shape: f32[64,8], index: 2, kind: input, shape index: {}]   ;;  %s5403_s3 = inlined_call_operand.vmem [shape: f32[1,128,128], index: 3, kind: input, shape index: {}]   ;;  %s5404_s4 = inlined_call_operand.hbm [shape: f32[128,64], index: 4, kind: output, shape index: {}]  }
   0x1   :  { %v34_v0 = vld [vmem:[%s5401_s1] sm:$0xff]  ;;  %v35_v1 = vld [vmem:[%s5401_s1 + $0x8] sm:$0xff]  ;;  %v36_v2 = vld [vmem:[%s5401_s1 + $0x10] sm:$0xff] }
   0x2   :  { %v3166_v3 = vpack.c.bf16 %v35_v1, %v34_v0  ;;  %v37_v4 = vld [vmem:[%s5401_s1 + $0x18] sm:$0xff]  ;;  %v18_v5 = vld [vmem:[%s5400_s0] sm:$0xff]  ;;  %v233_v8 = vld [vmem:[%s5402_s2 + $0x8] sm:$0xff] }
   0x3   :  { %v3170_v6 = vpack.c.bf16 %v37_v4, %v36_v2  ;;  %2878 = vmatprep.mubr.msk.f32.mxu0 %vm38_vm0, %v18_v5  ;;  %v232_v7 = vld [vmem:[%s5402_s2] sm:$0xff]  ;;  %v234_v9 = vld [vmem:[%s5402_s2 + $0x10] sm:$0xff]  ;;  %v235_v10 = vld [vmem:[%s5402_s2 + $0x18] sm:$0xff] }
   0x4   :  { %3167 = vmatprep.subr.bf16.mxu0 %v3166_v3  ;;  %v19_v11 = vld [vmem:[%s5400_s0 + $0x8] sm:$0xff]  ;;  %v20_v12 = vld [vmem:[%s5400_s0 + $0x10] sm:$0xff]  ;;  %v3174_v13 = vpack.c.bf16 %v233_v8, %v232_v7  ;;  %v3178_v14 = vpack.c.bf16 %v235_v10, %v234_v9  ;;  %v236_v15 = vld [vmem:[%s5402_s2 + $0x20] sm:$0xff] }
   0x5   :  { %3169 = vmatpush3.bf16.msra.mxu0 %v3166_v3  ;;  %v237_v16 = vld [vmem:[%s5402_s2 + $0x28] sm:$0xff] }
   0x6   :  { %3171 = vmatprep.subr.bf16.mxu0 %v3170_v6 }
   0x9   :  { %3173 = vmatpush3.bf16.msra.mxu0 %v3170_v6 }
   0xa   :  { %9 = vsyncpa [#allocation3], 0  ;;  %3175 = vmatprep.subr.bf16.mxu1 %v3174_v13  ;;  %v21_v17 = vld [vmem:[%s5400_s0 + $0x18] sm:$0xff]  ;;  %v3182_v18 = vpack.c.bf16 %v237_v16, %v236_v15  ;;  %v22_v19 = vld [vmem:[%s5400_s0 + $0x20] sm:$0xff]  ;;  %vm240_vm1 = vcmask 523264   ;;  %s3808_s16 = smov 96  }
   0xb   :  { %3177 = vmatpush3.bf16.msra.mxu1 %v3174_v13  ;;  %v238_v20 = vld [vmem:[%s5402_s2 + $0x30] sm:$0xff]  ;;  %v239_v21 = vld [vmem:[%s5402_s2 + $0x38] sm:$0xff]  ;;  %v23_v22 = vld [vmem:[%s5400_s0 + $0x28] sm:$0xff]  ;;  %s3809_s17 = smov 112   ;;  %v3810_v60 = vmov 5   ;;  %v3811_v61 = vmov 4  }
   0xc   :  { %2879 = vmatmul.mubr.msk.f32.vlgmr.msra.gmra.mrb[0].mxu0 %vm38_vm0, %v19_v11  ;;  %3179 = vmatprep.subr.bf16.mxu1 %v3178_v14  ;;  %v3186_v23 = vpack.c.bf16 %v239_v21, %v238_v20  ;;  %v24_v24 = vld [vmem:[%s5400_s0 + $0x30] sm:$0xff]  ;;  %v25_v25 = vld [vmem:[%s5400_s0 + $0x38] sm:$0xff]  ;;  %v26_v26 = vld [vmem:[%s5400_s0 + $0x40] sm:$0xff]  ;;  %s3816_s21 = smov 32   ;;  %s3817_s22 = smov 48  }
   0xd   :  { %2881 = vmatprep.mubr.msk.f32.mxu0 %vm38_vm0, %v20_v12  ;;  %v27_v27 = vld [vmem:[%s5400_s0 + $0x48] sm:$0xff]  ;;  %v28_v28 = vld [vmem:[%s5400_s0 + $0x50] sm:$0xff]  ;;  %v29_v29 = vld [vmem:[%s5400_s0 + $0x58] sm:$0xff]  ;;  %3403 = vset.pattern.permute.xlu0 %v3810_v60  ;;  %s3818_s23 = smov [#allocation2]  }
   0xe   :  { %v30_v30 = vld [vmem:[%s5400_s0 + $0x60] sm:$0xff]  ;;  %v31_v31 = vld [vmem:[%s5400_s0 + $0x68] sm:$0xff]  ;;  %v32_v32 = vld [vmem:[%s5400_s0 + $0x70] sm:$0xff]  ;;  %3402 = vset.pattern.permute.xlu1 %v3811_v61  ;;  %s2655_s24 = sshll.u32 %s3818_s23, 4  ;;  %s2656_s24 = int_to_ptr.vmem [resolvable:$true] %s2655_s24 }
   0xf   :  { %3181 = vmatpush3.bf16.msra.mxu1 %v3178_v14  ;;  %v33_v33 = vld [vmem:[%s5400_s0 + $0x78] sm:$0xff]  ;;  %s3784_s25 = scalar_lea.vmem %s2656_s24, 2048  ;;  %p3789_p1 = scmp.lt.s32.totalorder %s2656_s24, %s2656_s24 }
  0x10   :  { %2882 = vmatmul.mubr.msk.f32.gmra.mrb[2].mxu0 %vm38_vm0, %v21_v17  ;;  %3183 = vmatprep.subr.bf16.mxu1 %v3182_v18  ;;  %p3785_p0 = scmp.ne.s32.totalorder %s2656_s24, %s3784_s25  ;;  %p3790_p2 = scmp.lt.s32.totalorder %s3784_s25, %s3784_s25 }
  0x11   :  { %2884 = vmatprep.mubr.msk.f32.mxu0 %vm38_vm0, %v22_v19 }
  0x12   :  { %p3791_p3 = por %p3790_p2, %p3789_p1 }
  0x13   :  { %3185 = vmatpush3.bf16.msra.mxu1 %v3182_v18 }
  0x14   :  { %2885 = vmatmul.mubr.msk.f32.gmra.mrb[4].mxu0 %vm38_vm0, %v23_v22  ;;  %3187 = vmatprep.subr.bf16.mxu1 %v3186_v23  ;;  %p3792_p4 = pnand %p3791_p3, %p3785_p0 }
  0x15   :  { %2887 = vmatprep.mubr.msk.f32.mxu0 %vm38_vm0, %v24_v24 }
  0x17   :  { %3189 = vmatpush3.bf16.msra.mxu1 %v3186_v23 }
  0x18   :  { %2888 = vmatmul.mubr.msk.f32.gmra.mrb[6].mxu0 %vm38_vm0, %v25_v25 }
  0x19   :  { %2890 = vmatprep.mubr.msk.f32.mxu0 %vm38_vm0, %v26_v26 }
  0x1c   :  { %2891 = vmatmul.mubr.msk.f32.gmra.mrb[8].mxu0 %vm38_vm0, %v27_v27 }
  0x1d   :  { %2893 = vmatprep.mubr.msk.f32.mxu0 %vm38_vm0, %v28_v28 }
  0x20   :  { %2894 = vmatmul.mubr.msk.f32.gmra.mrb[10].mxu0 %vm38_vm0, %v29_v29 }
  0x21   :  { %2896 = vmatprep.mubr.msk.f32.mxu0 %vm38_vm0, %v30_v30 }
  0x24   :  { %2897 = vmatmul.mubr.msk.f32.gmra.mrb[12].mxu0 %vm38_vm0, %v31_v31 }
  0x25   :  { %2899 = vmatprep.mubr.msk.f32.mxu0 %vm38_vm0, %v32_v32 }
  0x28   :  { %2900 = vmatmul.mubr.msk.f32.gmra.mrb[14].mxu0 %vm38_vm0, %v33_v33 }
  0xdf   :  { %v2880_v34 = vpop.f32.mrb[0].mxu0 }
  0xe0   :  { %v153_v35 = vpop.f32.mrb[1].mxu0 }
  0xe1   :  { %2918 = vmatprep.mubr.msk.f32.mxu1 %vm240_vm1, %v153_v35  ;;  %v3947_v36 = vpack.i.bf16 %v2880_v34, %v153_v35  ;;  %v3190_v37 = vpack.c.bf16 %v2880_v34, %v153_v35 }
  0xe2   :  { %2919 = vmatmul.mubr.msk.f32.vlgmr.msra.gmra.mrb[0].mxu1 %vm240_vm1, %v2880_v34 }
  0xe3   :  { %5454 = vst [vmem:[#allocation5_spill] sm:$0xff] %v3947_v36  ;;  %3353 = vrot.lane.b32.xlu0 %v3947_v36, %s3808_s16  ;;  %3348 = vrot.lane.b32.xlu1 %v3947_v36, %s3809_s17  ;;  %v2883_v38 = vpop.f32.mrb[2].mxu0 }
  0xe4   :  { %3191 = vmatprep.subr.bf16.mxu0 %v3190_v37  ;;  %v163_v39 = vpop.f32.mrb[3].mxu0 }
  0xe5   :  { %3193 = vmatpush3.bf16.msra.mxu0 %v3190_v37  ;;  %2921 = vmatprep.mubr.msk.f32.mxu1 %vm240_vm1, %v163_v39  ;;  %v3955_v40 = vpack.i.bf16 %v2883_v38, %v163_v39  ;;  %v3194_v41 = vpack.c.bf16 %v2883_v38, %v163_v39 }
  0xe6   :  { %2922 = vmatmul.mubr.msk.f32.gmra.mrb[2].mxu1 %vm240_vm1, %v2883_v38 }
  0xe7   :  { %5455 = vst [vmem:[#allocation6_spill] sm:$0xff] %v3955_v40  ;;  %3358 = vrot.lane.b32.xlu0 %v3955_v40, %s3809_s17  ;;  %v2886_v42 = vpop.f32.mrb[4].mxu0  ;;  %3195 = vmatprep.subr.bf16.mxu0 %v3194_v41 }
  0xe8   :  { %v173_v43 = vpop.f32.mrb[5].mxu0 }
  0xe9   :  { %2924 = vmatprep.mubr.msk.f32.mxu1 %vm240_vm1, %v173_v43  ;;  %3197 = vmatpush3.bf16.msra.mxu0 %v3194_v41  ;;  %v3961_v44 = vpack.i.bf16 %v2886_v42, %v173_v43  ;;  %v3198_v45 = vpack.c.bf16 %v2886_v42, %v173_v43 }
  0xea   :  { %2925 = vmatmul.mubr.msk.f32.gmra.mrb[4].mxu1 %vm240_vm1, %v2886_v42 }
  0xeb   :  { %5456 = vst [vmem:[#allocation7_spill] sm:$0xff] %v3961_v44  ;;  %3363 = vrot.lane.b32.xlu0 %v3955_v40, %s3808_s16  ;;  %3368 = vrot.lane.b32.xlu1 %v3961_v44, %s3809_s17  ;;  %v2889_v46 = vpop.f32.mrb[6].mxu0 }
  0xec   :  { %v183_v47 = vpop.f32.mrb[7].mxu0  ;;  %3199 = vmatprep.subr.bf16.mxu0 %v3198_v45 }
  0xed   :  { %2927 = vmatprep.mubr.msk.f32.mxu1 %vm240_vm1, %v183_v47  ;;  %3201 = vmatpush3.bf16.msra.mxu0 %v3198_v45  ;;  %v3969_v48 = vpack.i.bf16 %v2889_v46, %v183_v47  ;;  %v3202_v49 = vpack.c.bf16 %v2889_v46, %v183_v47 }
  0xee   :  { %2928 = vmatmul.mubr.msk.f32.gmra.mrb[6].mxu1 %vm240_vm1, %v2889_v46 }
  0xef   :  { %5457 = vst [vmem:[#allocation8_spill] sm:$0xff] %v3969_v48  ;;  %3373 = vrot.lane.b32.xlu1 %v3961_v44, %s3808_s16  ;;  %3378 = vrot.lane.b32.xlu0 %v3969_v48, %s3809_s17  ;;  %v2892_v50 = vpop.f32.mrb[8].mxu0 }
  0xf0   :  { %3203 = vmatprep.subr.bf16.mxu0 %v3202_v49  ;;  %v193_v51 = vpop.f32.mrb[9].mxu0 }
  0xf1   :  { %3205 = vmatpush3.bf16.msra.mxu0 %v3202_v49  ;;  %2930 = vmatprep.mubr.msk.f32.mxu1 %vm240_vm1, %v193_v51  ;;  %v3977_v52 = vpack.i.bf16 %v2892_v50, %v193_v51  ;;  %v3206_v53 = vpack.c.bf16 %v2892_v50, %v193_v51  ;;  %v3813_v51 = vmov 7  }
  0xf2   :  { %2931 = vmatmul.mubr.msk.f32.gmra.mrb[8].mxu1 %vm240_vm1, %v2892_v50  ;;  %v3812_v50 = vmov 6  }
  0xf3   :  { %5458 = vst [vmem:[#allocation9_spill] sm:$0xff] %v3977_v52  ;;  %3383 = vrot.lane.b32.xlu1 %v3977_v52, %s3809_s17  ;;  %3207 = vmatprep.subr.bf16.mxu0 %v3206_v53  ;;  %v2895_v54 = vpop.f32.mrb[10].mxu0 }
  0xf4   :  { %v203_v55 = vpop.f32.mrb[11].mxu0 }
  0xf5   :  { %3209 = vmatpush3.bf16.msra.mxu0 %v3206_v53  ;;  %2933 = vmatprep.mubr.msk.f32.mxu1 %vm240_vm1, %v203_v55  ;;  %v3983_v56 = vpack.i.bf16 %v2895_v54, %v203_v55  ;;  %v3210_v57 = vpack.c.bf16 %v2895_v54, %v203_v55 }
  0xf6   :  { %2934 = vmatmul.mubr.msk.f32.gmra.mrb[10].mxu1 %vm240_vm1, %v2895_v54 }
  0xf7   :  { %5459 = vst [vmem:[#allocation10_spill] sm:$0xff] %v3983_v56  ;;  %3388 = vrot.lane.b32.xlu0 %v3983_v56, %s3809_s17  ;;  %3211 = vmatprep.subr.bf16.mxu0 %v3210_v57  ;;  %v2898_v58 = vpop.f32.mrb[12].mxu0 }
  0xf8   :  { %v213_v59 = vpop.f32.mrb[13].mxu0 }
  0xf9   :  { %3213 = vmatpush3.bf16.msra.mxu0 %v3210_v57  ;;  %2936 = vmatprep.mubr.msk.f32.mxu1 %vm240_vm1, %v213_v59  ;;  %v3991_v62 = vpack.i.bf16 %v2898_v58, %v213_v59  ;;  %v3214_v63 = vpack.c.bf16 %v2898_v58, %v213_v59 }
  0xfa   :  { %2937 = vmatmul.mubr.msk.f32.gmra.mrb[12].mxu1 %vm240_vm1, %v2898_v58 }
  0xfb   :  { %5460 = vst [vmem:[#allocation11_spill] sm:$0xff] %v3991_v62  ;;  %3393 = vrot.lane.b32.xlu1 %v3991_v62, %s3809_s17  ;;  %3215 = vmatprep.subr.bf16.mxu0 %v3214_v63  ;;  %v2901_v0 = vpop.f32.mrb[14].mxu0 }
  0xfc   :  { %v223_v1 = vpop.f32.mrb[15].mxu0 }
  0xfd   :  { %3217 = vmatpush3.bf16.msra.mxu0 %v3214_v63  ;;  %2939 = vmatprep.mubr.msk.f32.mxu1 %vm240_vm1, %v223_v1  ;;  %v3997_v2 = vpack.i.bf16 %v2901_v0, %v223_v1  ;;  %v3218_v3 = vpack.c.bf16 %v2901_v0, %v223_v1 }
  0xfe   :  { %2940 = vmatmul.mubr.msk.f32.gmra.mrb[14].mxu1 %vm240_vm1, %v2901_v0 }
  0xff   :  { %5461 = vst [vmem:[#allocation12_spill] sm:$0xff] %v3997_v2  ;;  %3398 = vrot.lane.b32.xlu1 %v3997_v2, %s3809_s17  ;;  %3219 = vmatprep.subr.bf16.mxu0 %v3218_v3 }
 0x101   :  { %3221 = vmatpush3.bf16.msra.mxu0 %v3218_v3 }
 0x155   :  { %v3354_v4 = vpop.permute.xlu0 %3353  ;;  %v3349_v5 = vpop.permute.xlu1 %3348 }
 0x156   :  { %v3356_v6 = vunpack.i.h.bf16 %v3354_v4  ;;  %v3355_v7 = vunpack.i.l.bf16 %v3354_v4  ;;  %v3351_v8 = vunpack.i.h.bf16 %v3349_v5  ;;  %v3350_v9 = vunpack.i.l.bf16 %v3349_v5 }
 0x158   :  { %v3222_v10 = vpack.c.bf16 %v3351_v8, %v3350_v9  ;;  %v4002_v11 = vpack.c.bf16 %v3356_v6, %v3355_v7 }
 0x159   :  { %v3359_v12 = vpop.permute.xlu0 %3358 }
 0x15a   :  { %5462 = vst [vmem:[#allocation13_spill] sm:$0xff] %v4002_v11  ;;  %v3361_v13 = vunpack.i.h.bf16 %v3359_v12  ;;  %v3360_v14 = vunpack.i.l.bf16 %v3359_v12  ;;  %3223 = vmatprep.subr.bf16.mxu1 %v3222_v10  ;;  %3255 = vmatprep.subr.bf16.mxu0 %v4002_v11 }
 0x15b   :  { %3225 = vmatpush3.bf16.msra.mxu1 %v3222_v10 }
 0x15c   :  { %v3226_v15 = vpack.c.bf16 %v3361_v13, %v3360_v14 }
 0x15d   :  { %v4005_v16 = vpop.permute.xlu0 %3363  ;;  %v3369_v17 = vpop.permute.xlu1 %3368 }
 0x15e   :  { %5463 = vst [vmem:[#allocation14_spill] sm:$0xff] %v4005_v16  ;;  %v3371_v18 = vunpack.i.h.bf16 %v3369_v17  ;;  %v3370_v19 = vunpack.i.l.bf16 %v3369_v17  ;;  %3227 = vmatprep.subr.bf16.mxu1 %v3226_v15 }
 0x15f   :  { %3229 = vmatpush3.bf16.msra.mxu1 %v3226_v15 }
 0x160   :  { %v3230_v20 = vpack.c.bf16 %v3371_v18, %v3370_v19 }
 0x161   :  { %v4007_v21 = vpop.permute.xlu1 %3373  ;;  %v3379_v22 = vpop.permute.xlu0 %3378 }
 0x162   :  { %5464 = vst [vmem:[#allocation15_spill] sm:$0xff] %v4007_v21  ;;  %v3381_v23 = vunpack.i.h.bf16 %v3379_v22  ;;  %v3380_v24 = vunpack.i.l.bf16 %v3379_v22  ;;  %3231 = vmatprep.subr.bf16.mxu1 %v3230_v20 }
 0x163   :  { %3233 = vmatpush3.bf16.msra.mxu1 %v3230_v20 }
 0x164   :  { %v3234_v25 = vpack.c.bf16 %v3381_v23, %v3380_v24 }
 0x165   :  { %v3384_v26 = vpop.permute.xlu1 %3383 }
 0x166   :  { %3235 = vmatprep.subr.bf16.mxu1 %v3234_v25  ;;  %v3386_v27 = vunpack.i.h.bf16 %v3384_v26  ;;  %v3385_v28 = vunpack.i.l.bf16 %v3384_v26 }
 0x167   :  { %3237 = vmatpush3.bf16.msra.mxu1 %v3234_v25 }
 0x168   :  { %v3238_v29 = vpack.c.bf16 %v3386_v27, %v3385_v28 }
 0x169   :  { %v3389_v30 = vpop.permute.xlu0 %3388 }
 0x16a   :  { %3239 = vmatprep.subr.bf16.mxu1 %v3238_v29  ;;  %v3391_v31 = vunpack.i.h.bf16 %v3389_v30  ;;  %v3390_v32 = vunpack.i.l.bf16 %v3389_v30 }
 0x16b   :  { %3241 = vmatpush3.bf16.msra.mxu1 %v3238_v29 }
 0x16c   :  { %v3242_v33 = vpack.c.bf16 %v3391_v31, %v3390_v32 }
 0x16d   :  { %v3394_v34 = vpop.permute.xlu1 %3393 }
 0x16e   :  { %3243 = vmatprep.subr.bf16.mxu1 %v3242_v33  ;;  %v3396_v35 = vunpack.i.h.bf16 %v3394_v34  ;;  %v3395_v37 = vunpack.i.l.bf16 %v3394_v34 }
 0x16f   :  { %3245 = vmatpush3.bf16.msra.mxu1 %v3242_v33 }
 0x170   :  { %v3246_v38 = vpack.c.bf16 %v3396_v35, %v3395_v37 }
 0x171   :  { %v3399_v39 = vpop.permute.xlu1 %3398 }
 0x172   :  { %3247 = vmatprep.subr.bf16.mxu1 %v3246_v38  ;;  %v3401_v41 = vunpack.i.h.bf16 %v3399_v39  ;;  %v3400_v42 = vunpack.i.l.bf16 %v3399_v39 }
 0x173   :  { %3249 = vmatpush3.bf16.msra.mxu1 %v3246_v38 }
 0x174   :  { %v3250_v43 = vpack.c.bf16 %v3401_v41, %v3400_v42 }
 0x176   :  { %3251 = vmatprep.subr.bf16.mxu1 %v3250_v43 }
 0x177   :  { %3253 = vmatpush3.bf16.msra.mxu1 %v3250_v43 }
 0x1b5   :  { %v4009_v45 = vpop.f32.mrb[0].mxu1 }
 0x1b6   :  { %v4011_v46 = vpop.f32.mrb[1].mxu1  ;;  %957 = vperm.xlu0 %3403, %v4009_v45   ;;  %489 = vperm.xlu1 %3402, %v4009_v45  }
 0x1b9   :  { %v4015_v47 = vpop.f32.mrb[2].mxu1 }
 0x1ba   :  { %v4017_v49 = vpop.f32.mrb[3].mxu1  ;;  %3404 = vset.pattern.permute.xlu0 %v3812_v50  ;;  %3405 = vset.pattern.permute.xlu1 %v3813_v51 }
 0x1bb   :  { %1523 = vperm.xlu0 %3404, %v4009_v45   ;;  %2089 = vperm.xlu1 %3405, %v4009_v45  }
 0x1bd   :  { %v4023_v53 = vpop.f32.mrb[4].mxu1 }
 0x1be   :  { %v4025_v54 = vpop.f32.mrb[5].mxu1 }
 0x1bf   :  { %3409 = vset.pattern.permute.xlu0 %v3813_v51  ;;  %3406 = vset.pattern.permute.xlu1 %v3811_v61 }
 0x1c0   :  { %2085 = vperm.xlu0 %3409, %v4011_v46   ;;  %484 = vperm.xlu1 %3406, %v4011_v46  }
 0x1c1   :  { %v4031_v55 = vpop.f32.mrb[6].mxu1 }
 0x1c2   :  { %v4033_v57 = vpop.f32.mrb[7].mxu1 }
 0x1c4   :  { %3428 = vset.pattern.permute.xlu0 %v3812_v50  ;;  %3407 = vset.pattern.permute.xlu1 %v3810_v60 }
 0x1c5   :  { %1547 = vperm.xlu0 %3428, %v4031_v55   ;;  %953 = vperm.xlu1 %3407, %v4011_v46   ;;  %v4039_v58 = vpop.f32.mrb[8].mxu1 }
 0x1c6   :  { %v4041_v59 = vpop.f32.mrb[9].mxu1 }
 0x1c9   :  { %3435 = vset.pattern.permute.xlu0 %v3810_v60  ;;  %3408 = vset.pattern.permute.xlu1 %v3812_v50  ;;  %v4045_v63 = vpop.f32.mrb[10].mxu1 }
 0x1ca   :  { %989 = vperm.xlu0 %3435, %v4039_v58   ;;  %1519 = vperm.xlu1 %3408, %v4011_v46   ;;  %v4049_v0 = vpop.f32.mrb[11].mxu1 }
 0x1cd   :  { %v4051_v1 = vpop.f32.mrb[12].mxu1 }
 0x1ce   :  { %3436 = vset.pattern.permute.xlu0 %v3812_v50  ;;  %3410 = vset.pattern.permute.xlu1 %v3811_v61  ;;  %v4055_v3 = vpop.f32.mrb[13].mxu1 }
 0x1cf   :  { %1555 = vperm.xlu0 %3436, %v4039_v58   ;;  %499 = vperm.xlu1 %3410, %v4015_v47  }
 0x1d1   :  { %v4059_v4 = vpop.f32.mrb[14].mxu1 }
 0x1d2   :  { %v4061_v5 = vpop.f32.mrb[15].mxu1 }
 0x1d3   :  { %1551 = vperm.xlu0 %3436, %v4041_v59   ;;  %3411 = vset.pattern.permute.xlu1 %v3810_v60 }
 0x1d4   :  { %965 = vperm.xlu1 %3411, %v4015_v47  }
 0x1d7   :  { %3442 = vset.pattern.permute.xlu0 %v3810_v60 }
 0x1d8   :  { %997 = vperm.xlu0 %3442, %v4045_v63   ;;  %3412 = vset.pattern.permute.xlu1 %v3812_v50 }
 0x1d9   :  { %1531 = vperm.xlu1 %3412, %v4015_v47  }
 0x1dc   :  { %3443 = vset.pattern.permute.xlu0 %v3812_v50 }
 0x1dd   :  { %1563 = vperm.xlu0 %3443, %v4045_v63   ;;  %3413 = vset.pattern.permute.xlu1 %v3813_v51 }
 0x1de   :  { %2097 = vperm.xlu1 %3413, %v4015_v47  }
 0x1e1   :  { %1559 = vperm.xlu0 %3443, %v4049_v0  }
 0x1e2   :  { %3414 = vset.pattern.permute.xlu1 %v3811_v61 }
 0x1e3   :  { %494 = vperm.xlu1 %3414, %v4017_v49  }
 0x1e5   :  { %3449 = vset.pattern.permute.xlu0 %v3810_v60 }
 0x1e6   :  { %1005 = vperm.xlu0 %3449, %v4051_v1  }
 0x1e7   :  { %3415 = vset.pattern.permute.xlu1 %v3810_v60 }
 0x1e8   :  { %961 = vperm.xlu1 %3415, %v4017_v49  }
 0x1ea   :  { %3450 = vset.pattern.permute.xlu0 %v3812_v50 }
 0x1eb   :  { %1571 = vperm.xlu0 %3450, %v4051_v1  }
 0x1ec   :  { %3416 = vset.pattern.permute.xlu1 %v3812_v50 }
 0x1ed   :  { %1527 = vperm.xlu1 %3416, %v4017_v49  }
 0x1ef   :  { %1567 = vperm.xlu0 %3450, %v4055_v3  }
 0x1f1   :  { %3417 = vset.pattern.permute.xlu1 %v3813_v51 }
 0x1f2   :  { %2093 = vperm.xlu1 %3417, %v4017_v49  }
 0x1f3   :  { %3456 = vset.pattern.permute.xlu0 %v3810_v60 }
 0x1f4   :  { %1013 = vperm.xlu0 %3456, %v4059_v4  }
 0x1f6   :  { %3418 = vset.pattern.permute.xlu1 %v3811_v61 }
 0x1f7   :  { %509 = vperm.xlu1 %3418, %v4023_v53  }
 0x1f8   :  { %3457 = vset.pattern.permute.xlu0 %v3812_v50 }
 0x1f9   :  { %1579 = vperm.xlu0 %3457, %v4059_v4  }
 0x1fb   :  { %3419 = vset.pattern.permute.xlu1 %v3810_v60 }
 0x1fc   :  { %973 = vperm.xlu1 %3419, %v4023_v53  }
 0x1fd   :  { %3458 = vset.pattern.permute.xlu0 %v3813_v51 }
 0x1fe   :  { %2145 = vperm.xlu0 %3458, %v4059_v4  }
 0x200   :  { %3420 = vset.pattern.permute.xlu1 %v3812_v50 }
 0x201   :  { %1539 = vperm.xlu1 %3420, %v4023_v53  }
 0x202   :  { %3460 = vset.pattern.permute.xlu0 %v3812_v50 }
 0x203   :  { %1575 = vperm.xlu0 %3460, %v4061_v5  }
 0x205   :  { %3421 = vset.pattern.permute.xlu1 %v3813_v51 }
 0x206   :  { %2105 = vperm.xlu1 %3421, %v4023_v53  }
 0x20a   :  { %3422 = vset.pattern.permute.xlu1 %v3811_v61 }
 0x20b   :  { %504 = vperm.xlu1 %3422, %v4025_v54  }
 0x20f   :  { %3423 = vset.pattern.permute.xlu1 %v3810_v60 }
 0x210   :  { %969 = vperm.xlu1 %3423, %v4025_v54  }
 0x214   :  { %3424 = vset.pattern.permute.xlu1 %v3812_v50 }
 0x215   :  { %1535 = vperm.xlu1 %3424, %v4025_v54  }
 0x219   :  { %3425 = vset.pattern.permute.xlu1 %v3813_v51 }
 0x21a   :  { %2101 = vperm.xlu1 %3425, %v4025_v54  }
 0x21e   :  { %3426 = vset.pattern.permute.xlu1 %v3811_v61 }
 0x21f   :  { %519 = vperm.xlu1 %3426, %v4031_v55  }
 0x221   :  { %434 = vxpose.xlu0.b32.start [1/16] (narrow) %v4011_v46, 8 }
 0x223   :  { %3427 = vset.pattern.permute.xlu1 %v3810_v60 }
 0x224   :  { %981 = vperm.xlu1 %3427, %v4031_v55  }
 0x225   :  { %435 = vxpose.xlu0.b32.cont [2/16] (narrow) %v4009_v45, 8 }
 0x228   :  { %3429 = vset.pattern.permute.xlu1 %v3813_v51 }
 0x229   :  { %2113 = vperm.xlu1 %3429, %v4031_v55   ;;  %436 = vxpose.xlu0.b32.cont [3/16] (narrow) %v4017_v49, 8 }
 0x22d   :  { %3430 = vset.pattern.permute.xlu1 %v3811_v61  ;;  %437 = vxpose.xlu0.b32.cont [4/16] (narrow) %v4015_v47, 8  ;;  %v562_v47 = vlaneseq }
 0x22e   :  { %514 = vperm.xlu1 %3430, %v4033_v57  }
 0x231   :  { %438 = vxpose.xlu0.b32.cont [5/16] (narrow) %v4025_v54, 8 }
 0x232   :  { %3431 = vset.pattern.permute.xlu1 %v3810_v60 }
 0x233   :  { %977 = vperm.xlu1 %3431, %v4033_v57  }
 0x235   :  { %v4127_v6 = vpop.permute.xlu1 %489  ;;  %439 = vxpose.xlu0.b32.cont [6/16] (narrow) %v4023_v53, 8  ;;  %v4136_v8 = vpop.permute.xlu0 %957 }
 0x237   :  { %3432 = vset.pattern.permute.xlu1 %v3812_v50 }
 0x238   :  { %1543 = vperm.xlu1 %3432, %v4033_v57  }
 0x239   :  { %440 = vxpose.xlu0.b32.cont [7/16] (narrow) %v4033_v57, 8 }
 0x23a   :  { %v4133_v7 = vpop.permute.xlu1 %2089  ;;  %v4145_v10 = vpop.permute.xlu0 %1523 }
 0x23c   :  { %3433 = vset.pattern.permute.xlu1 %v3813_v51 }
 0x23d   :  { %2109 = vperm.xlu1 %3433, %v4033_v57   ;;  %441 = vxpose.xlu0.b32.cont [8/16] (narrow) %v4031_v55, 8 }
 0x23f   :  { %v4140_v9 = vpop.permute.xlu1 %484  ;;  %v4152_v13 = vpop.permute.xlu0 %2085 }
 0x241   :  { %3434 = vset.pattern.permute.xlu1 %v3811_v61  ;;  %442 = vxpose.xlu0.b32.cont [9/16] (narrow) %v4041_v59, 8 }
 0x242   :  { %529 = vperm.xlu1 %3434, %v4039_v58  }
 0x244   :  { %v4147_v12 = vpop.permute.xlu1 %953  ;;  %v4162_v17 = vpop.permute.xlu0 %1547 }
 0x245   :  { %443 = vxpose.xlu0.b32.cont [10/16] (narrow) %v4039_v58, 8 }
 0x246   :  { %3437 = vset.pattern.permute.xlu1 %v3813_v51 }
 0x247   :  { %2121 = vperm.xlu1 %3437, %v4039_v58  }
 0x249   :  { %v4154_v14 = vpop.permute.xlu1 %1519  ;;  %444 = vxpose.xlu0.b32.cont [11/16] (narrow) %v4049_v0, 8  ;;  %v4169_v19 = vpop.permute.xlu0 %989 }
 0x24b   :  { %3438 = vset.pattern.permute.xlu1 %v3811_v61 }
 0x24c   :  { %524 = vperm.xlu1 %3438, %v4041_v59  }
 0x24d   :  { %445 = vxpose.xlu0.b32.cont [12/16] (narrow) %v4045_v63, 8 }
 0x24e   :  { %v4160_v15 = vpop.permute.xlu1 %499  ;;  %v4178_v22 = vpop.permute.xlu0 %1555 }
 0x250   :  { %3439 = vset.pattern.permute.xlu1 %v3810_v60 }
 0x251   :  { %985 = vperm.xlu1 %3439, %v4041_v59   ;;  %446 = vxpose.xlu0.b32.cont [13/16] (narrow) %v4055_v3, 8 }
 0x252   :  { %v4186_v24 = vpop.permute.xlu0 %1551 }
 0x253   :  { %v4167_v18 = vpop.permute.xlu1 %965 }
 0x255   :  { %3440 = vset.pattern.permute.xlu1 %v3813_v51  ;;  %447 = vxpose.xlu0.b32.cont [14/16] (narrow) %v4051_v1, 8 }
 0x256   :  { %2117 = vperm.xlu1 %3440, %v4041_v59  }
 0x257   :  { %v4192_v26 = vpop.permute.xlu0 %997 }
 0x258   :  { %v4174_v20 = vpop.permute.xlu1 %1531 }
 0x259   :  { %448 = vxpose.xlu0.b32.cont [15/16] (narrow) %v4061_v5, 8 }
 0x25a   :  { %3441 = vset.pattern.permute.xlu1 %v3811_v61 }
 0x25b   :  { %539 = vperm.xlu1 %3441, %v4045_v63  }
 0x25c   :  { %v4200_v29 = vpop.permute.xlu0 %1563 }
 0x25d   :  { %v4181_v23 = vpop.permute.xlu1 %2097  ;;  %449 = vxpose.xlu0.b32.end [16/16] (narrow) %v4059_v4, 8 }
 0x25f   :  { %3444 = vset.pattern.permute.xlu1 %v3813_v51 }
 0x260   :  { %2129 = vperm.xlu1 %3444, %v4045_v63   ;;  %v4206_v31 = vpop.permute.xlu0 %1559 }
 0x262   :  { %v4188_v25 = vpop.permute.xlu1 %494 }
 0x264   :  { %3445 = vset.pattern.permute.xlu1 %v3811_v61 }
 0x265   :  { %534 = vperm.xlu1 %3445, %v4049_v0   ;;  %v4213_v33 = vpop.permute.xlu0 %1005 }
 0x267   :  { %v4194_v27 = vpop.permute.xlu1 %961 }
 0x269   :  { %3446 = vset.pattern.permute.xlu1 %v3810_v60 }
 0x26a   :  { %993 = vperm.xlu1 %3446, %v4049_v0   ;;  %v4220_v35 = vpop.permute.xlu0 %1571 }
 0x26c   :  { %v4198_v28 = vpop.permute.xlu1 %1527 }
 0x26e   :  { %3447 = vset.pattern.permute.xlu1 %v3813_v51  ;;  %v4226_v38 = vpop.permute.xlu0 %1567 }
 0x26f   :  { %2125 = vperm.xlu1 %3447, %v4049_v0  }
 0x271   :  { %v4204_v30 = vpop.permute.xlu1 %2093 }
 0x273   :  { %3448 = vset.pattern.permute.xlu1 %v3811_v61  ;;  %v4235_v42 = vpop.permute.xlu0 %1013 }
 0x274   :  { %549 = vperm.xlu1 %3448, %v4051_v1  }
 0x276   :  { %v4210_v32 = vpop.permute.xlu1 %509 }
 0x278   :  { %3451 = vset.pattern.permute.xlu1 %v3813_v51  ;;  %v4241_v45 = vpop.permute.xlu0 %1579 }
 0x279   :  { %2137 = vperm.xlu1 %3451, %v4051_v1  }
 0x27b   :  { %v4216_v34 = vpop.permute.xlu1 %973 }
 0x27d   :  { %3452 = vset.pattern.permute.xlu1 %v3811_v61  ;;  %v4248_v49 = vpop.permute.xlu0 %2145 }
 0x27e   :  { %544 = vperm.xlu1 %3452, %v4055_v3  }
 0x280   :  { %v4222_v37 = vpop.permute.xlu1 %1539 }
 0x282   :  { %3453 = vset.pattern.permute.xlu1 %v3810_v60  ;;  %v4254_v53 = vpop.permute.xlu0 %1575 }
 0x283   :  { %1001 = vperm.xlu1 %3453, %v4055_v3  }
 0x285   :  { %v4228_v39 = vpop.permute.xlu1 %2105 }
 0x286   :  { %3527 = vset.pattern.permute.xlu0 %v3813_v51 }
 0x287   :  { %3454 = vset.pattern.permute.xlu1 %v3813_v51 }
 0x288   :  { %2133 = vperm.xlu1 %3454, %v4055_v3  }
 0x28a   :  { %v4233_v41 = vpop.permute.xlu1 %504 }
 0x28c   :  { %3455 = vset.pattern.permute.xlu1 %v3811_v61  ;;  %v563_v61 = vshrl.u32 %v562_v47, 7 }
 0x28d   :  { %559 = vperm.xlu1 %3455, %v4059_v4   ;;  %v4273_v4 = vld [vmem:[%s5403_s3] sm:$0xff] }
 0x28e   :  { %v564_v55 = vsub.s32 0, %v563_v61  ;;  %v1018_v57 = vsub.s32 1, %v563_v61  ;;  %v1584_v58 = vsub.s32 2, %v563_v61  ;;  %v2150_v2 = vsub.s32 3, %v563_v61 }
 0x28f   :  { %v4239_v43 = vpop.permute.xlu1 %969 }
 0x291   :  { %554 = vperm.xlu1 %3455, %v4061_v5  }
 0x294   :  { %v4244_v46 = vpop.permute.xlu1 %1535 }
 0x295   :  { %3459 = vset.pattern.permute.xlu1 %v3810_v60 }
 0x296   :  { %1009 = vperm.xlu1 %3459, %v4061_v5  }
 0x299   :  { %v4250_v50 = vpop.permute.xlu1 %2101 }
 0x29a   :  { %3461 = vset.pattern.permute.xlu1 %v3813_v51 }
 0x29b   :  { %2141 = vperm.xlu1 %3461, %v4061_v5  }
 0x29e   :  { %v4256_v54 = vpop.permute.xlu1 %519 }
 0x2a1   :  { %v450_v60 = vpop.trf.xlu0 }
 0x2a2   :  { %v4258_v59 = vrot.slane %v450_v60, %v564_v55  ;;  %v4260_v63 = vrot.slane %v450_v60, %v1018_v57  ;;  %v4262_v0 = vrot.slane %v450_v60, %v1584_v58 }
 0x2a3   :  { %v4264_v1 = vpop.permute.xlu1 %981 }
 0x2a4   :  { %v566_v51 = vadd.f32 %v4258_v59, %v4140_v9  ;;  %v1021_v3 = vadd.f32 %v4260_v63, %v4136_v8  ;;  %v1586_v47 = vadd.f32 %v4262_v0, %v4154_v14  ;;  %v4285_v8 = vld [vmem:[%s5403_s3 + $0x8] sm:$0xff]  ;;  %v1587_v44 = vadd.f32 %v4262_v0, %v4145_v10 }
 0x2a5   :  { %v4290_v14 = vrot.slane %v450_v60, %v2150_v2  ;;  %v1589_v52 = vadd.f32 %v4262_v0, %v4174_v20 }
 0x2a6   :  { %vm582_vm2 = vcmp.ge.f32.partialorder %v566_v51, 0.0  ;;  %v598_v5 = vmul.f32 0.2, %v566_v51  ;;  %vm1037_vm3 = vcmp.ge.f32.partialorder %v1021_v3, 0.0  ;;  %v1053_v55 = vmul.f32 0.2, %v1021_v3 }
 0x2a7   :  { %v1618_v56 = vmul.f32 0.2, %v1586_v47  ;;  %vm1602_vm4 = vcmp.ge.f32.partialorder %v1586_v47, 0.0  ;;  %vm1603_vm5 = vcmp.ge.f32.partialorder %v1587_v44, 0.0  ;;  %v2155_v2 = vadd.f32 %v4290_v14, %v4181_v23  ;;  %v469_v23 = vld [vmem:[%s5403_s3 + $0x18] sm:$0xff] }
 0x2a8   :  { %v4277_v57 = vpop.permute.xlu1 %2113  ;;  %v614_v58 = vsel %vm582_vm2, %v566_v51, %v598_v5  ;;  %v1069_v62 = vsel %vm1037_vm3, %v1021_v3, %v1053_v55  ;;  %v1621_v55 = vmul.f32 0.2, %v1589_v52  ;;  %vm1605_vm6 = vcmp.ge.f32.partialorder %v1589_v52, 0.0 }
 0x2a9   :  { %v4280_v9 = vadd.f32 %v614_v58, %v4273_v4  ;;  %v4295_v61 = vadd.f32 %v1069_v62, %v4285_v8  ;;  %v1634_v5 = vsel %vm1602_vm4, %v1586_v47, %v1618_v56  ;;  %v1619_v58 = vmul.f32 0.2, %v1587_v44 }
 0x2aa   :  { %v4301_v10 = vadd.f32 %v1634_v5, %v4273_v4  ;;  %v567_v56 = vadd.f32 %v4258_v59, %v4127_v6  ;;  %v2187_v20 = vmul.f32 0.2, %v2155_v2  ;;  %v1022_v47 = vadd.f32 %v4260_v63, %v4194_v27 }
 0x2ab   :  { %646 = vmax.xlane.f32.xlu0 %v4280_v9  ;;  %v1635_v3 = vsel %vm1603_vm5, %v1587_v44, %v1619_v58  ;;  %v1637_v5 = vsel %vm1605_vm6, %v1589_v52, %v1621_v55  ;;  %vm2171_vm7 = vcmp.ge.f32.partialorder %v2155_v2, 0.0  ;;  %v569_v6 = vadd.f32 %v4258_v59, %v4160_v15 }
 0x2ac   :  { %v4311_v62 = vadd.f32 %v1635_v3, %v4285_v8  ;;  %v599_v44 = vmul.f32 0.2, %v567_v56  ;;  %vm583_vm8 = vcmp.ge.f32.partialorder %v567_v56, 0.0  ;;  %v4323_v3 = vadd.f32 %v1637_v5, %v469_v23 }
 0x2ad   :  { %v4292_v51 = vpop.permute.xlu1 %514  ;;  %v2203_v40 = vsel %vm2171_vm7, %v2155_v2, %v2187_v20  ;;  %v1054_v11 = vmul.f32 0.2, %v1022_v47  ;;  %v1588_v27 = vadd.f32 %v4262_v0, %v4198_v28  ;;  %vm1038_vm9 = vcmp.ge.f32.partialorder %v1022_v47, 0.0  ;;  %v4340_v28 = vld [vmem:[%s5403_s3 + $0x10] sm:$0xff] }
 0x2ae   :  { %v615_v21 = vsel %vm583_vm8, %v567_v56, %v599_v44  ;;  %v601_v52 = vmul.f32 0.2, %v569_v6  ;;  %v1020_v55 = vadd.f32 %v4260_v63, %v4147_v12  ;;  %vm585_vm10 = vcmp.ge.f32.partialorder %v569_v6, 0.0 }
 0x2af   :  { %1102 = vmax.xlane.f32.xlu0 %v4295_v61  ;;  %v4332_v16 = vadd.f32 %v2203_v40, %v469_v23  ;;  %v4335_v5 = vadd.f32 %v615_v21, %v4285_v8  ;;  %v1070_v2 = vsel %vm1038_vm9, %v1022_v47, %v1054_v11  ;;  %v1620_v56 = vmul.f32 0.2, %v1588_v27 }
 0x2b0   :  { %v2154_v12 = vadd.f32 %v4290_v14, %v4204_v30  ;;  %v617_v20 = vsel %vm585_vm10, %v569_v6, %v601_v52  ;;  %vm1604_vm11 = vcmp.ge.f32.partialorder %v1588_v27, 0.0  ;;  %v1052_v44 = vmul.f32 0.2, %v1020_v55 }
 0x2b1   :  { %5465 = vst [vmem:[#allocation16_spill] sm:$0xff] %v4332_v16  ;;  %v1023_v40 = vadd.f32 %v4260_v63, %v4167_v18  ;;  %vm1036_vm12 = vcmp.ge.f32.partialorder %v1020_v55, 0.0  ;;  %v4349_v21 = vadd.f32 %v1070_v2, %v4340_v28  ;;  %v4353_v11 = vadd.f32 %v617_v20, %v469_v23 }
 0x2b2   :  { %v4305_v60 = vpop.permute.xlu1 %977  ;;  %v1636_v47 = vsel %vm1604_vm11, %v1588_v27, %v1620_v56  ;;  %v2186_v30 = vmul.f32 0.2, %v2154_v12  ;;  %v571_v6 = vadd.f32 %v4258_v59, %v4210_v32  ;;  %v1068_v52 = vsel %vm1036_vm12, %v1020_v55, %v1052_v44 }
 0x2b3   :  { %1666 = vmax.xlane.f32.xlu0 %v4301_v10  ;;  %vm2170_vm13 = vcmp.ge.f32.partialorder %v2154_v12, 0.0  ;;  %v1055_v18 = vmul.f32 0.2, %v1023_v40  ;;  %vm1039_vm14 = vcmp.ge.f32.partialorder %v1023_v40, 0.0  ;;  %v4362_v2 = vadd.f32 %v1636_v47, %v4340_v28 }
 0x2b4   :  { %v4365_v27 = vadd.f32 %v1068_v52, %v4273_v4  ;;  %v2202_v56 = vsel %vm2170_vm13, %v2154_v12, %v2186_v30  ;;  %v603_v20 = vmul.f32 0.2, %v571_v6  ;;  %v2157_v32 = vadd.f32 %v4290_v14, %v4228_v39  ;;  %v4383_v39 = vld [vmem:[%s5403_s3 + $0x28] sm:$0xff] }
 0x2b5   :  { %5466 = vst [vmem:[#allocation17_spill] sm:$0xff] %v4362_v2  ;;  %v1071_v44 = vsel %vm1039_vm14, %v1023_v40, %v1055_v18  ;;  %vm587_vm15 = vcmp.ge.f32.partialorder %v571_v6, 0.0  ;;  %v2153_v36 = vadd.f32 %v4290_v14, %v4133_v7  ;;  %v4376_v47 = vadd.f32 %v2202_v56, %v4340_v28 }
 0x2b6   :  { %v4378_v12 = vadd.f32 %v1071_v44, %v469_v23  ;;  %v619_v40 = vsel %vm587_vm15, %v571_v6, %v603_v20  ;;  %v2189_v30 = vmul.f32 0.2, %v2157_v32  ;;  %v1024_v7 = vadd.f32 %v4260_v63, %v4239_v43 }
 0x2b7   :  { %v4320_v58 = vpop.permute.xlu1 %1543  ;;  %1668 = vmax.xlane.f32.xlu0 %v4311_v62  ;;  %5467 = vst [vmem:[#allocation18_spill] sm:$0xff] %v4376_v47  ;;  %vm2173_vm1 = vcmp.ge.f32.partialorder %v2157_v32, 0.0  ;;  %v2185_v18 = vmul.f32 0.2, %v2153_v36  ;;  %vm2169_vm2 = vcmp.ge.f32.partialorder %v2153_v36, 0.0  ;;  %v4394_v23 = vadd.f32 %v619_v40, %v4383_v39 }
 0x2b8   :  { %v2205_v43 = vsel %vm2173_vm1, %v2157_v32, %v2189_v30  ;;  %v2156_v20 = vadd.f32 %v4290_v14, %v4250_v50  ;;  %vm1040_vm3 = vcmp.ge.f32.partialorder %v1024_v7, 0.0 }
 0x2b9   :  { %v2201_v44 = vsel %vm2169_vm2, %v2153_v36, %v2185_v18  ;;  %v573_v18 = vadd.f32 %v4258_v59, %v4256_v54 }
 0x2ba   :  { %v4411_v32 = vadd.f32 %v2201_v44, %v4285_v8  ;;  %vm2172_vm5 = vcmp.ge.f32.partialorder %v2156_v20, 0.0  ;;  %v2188_v36 = vmul.f32 0.2, %v2156_v20  ;;  %v2159_v8 = vadd.f32 %v4290_v14, %v4277_v57 }
 0x2bb   :  { %1672 = vmax.xlane.f32.xlu0 %v4323_v3  ;;  %vm589_vm7 = vcmp.ge.f32.partialorder %v573_v18, 0.0 }
 0x2bc   :  { %v4330_v15 = vpop.permute.xlu1 %2109  ;;  %5470 = vst [vmem:[#allocation21_spill] sm:$0xff] %v4411_v32  ;;  %v2204_v54 = vsel %vm2172_vm5, %v2156_v20, %v2188_v36  ;;  %v2191_v57 = vmul.f32 0.2, %v2159_v8  ;;  %vm2175_vm9 = vcmp.ge.f32.partialorder %v2159_v8, 0.0 }
 0x2bf   :  { %2238 = vmax.xlane.f32.xlu0 %v4332_v16  ;;  %648 = vmax.xlane.f32.xlu1 %v4335_v5  ;;  %v2152_v16 = vadd.f32 %v4290_v14, %v4152_v13 }
 0x2c1   :  { %v4351_v48 = vpop.permute.xlu1 %529  ;;  %v2184_v13 = vmul.f32 0.2, %v2152_v16  ;;  %vm2168_vm0 = vcmp.ge.f32.partialorder %v2152_v16, 0.0 }
 0x2c3   :  { %1104 = vmax.xlane.f32.xlu0 %v4349_v21  ;;  %652 = vmax.xlane.f32.xlu1 %v4353_v11  ;;  %v2200_v52 = vsel %vm2168_vm0, %v2152_v16, %v2184_v13  ;;  %v1056_v16 = vmul.f32 0.2, %v1024_v7  ;;  %v1025_v13 = vadd.f32 %v4260_v63, %v4216_v34  ;;  %v4416_v34 = vld [vmem:[%s5403_s3 + $0x20] sm:$0xff] }
 0x2c4   :  { %v4397_v6 = vadd.f32 %v2200_v52, %v4273_v4  ;;  %v4408_v4 = vadd.f32 %v2205_v43, %v4383_v39  ;;  %v1591_v43 = vadd.f32 %v4262_v0, %v4222_v37 }
 0x2c5   :  { %v1072_v50 = vsel %vm1040_vm3, %v1024_v7, %v1056_v16  ;;  %v1057_v52 = vmul.f32 0.2, %v1025_v13  ;;  %vm1041_vm6 = vcmp.ge.f32.partialorder %v1025_v13, 0.0 }
 0x2c6   :  { %v4369_v55 = vpop.permute.xlu1 %2121  ;;  %5468 = vst [vmem:[#allocation19_spill] sm:$0xff] %v4397_v6  ;;  %5469 = vst [vmem:[#allocation20_spill] sm:$0xff] %v4408_v4  ;;  %v4429_v16 = vadd.f32 %v1072_v50, %v4416_v34  ;;  %v1623_v37 = vmul.f32 0.2, %v1591_v43  ;;  %vm1607_vm8 = vcmp.ge.f32.partialorder %v1591_v43, 0.0  ;;  %v1026_v50 = vadd.f32 %v4260_v63, %v4305_v60 }
 0x2c7   :  { %1670 = vmax.xlane.f32.xlu0 %v4362_v2  ;;  %1100 = vmax.xlane.f32.xlu1 %v4365_v27  ;;  %v568_v2 = vadd.f32 %v4258_v59, %v4188_v25  ;;  %v1073_v44 = vsel %vm1041_vm6, %v1025_v13, %v1057_v52  ;;  %v1027_v60 = vadd.f32 %v4260_v63, %v4264_v1 }
 0x2c8   :  { %v4444_v20 = vadd.f32 %v1073_v44, %v4383_v39  ;;  %vm1042_vm11 = vcmp.ge.f32.partialorder %v1026_v50, 0.0 }
 0x2c9   :  { %v600_v25 = vmul.f32 0.2, %v568_v2  ;;  %vm584_vm4 = vcmp.ge.f32.partialorder %v568_v2, 0.0  ;;  %v1059_v1 = vmul.f32 0.2, %v1027_v60  ;;  %vm1043_vm13 = vcmp.ge.f32.partialorder %v1027_v60, 0.0 }
 0x2cb   :  { %v4389_v56 = vpop.permute.xlu1 %524  ;;  %2236 = vmax.xlane.f32.xlu0 %v4376_v47  ;;  %1106 = vmax.xlane.f32.xlu1 %v4378_v12  ;;  %v616_v30 = vsel %vm584_vm4, %v568_v2, %v600_v25  ;;  %v605_v25 = vmul.f32 0.2, %v573_v18 }
 0x2cc   :  { %v4432_v2 = vadd.f32 %v616_v30, %v4340_v28  ;;  %v4441_v28 = vadd.f32 %v2204_v54, %v4416_v34  ;;  %v1639_v30 = vsel %vm1607_vm8, %v1591_v43, %v1623_v37  ;;  %v1058_v54 = vmul.f32 0.2, %v1026_v50 }
 0x2cd   :  { %v621_v36 = vsel %vm589_vm7, %v573_v18, %v605_v25  ;;  %v4463_v18 = vadd.f32 %v1639_v30, %v4383_v39  ;;  %v2158_v43 = vadd.f32 %v4290_v14, %v4330_v15  ;;  %v1593_v30 = vadd.f32 %v4262_v0, %v4162_v17 }
 0x2ce   :  { %5471 = vst [vmem:[#allocation22_spill] sm:$0xff] %v4441_v28 }
 0x2cf   :  { %656 = vmax.xlane.f32.xlu0 %v4394_v23  ;;  %2232 = vmax.xlane.f32.xlu1 %v4397_v6  ;;  %v570_v6 = vadd.f32 %v4258_v59, %v4233_v41  ;;  %v4451_v41 = vld [vmem:[%s5403_s3 + $0x38] sm:$0xff]  ;;  %5472 = vst [vmem:[#allocation23_spill] sm:$0xff] %v4463_v18  ;;  %vm2174_vm14 = vcmp.ge.f32.partialorder %v2158_v43, 0.0  ;;  %vm1609_vm0 = vcmp.ge.f32.partialorder %v1593_v30, 0.0 }
 0x2d0   :  { %v4405_v40 = vpop.permute.xlu1 %985  ;;  %v4460_v44 = vadd.f32 %v621_v36, %v4451_v41  ;;  %v575_v36 = vadd.f32 %v4258_v59, %v4351_v48  ;;  %v472_v48 = vld [vmem:[%s5403_s3 + $0x30] sm:$0xff] }
 0x2d1   :  { %v602_v52 = vmul.f32 0.2, %v570_v6  ;;  %vm586_vm10 = vcmp.ge.f32.partialorder %v570_v6, 0.0 }
 0x2d2   :  { %vm591_vm15 = vcmp.ge.f32.partialorder %v575_v36, 0.0 }
 0x2d3   :  { %2242 = vmax.xlane.f32.xlu0 %v4408_v4  ;;  %2234 = vmax.xlane.f32.xlu1 %v4411_v32  ;;  %v1590_v32 = vadd.f32 %v4262_v0, %v4244_v46  ;;  %v2207_v46 = vsel %vm2175_vm9, %v2159_v8, %v2191_v57  ;;  %v618_v25 = vsel %vm586_vm10, %v570_v6, %v602_v52  ;;  %v2190_v6 = vmul.f32 0.2, %v2158_v43 }
 0x2d4   :  { %v4474_v39 = vadd.f32 %v2207_v46, %v4451_v41  ;;  %v4477_v15 = vadd.f32 %v618_v25, %v4416_v34  ;;  %v1074_v8 = vsel %vm1042_vm11, %v1026_v50, %v1058_v54  ;;  %v572_v46 = vadd.f32 %v4258_v59, %v4292_v51 }
 0x2d5   :  { %v4426_v7 = vpop.permute.xlu1 %2117  ;;  %v1622_v37 = vmul.f32 0.2, %v1590_v32  ;;  %vm1606_vm12 = vcmp.ge.f32.partialorder %v1590_v32, 0.0  ;;  %v607_v50 = vmul.f32 0.2, %v575_v36  ;;  %v2161_v54 = vadd.f32 %v4290_v14, %v4369_v55 }
 0x2d6   :  { %5473 = vst [vmem:[#allocation24_spill] sm:$0xff] %v4474_v39  ;;  %v2206_v25 = vsel %vm2174_vm14, %v2158_v43, %v2190_v6  ;;  %v1592_v51 = vadd.f32 %v4262_v0, %v4320_v58  ;;  %vm588_vm1 = vcmp.ge.f32.partialorder %v572_v46, 0.0  ;;  %v475_v58 = vld [vmem:[%s5403_s3 + $0x48] sm:$0xff] }
 0x2d7   :  { %1108 = vmax.xlane.f32.xlu0 %v4429_v16  ;;  %650 = vmax.xlane.f32.xlu1 %v4432_v2  ;;  %v1638_v57 = vsel %vm1606_vm12, %v1590_v32, %v1622_v37  ;;  %v4490_v32 = vadd.f32 %v1074_v8, %v472_v48  ;;  %v1075_v37 = vsel %vm1043_vm13, %v1027_v60, %v1059_v1  ;;  %v604_v8 = vmul.f32 0.2, %v572_v46 }
 0x2d8   :  { %v4493_v17 = vadd.f32 %v1638_v57, %v4416_v34  ;;  %v4503_v34 = vadd.f32 %v2206_v25, %v472_v48  ;;  %v4506_v57 = vadd.f32 %v1075_v37, %v4451_v41  ;;  %v2193_v55 = vmul.f32 0.2, %v2161_v54 }
 0x2d9   :  { %v1028_v60 = vadd.f32 %v4260_v63, %v4405_v40  ;;  %v623_v43 = vsel %vm591_vm15, %v575_v36, %v607_v50  ;;  %vm2177_vm2 = vcmp.ge.f32.partialorder %v2161_v54, 0.0  ;;  %vm1608_vm3 = vcmp.ge.f32.partialorder %v1592_v51, 0.0 }
 0x2da   :  { %v4446_v13 = vpop.permute.xlu1 %539  ;;  %5474 = vst [vmem:[#allocation25_spill] sm:$0xff] %v4503_v34  ;;  %v1624_v6 = vmul.f32 0.2, %v1592_v51  ;;  %v4515_v25 = vadd.f32 %v623_v43, %v475_v58  ;;  %v1029_v40 = vadd.f32 %v4260_v63, %v4169_v19  ;;  %v2209_v50 = vsel %vm2177_vm2, %v2161_v54, %v2193_v55 }
 0x2db   :  { %2240 = vmax.xlane.f32.xlu0 %v4441_v28  ;;  %1110 = vmax.xlane.f32.xlu1 %v4444_v20  ;;  %v1060_v36 = vmul.f32 0.2, %v1028_v60  ;;  %vm1044_vm4 = vcmp.ge.f32.partialorder %v1028_v60, 0.0  ;;  %v4528_v43 = vadd.f32 %v2209_v50, %v475_v58 }
 0x2dc   :  { %v1061_v19 = vmul.f32 0.2, %v1029_v40  ;;  %vm1045_vm6 = vcmp.ge.f32.partialorder %v1029_v40, 0.0 }
 0x2dd   :  { %5475 = vst [vmem:[#allocation26_spill] sm:$0xff] %v4528_v43 }
 0x2df   :  { %v4467_v4 = vpop.permute.xlu1 %2129  ;;  %660 = vmax.xlane.f32.xlu0 %v4460_v44  ;;  %1676 = vmax.xlane.f32.xlu1 %v4463_v18  ;;  %v1076_v18 = vsel %vm1044_vm4, %v1028_v60, %v1060_v36 }
 0x2e3   :  { %2246 = vmax.xlane.f32.xlu0 %v4474_v39  ;;  %654 = vmax.xlane.f32.xlu1 %v4477_v15  ;;  %v1625_v39 = vmul.f32 0.2, %v1593_v30 }
 0x2e4   :  { %v4483_v52 = vpop.permute.xlu1 %534 }
 0x2e5   :  { %v1641_v1 = vsel %vm1609_vm0, %v1593_v30, %v1625_v39  ;;  %v2160_v39 = vadd.f32 %v4290_v14, %v4426_v7  ;;  %v577_v7 = vadd.f32 %v4258_v59, %v4446_v13 }
 0x2e6   :  { %v4518_v37 = vadd.f32 %v1641_v1, %v4451_v41  ;;  %v1640_v1 = vsel %vm1608_vm3, %v1592_v51, %v1624_v6  ;;  %v574_v51 = vadd.f32 %v4258_v59, %v4389_v56  ;;  %v1077_v6 = vsel %vm1045_vm6, %v1029_v40, %v1061_v19  ;;  %v477_v19 = vld [vmem:[%s5403_s3 + $0x58] sm:$0xff] }
 0x2e7   :  { %1112 = vmax.xlane.f32.xlu0 %v4490_v32  ;;  %1674 = vmax.xlane.f32.xlu1 %v4493_v17  ;;  %v2192_v47 = vmul.f32 0.2, %v2160_v39  ;;  %vm2176_vm5 = vcmp.ge.f32.partialorder %v2160_v39, 0.0  ;;  %v609_v55 = vmul.f32 0.2, %v577_v7  ;;  %vm593_vm7 = vcmp.ge.f32.partialorder %v577_v7, 0.0 }
 0x2e8   :  { %v606_v56 = vmul.f32 0.2, %v574_v51  ;;  %vm590_vm9 = vcmp.ge.f32.partialorder %v574_v51, 0.0 }
 0x2e9   :  { %v4501_v28 = vpop.permute.xlu1 %993  ;;  %v2208_v60 = vsel %vm2176_vm5, %v2160_v39, %v2192_v47  ;;  %v2163_v47 = vadd.f32 %v4290_v14, %v4467_v4  ;;  %v625_v40 = vsel %vm593_vm7, %v577_v7, %v609_v55  ;;  %v1597_v7 = vadd.f32 %v4262_v0, %v4200_v29 }
 0x2ea   :  { %v1030_v55 = vadd.f32 %v4260_v63, %v4501_v28  ;;  %v576_v29 = vadd.f32 %v4258_v59, %v4483_v52 }
 0x2eb   :  { %2244 = vmax.xlane.f32.xlu0 %v4503_v34  ;;  %1114 = vmax.xlane.f32.xlu1 %v4506_v57  ;;  %v620_v34 = vsel %vm588_vm1, %v572_v46, %v604_v8  ;;  %v1595_v46 = vadd.f32 %v4262_v0, %v4178_v22  ;;  %v474_v8 = vld [vmem:[%s5403_s3 + $0x40] sm:$0xff]  ;;  %v1031_v22 = vadd.f32 %v4260_v63, %v4192_v26  ;;  %vm2179_vm12 = vcmp.ge.f32.partialorder %v2163_v47, 0.0 }
 0x2ec   :  { %v4530_v41 = vadd.f32 %v620_v34, %v472_v48  ;;  %v4546_v13 = vadd.f32 %v1076_v18, %v474_v8  ;;  %v4548_v34 = vadd.f32 %v1640_v1, %v472_v48  ;;  %v4554_v18 = vadd.f32 %v2208_v60, %v474_v8 }
 0x2ed   :  { %v1627_v36 = vmul.f32 0.2, %v1595_v46  ;;  %vm1611_vm8 = vcmp.ge.f32.partialorder %v1595_v46, 0.0  ;;  %v4556_v48 = vadd.f32 %v1077_v6, %v475_v58  ;;  %v1594_v26 = vadd.f32 %v4262_v0, %v4186_v24 }
 0x2ee   :  { %v4524_v30 = vpop.permute.xlu1 %2125  ;;  %5476 = vst [vmem:[#allocation27_spill] sm:$0xff] %v4554_v18  ;;  %v1063_v1 = vmul.f32 0.2, %v1031_v22  ;;  %vm1047_vm10 = vcmp.ge.f32.partialorder %v1031_v22, 0.0  ;;  %v622_v60 = vsel %vm590_vm9, %v574_v51, %v606_v56  ;;  %vm1613_vm13 = vcmp.ge.f32.partialorder %v1597_v7, 0.0 }
 0x2ef   :  { %664 = vmax.xlane.f32.xlu0 %v4515_v25  ;;  %1680 = vmax.xlane.f32.xlu1 %v4518_v37  ;;  %v1643_v39 = vsel %vm1611_vm8, %v1595_v46, %v1627_v36  ;;  %v1626_v4 = vmul.f32 0.2, %v1594_v26  ;;  %v2195_v46 = vmul.f32 0.2, %v2163_v47  ;;  %vm1610_vm11 = vcmp.ge.f32.partialorder %v1594_v26, 0.0 }
 0x2f0   :  { %v4571_v24 = vadd.f32 %v1643_v39, %v475_v58  ;;  %v1079_v36 = vsel %vm1047_vm10, %v1031_v22, %v1063_v1  ;;  %v4579_v51 = vadd.f32 %v622_v60, %v474_v8  ;;  %v1062_v39 = vmul.f32 0.2, %v1030_v55 }
 0x2f1   :  { %v4581_v56 = vadd.f32 %v1079_v36, %v477_v19  ;;  %v1642_v58 = vsel %vm1610_vm11, %v1594_v26, %v1626_v4  ;;  %v2162_v28 = vadd.f32 %v4290_v14, %v4524_v30  ;;  %v2211_v1 = vsel %vm2179_vm12, %v2163_v47, %v2195_v46 }
 0x2f2   :  { %5477 = vst [vmem:[#allocation28_spill] sm:$0xff] %v4571_v24  ;;  %vm1046_vm14 = vcmp.ge.f32.partialorder %v1030_v55, 0.0  ;;  %v1596_v26 = vadd.f32 %v4262_v0, %v4206_v31  ;;  %v4593_v60 = vadd.f32 %v2211_v1, %v477_v19  ;;  %v4595_v4 = vadd.f32 %v1642_v58, %v474_v8  ;;  %v476_v31 = vld [vmem:[%s5403_s3 + $0x50] sm:$0xff] }
 0x2f3   :  { %v4537_v54 = vpop.permute.xlu1 %549  ;;  %2250 = vmax.xlane.f32.xlu0 %v4528_v43  ;;  %658 = vmax.xlane.f32.xlu1 %v4530_v41  ;;  %v4569_v43 = vadd.f32 %v625_v40, %v477_v19  ;;  %v1629_v40 = vmul.f32 0.2, %v1597_v7  ;;  %v608_v36 = vmul.f32 0.2, %v576_v29  ;;  %vm592_vm15 = vcmp.ge.f32.partialorder %v576_v29, 0.0 }
 0x2f4   :  { %5478 = vst [vmem:[#allocation29_spill] sm:$0xff] %v4593_v60  ;;  %5479 = vst [vmem:[#allocation30_spill] sm:$0xff] %v4595_v4  ;;  %v579_v30 = vadd.f32 %v4258_v59, %v4537_v54  ;;  %vm2178_vm0 = vcmp.ge.f32.partialorder %v2162_v28, 0.0  ;;  %v1628_v8 = vmul.f32 0.2, %v1596_v26  ;;  %vm1612_vm1 = vcmp.ge.f32.partialorder %v1596_v26, 0.0 }
 0x2f5   :  { %v1645_v52 = vsel %vm1613_vm13, %v1597_v7, %v1629_v40  ;;  %v1033_v54 = vadd.f32 %v4260_v63, %v4213_v33  ;;  %v1599_v33 = vadd.f32 %v4262_v0, %v4220_v35 }
 0x2f6   :  { %v4606_v7 = vadd.f32 %v1645_v52, %v477_v19  ;;  %vm595_vm2 = vcmp.ge.f32.partialorder %v579_v30, 0.0 }
 0x2f7   :  { %1116 = vmax.xlane.f32.xlu0 %v4546_v13  ;;  %1678 = vmax.xlane.f32.xlu1 %v4548_v34  ;;  %v1065_v52 = vmul.f32 0.2, %v1033_v54  ;;  %vm1049_vm3 = vcmp.ge.f32.partialorder %v1033_v54, 0.0  ;;  %vm1615_vm5 = vcmp.ge.f32.partialorder %v1599_v33, 0.0 }
 0x2f8   :  { %v2138_v50 = vpop.permute.xlu1 %2137  ;;  %5480 = vst [vmem:[#allocation31_spill] sm:$0xff] %v4606_v7 }
 0x2f9   :  { %v2165_v58 = vadd.f32 %v4290_v14, %v2138_v50  ;;  %v1081_v35 = vsel %vm1049_vm3, %v1033_v54, %v1065_v52  ;;  %v2167_v52 = vadd.f32 %v4290_v14, %v4248_v49  ;;  %vm1501_vm3 = vcmask 261248  }
 0x2fb   :  { %2248 = vmax.xlane.f32.xlu0 %v4554_v18  ;;  %1118 = vmax.xlane.f32.xlu1 %v4556_v48  ;;  %v2194_v18 = vmul.f32 0.2, %v2162_v28  ;;  %vm2181_vm4 = vcmp.ge.f32.partialorder %v2165_v58, 0.0  ;;  %v2199_v49 = vmul.f32 0.2, %v2167_v52  ;;  %vm2183_vm9 = vcmp.ge.f32.partialorder %v2167_v52, 0.0 }
 0x2fd   :  { %v4567_v6 = vpop.permute.xlu1 %544  ;;  %v2210_v40 = vsel %vm2178_vm0, %v2162_v28, %v2194_v18  ;;  %v479_v28 = vld [vmem:[%s5403_s3 + $0x68] sm:$0xff] }
 0x2ff   :  { %668 = vmax.xlane.f32.xlu0 %v4569_v43  ;;  %1684 = vmax.xlane.f32.xlu1 %v4571_v24  ;;  %v1078_v24 = vsel %vm1046_vm14, %v1030_v55, %v1062_v39  ;;  %v611_v55 = vmul.f32 0.2, %v579_v30  ;;  %v624_v39 = vsel %vm592_vm15, %v576_v29, %v608_v36 }
 0x300   :  { %v4604_v46 = vadd.f32 %v1078_v24, %v476_v31  ;;  %v4613_v24 = vadd.f32 %v2210_v40, %v476_v31  ;;  %v4615_v19 = vadd.f32 %v624_v39, %v476_v31 }
 0x301   :  { %v627_v18 = vsel %vm595_vm2, %v579_v30, %v611_v55  ;;  %v578_v30 = vadd.f32 %v4258_v59, %v4567_v6  ;;  %vm935_vm2 = vcmask 130048  }
 0x302   :  { %v4587_v22 = vpop.permute.xlu1 %1001  ;;  %5481 = vst [vmem:[#allocation32_spill] sm:$0xff] %v4613_v24  ;;  %v4629_v36 = vadd.f32 %v627_v18, %v479_v28 }
 0x303   :  { %1122 = vmax.xlane.f32.xlu0 %v4581_v56  ;;  %662 = vmax.xlane.f32.xlu1 %v4579_v51  ;;  %v610_v18 = vmul.f32 0.2, %v578_v30  ;;  %v1032_v6 = vadd.f32 %v4260_v63, %v4587_v22  ;;  %vm594_vm7 = vcmp.ge.f32.partialorder %v578_v30, 0.0  ;;  %v1598_v22 = vadd.f32 %v4262_v0, %v4226_v38 }
 0x304   :  { %v2215_v38 = vsel %vm2183_vm9, %v2167_v52, %v2199_v49  ;;  %v1601_v52 = vadd.f32 %v4262_v0, %v4241_v45 }
 0x305   :  { %vm1048_vm10 = vcmp.ge.f32.partialorder %v1032_v6, 0.0  ;;  %vm1614_vm12 = vcmp.ge.f32.partialorder %v1598_v22, 0.0 }
 0x306   :  { %vm1617_vm14 = vcmp.ge.f32.partialorder %v1601_v52, 0.0 }
 0x307   :  { %v2134_v47 = vpop.permute.xlu1 %2133  ;;  %2254 = vmax.xlane.f32.xlu0 %v4593_v60  ;;  %1682 = vmax.xlane.f32.xlu1 %v4595_v4  ;;  %v1644_v60 = vsel %vm1612_vm1, %v1596_v26, %v1628_v8  ;;  %v2197_v4 = vmul.f32 0.2, %v2165_v58 }
 0x308   :  { %v2164_v50 = vadd.f32 %v4290_v14, %v2134_v47  ;;  %v4627_v26 = vadd.f32 %v1644_v60, %v476_v31  ;;  %v1631_v47 = vmul.f32 0.2, %v1599_v33  ;;  %v4638_v31 = vadd.f32 %v1081_v35, %v479_v28 }
 0x309   :  { %v2213_v40 = vsel %vm2181_vm4, %v2165_v58, %v2197_v4  ;;  %v478_v58 = vld [vmem:[%s5403_s3 + $0x60] sm:$0xff]  ;;  %vm2067_vm4 = vcmask 392448  }
 0x30a   :  { %5482 = vst [vmem:[#allocation33_spill] sm:$0xff] %v4627_v26  ;;  %v2196_v8 = vmul.f32 0.2, %v2164_v50  ;;  %vm2180_vm6 = vcmp.ge.f32.partialorder %v2164_v50, 0.0  ;;  %v4636_v60 = vadd.f32 %v2213_v40, %v479_v28  ;;  %v1647_v54 = vsel %vm1615_vm5, %v1599_v33, %v1631_v47 }
 0x30b   :  { %1120 = vmax.xlane.f32.xlu0 %v4604_v46  ;;  %1688 = vmax.xlane.f32.xlu1 %v4606_v7  ;;  %v4651_v35 = vadd.f32 %v1647_v54, %v479_v28  ;;  %v1064_v47 = vmul.f32 0.2, %v1032_v6  ;;  %v626_v40 = vsel %vm594_vm7, %v578_v30, %v610_v18  ;;  %v481_v28 = vld [vmem:[%s5403_s3 + $0x78] sm:$0xff]  ;;  %v1630_v30 = vmul.f32 0.2, %v1598_v22 }
 0x30c   :  { %v560_v1 = vpop.permute.xlu1 %559  ;;  %5483 = vst [vmem:[#allocation34_spill] sm:$0xff] %v4636_v60  ;;  %v2212_v4 = vsel %vm2180_vm6, %v2164_v50, %v2196_v8  ;;  %v1035_v18 = vadd.f32 %v4260_v63, %v4235_v42  ;;  %v480_v42 = vld [vmem:[%s5403_s3 + $0x70] sm:$0xff]  ;;  %s3814_s3 = smov 80   ;;  %vm2633_vm5 = vcmask 523648  }
 0x30d   :  { %v581_v55 = vadd.f32 %v4258_v59, %v560_v1  ;;  %v4649_v33 = vadd.f32 %v2212_v4, %v478_v58  ;;  %5485 = vst [vmem:[#allocation36_spill] sm:$0xff] %v4651_v35  ;;  %v4663_v4 = vadd.f32 %v626_v40, %v478_v58 }
 0x30e   :  { %v1067_v40 = vmul.f32 0.2, %v1035_v18  ;;  %vm1051_vm13 = vcmp.ge.f32.partialorder %v1035_v18, 0.0 }
 0x30f   :  { %2252 = vmax.xlane.f32.xlu0 %v4613_v24  ;;  %666 = vmax.xlane.f32.xlu1 %v4615_v19  ;;  %v613_v1 = vmul.f32 0.2, %v581_v55  ;;  %vm597_vm8 = vcmp.ge.f32.partialorder %v581_v55, 0.0  ;;  %5484 = vst [vmem:[#allocation35_spill] sm:$0xff] %v4649_v33 }
 0x310   :  { %v4622_v29 = vpop.permute.xlu1 %554 }
 0x311   :  { %v629_v8 = vsel %vm597_vm8, %v581_v55, %v613_v1  ;;  %v1080_v55 = vsel %vm1048_vm10, %v1032_v6, %v1064_v47 }
 0x312   :  { %v4661_v54 = vadd.f32 %v629_v8, %v481_v28  ;;  %v4671_v1 = vadd.f32 %v1080_v55, %v478_v58 }
 0x313   :  { %672 = vmax.xlane.f32.xlu0 %v4629_v36  ;;  %1686 = vmax.xlane.f32.xlu1 %v4627_v26 }
 0x315   :  { %v1010_v39 = vpop.permute.xlu1 %1009 }
 0x317   :  { %2258 = vmax.xlane.f32.xlu0 %v4636_v60  ;;  %1126 = vmax.xlane.f32.xlu1 %v4638_v31 }
 0x31a   :  { %v2142_v50 = vpop.permute.xlu1 %2141 }
 0x31b   :  { %v2166_v60 = vadd.f32 %v4290_v14, %v2142_v50  ;;  %2256 = vmax.xlane.f32.xlu0 %v4649_v33  ;;  %1692 = vmax.xlane.f32.xlu1 %v4651_v35  ;;  %v4669_v14 = vadd.f32 %v2215_v38, %v481_v28  ;;  %v1646_v50 = vsel %vm1614_vm12, %v1598_v22, %v1630_v30  ;;  %v1633_v22 = vmul.f32 0.2, %v1601_v52 }
 0x31c   :  { %v4680_v6 = vadd.f32 %v1646_v50, %v478_v58  ;;  %v1034_v38 = vadd.f32 %v4260_v63, %v1010_v39 }
 0x31d   :  { %v2198_v24 = vmul.f32 0.2, %v2166_v60  ;;  %vm2182_vm11 = vcmp.ge.f32.partialorder %v2166_v60, 0.0  ;;  %5486 = vst [vmem:[#allocation37_spill] sm:$0xff] %v4669_v14  ;;  %v1649_v55 = vsel %vm1617_vm14, %v1601_v52, %v1633_v22 }
 0x31e   :  { %5487 = vst [vmem:[#allocation38_spill] sm:$0xff] %v4680_v6  ;;  %v4692_v58 = vadd.f32 %v1649_v55, %v481_v28  ;;  %v1066_v30 = vmul.f32 0.2, %v1034_v38  ;;  %vm1050_vm0 = vcmp.ge.f32.partialorder %v1034_v38, 0.0 }
 0x31f   :  { %676 = vmax.xlane.f32.xlu0 %v4661_v54  ;;  %670 = vmax.xlane.f32.xlu1 %v4663_v4  ;;  %v2214_v8 = vsel %vm2182_vm11, %v2166_v60, %v2198_v24  ;;  %v580_v24 = vadd.f32 %v4258_v59, %v4622_v29  ;;  %v1083_v60 = vsel %vm1051_vm13, %v1035_v18, %v1067_v40 }
 0x320   :  { %v4682_v49 = vadd.f32 %v2214_v8, %v480_v42  ;;  %v4688_v45 = vadd.f32 %v1083_v60, %v481_v28  ;;  %5489 = vst [vmem:[#allocation40_spill] sm:$0xff] %v4692_v58  ;;  %v1600_v29 = vadd.f32 %v4262_v0, %v4254_v53  ;;  %v1082_v50 = vsel %vm1050_vm0, %v1034_v38, %v1066_v30 }
 0x321   :  { %v612_v47 = vmul.f32 0.2, %v580_v24  ;;  %vm596_vm15 = vcmp.ge.f32.partialorder %v580_v24, 0.0  ;;  %v4700_v63 = vadd.f32 %v1082_v50, %v480_v42 }
 0x322   :  { %5488 = vst [vmem:[#allocation39_spill] sm:$0xff] %v4682_v49  ;;  %v1632_v8 = vmul.f32 0.2, %v1600_v29  ;;  %vm1616_vm1 = vcmp.ge.f32.partialorder %v1600_v29, 0.0 }
 0x323   :  { %2262 = vmax.xlane.f32.xlu0 %v4669_v14  ;;  %1124 = vmax.xlane.f32.xlu1 %v4671_v1  ;;  %v628_v59 = vsel %vm596_vm15, %v580_v24, %v612_v47 }
 0x324   :  { %v4697_v18 = vadd.f32 %v628_v59, %v480_v42  ;;  %v1648_v39 = vsel %vm1616_vm1, %v1600_v29, %v1632_v8 }
 0x325   :  { %v4704_v52 = vadd.f32 %v1648_v39, %v480_v42 }
 0x327   :  { %1690 = vmax.xlane.f32.xlu1 %v4680_v6  ;;  %2260 = vmax.xlane.f32.xlu0 %v4682_v49  ;;  %5490 = vst [vmem:[#allocation41_spill] sm:$0xff] %v4704_v52 }
 0x32b   :  { %1130 = vmax.xlane.f32.xlu1 %v4688_v45 }
 0x32f   :  { %1696 = vmax.xlane.f32.xlu1 %v4692_v58 }
 0x333   :  { %674 = vmax.xlane.f32.xlu1 %v4697_v18 }
 0x337   :  { %1128 = vmax.xlane.f32.xlu1 %v4700_v63 }
 0x338   :  { %v647_v28 = vpop.xlane.xlu0 %646 }
 0x339   :  { %v678_v40 = vsub.f32 %v4280_v9, %v647_v28 }
 0x33b   :  { %v694_v53 = vmul.f32 1.442695, %v678_v40  ;;  %1694 = vmax.xlane.f32.xlu1 %v4704_v52 }
 0x33c   :  { %v1103_v0 = vpop.xlane.xlu0 %1102 }
 0x33d   :  { %3528 = vpow2.f32 %v694_v53  ;;  %v1133_v29 = vsub.f32 %v4295_v61, %v1103_v0 }
 0x33f   :  { %v1150_v40 = vmul.f32 1.442695, %v1133_v29 }
 0x340   :  { %v1667_v24 = vpop.xlane.xlu0 %1666 }
 0x344   :  { %v1669_v60 = vpop.xlane.xlu0 %1668 }
 0x345   :  { %v1699_v53 = vsub.f32 %v4311_v62, %v1669_v60 }
 0x347   :  { %v4707_v22 = vpop.eup %3528 }
 0x348   :  { %v4709_v47 = vpop.xlane.xlu0 %1672  ;;  %726 = vadd.xlane.f32.xlu1 %v4707_v22 }
 0x34c   :  { %v4712_v38 = vpop.xlane.xlu0 %2238  ;;  %v649_v55 = vpop.xlane.xlu1 %648 }
 0x34d   :  { %v679_v9 = vsub.f32 %v4335_v5, %v649_v55 }
 0x34f   :  { %v696_v42 = vmul.f32 1.442695, %v679_v9  ;;  %v1716_v9 = vmul.f32 1.442695, %v1699_v53 }
 0x350   :  { %v1105_v30 = vpop.xlane.xlu0 %1104  ;;  %v653_v59 = vpop.xlane.xlu1 %652 }
 0x351   :  { %v681_v50 = vsub.f32 %v4353_v11, %v653_v59  ;;  %3530 = vpow2.f32 %v696_v42  ;;  %v1698_v11 = vsub.f32 %v4301_v10, %v1667_v24 }
 0x353   :  { %v700_v8 = vmul.f32 1.442695, %v681_v50  ;;  %v1714_v62 = vmul.f32 1.442695, %v1698_v11 }
 0x354   :  { %v4717_v39 = vpop.xlane.xlu0 %1670  ;;  %v1101_v28 = vpop.xlane.xlu1 %1100 }
 0x355   :  { %v1132_v49 = vsub.f32 %v4365_v27, %v1101_v28  ;;  %3532 = vpow2.f32 %v700_v8  ;;  %v1134_v27 = vsub.f32 %v4349_v21, %v1105_v30 }
 0x356   :  { %3534 = vpow2.f32 %v1150_v40 }
 0x357   :  { %v1148_v14 = vmul.f32 1.442695, %v1132_v49 }
 0x358   :  { %v4721_v5 = vpop.xlane.xlu0 %2236  ;;  %v1107_v55 = vpop.xlane.xlu1 %1106 }
 0x359   :  { %v1135_v61 = vsub.f32 %v4378_v12, %v1107_v55  ;;  %3536 = vpow2.f32 %v1148_v14  ;;  %v1152_v14 = vmul.f32 1.442695, %v1134_v27 }
 0x35a   :  { %3538 = vpow2.f32 %v1716_v9 }
 0x35b   :  { %v1154_v0 = vmul.f32 1.442695, %v1135_v61  ;;  %v4725_v42 = vpop.eup %3530 }
 0x35c   :  { %v657_v59 = vpop.xlane.xlu0 %656  ;;  %v4727_v29 = vpop.xlane.xlu1 %2232  ;;  %728 = vadd.xlane.f32.xlu0 %v4725_v42 }
 0x35d   :  { %5491 = vst [vmem:[#allocation42_spill] sm:$0xff] %v4727_v29  ;;  %3540 = vpow2.f32 %v1154_v0  ;;  %v683_v10 = vsub.f32 %v4394_v23, %v657_v59 }
 0x35e   :  { %3542 = vpow2.f32 %v1714_v62 }
 0x35f   :  { %v4731_v49 = vpop.eup %3532  ;;  %v704_v21 = vmul.f32 1.442695, %v683_v10  ;;  %3544 = vpow2.f32 %v1152_v14 }
 0x360   :  { %v4733_v60 = vpop.xlane.xlu0 %2242  ;;  %v4735_v12 = vpop.xlane.xlu1 %2234  ;;  %732 = vadd.xlane.f32.xlu0 %v4731_v49 }
 0x361   :  { %5492 = vst [vmem:[#allocation43_spill] sm:$0xff] %v4735_v12  ;;  %v4739_v24 = vpop.eup %3534  ;;  %3546 = vpow2.f32 %v704_v21 }
 0x363   :  { %v4741_v50 = vpop.eup %3536 }
 0x364   :  { %v1109_v8 = vpop.xlane.xlu0 %1108  ;;  %v651_v28 = vpop.xlane.xlu1 %650  ;;  %1182 = vadd.xlane.f32.xlu0 %v4739_v24  ;;  %1180 = vadd.xlane.f32.xlu1 %v4741_v50 }
 0x365   :  { %v680_v30 = vsub.f32 %v4432_v2, %v651_v28  ;;  %v4746_v40 = vpop.eup %3538  ;;  %v1136_v21 = vsub.f32 %v4429_v16, %v1109_v8 }
 0x366   :  { %5493 = vst [vmem:[#allocation44_spill] sm:$0xff] %v4746_v40 }
 0x367   :  { %v698_v23 = vmul.f32 1.442695, %v680_v30  ;;  %v4748_v53 = vpop.eup %3540 }
 0x368   :  { %v4750_v55 = vpop.xlane.xlu0 %2240  ;;  %v1111_v9 = vpop.xlane.xlu1 %1110  ;;  %1748 = vadd.xlane.f32.xlu1 %v4746_v40  ;;  %1186 = vadd.xlane.f32.xlu0 %v4748_v53 }
 0x369   :  { %v1137_v61 = vsub.f32 %v4444_v20, %v1111_v9  ;;  %3548 = vpow2.f32 %v698_v23  ;;  %v4755_v0 = vpop.eup %3542 }
 0x36a   :  { %v4761_v10 = vpop.eup %3544 }
 0x36b   :  { %v1158_v11 = vmul.f32 1.442695, %v1137_v61  ;;  %v4768_v30 = vpop.eup %3546 }
 0x36c   :  { %v661_v2 = vpop.xlane.xlu0 %660  ;;  %v4757_v59 = vpop.xlane.xlu1 %1676  ;;  %1746 = vadd.xlane.f32.xlu0 %v4755_v0 }
 0x36d   :  { %v685_v62 = vsub.f32 %v4460_v44, %v661_v2  ;;  %3550 = vpow2.f32 %v1158_v11  ;;  %v1156_v11 = vmul.f32 1.442695, %v1136_v21 }
 0x36f   :  { %v708_v27 = vmul.f32 1.442695, %v685_v62 }
 0x370   :  { %v4763_v14 = vpop.xlane.xlu0 %2246  ;;  %v655_v28 = vpop.xlane.xlu1 %654  ;;  %1184 = vadd.xlane.f32.xlu0 %v4761_v10 }
 0x371   :  { %3552 = vpow2.f32 %v708_v27  ;;  %v682_v20 = vsub.f32 %v4477_v15, %v655_v28 }
 0x373   :  { %v702_v23 = vmul.f32 1.442695, %v682_v20  ;;  %v4770_v44 = vpop.eup %3548 }
 0x374   :  { %v1113_v9 = vpop.xlane.xlu0 %1112  ;;  %v4772_v61 = vpop.xlane.xlu1 %1674  ;;  %736 = vadd.xlane.f32.xlu0 %v4768_v30  ;;  %730 = vadd.xlane.f32.xlu1 %v4770_v44 }
 0x375   :  { %3554 = vpow2.f32 %v702_v23  ;;  %v1138_v8 = vsub.f32 %v4490_v32, %v1113_v9 }
 0x376   :  { %3556 = vpow2.f32 %v1156_v11 }
 0x377   :  { %v4776_v2 = vpop.eup %3550  ;;  %v1160_v23 = vmul.f32 1.442695, %v1138_v8 }
 0x378   :  { %v4778_v62 = vpop.xlane.xlu0 %2244  ;;  %v1115_v15 = vpop.xlane.xlu1 %1114  ;;  %1190 = vadd.xlane.f32.xlu0 %v4776_v2 }
 0x379   :  { %v1139_v16 = vsub.f32 %v4506_v57, %v1115_v15 }
 0x37b   :  { %v4783_v27 = vpop.eup %3552  ;;  %v1162_v28 = vmul.f32 1.442695, %v1139_v16 }
 0x37c   :  { %v665_v20 = vpop.xlane.xlu0 %664  ;;  %v4785_v40 = vpop.xlane.xlu1 %1680  ;;  %740 = vadd.xlane.f32.xlu0 %v4783_v27 }
 0x37d   :  { %v687_v21 = vsub.f32 %v4515_v25, %v665_v20  ;;  %3558 = vpow2.f32 %v1162_v28 }
 0x37e   :  { %3560 = vpow2.f32 %v1160_v23 }
 0x37f   :  { %v4789_v12 = vpop.eup %3554  ;;  %v712_v11 = vmul.f32 1.442695, %v687_v21 }
 0x380   :  { %v4791_v29 = vpop.xlane.xlu0 %2250  ;;  %v659_v57 = vpop.xlane.xlu1 %658  ;;  %734 = vadd.xlane.f32.xlu1 %v4789_v12 }
 0x381   :  { %5494 = vst [vmem:[#allocation45_spill] sm:$0xff] %v4791_v29  ;;  %v684_v32 = vsub.f32 %v4530_v41, %v659_v57  ;;  %v4795_v15 = vpop.eup %3556  ;;  %3562 = vpow2.f32 %v712_v11 }
 0x383   :  { %v706_v9 = vmul.f32 1.442695, %v684_v32 }
 0x384   :  { %v1117_v16 = vpop.xlane.xlu0 %1116  ;;  %v4797_v25 = vpop.xlane.xlu1 %1678  ;;  %1188 = vadd.xlane.f32.xlu1 %v4795_v15 }
 0x385   :  { %3564 = vpow2.f32 %v706_v9 }
 0x387   :  { %v4800_v8 = vpop.eup %3558 }
 0x388   :  { %v4802_v28 = vpop.xlane.xlu0 %2248  ;;  %v1119_v20 = vpop.xlane.xlu1 %1118  ;;  %1194 = vadd.xlane.f32.xlu0 %v4800_v8 }
 0x389   :  { %5495 = vst [vmem:[#allocation46_spill] sm:$0xff] %v4802_v28  ;;  %v1141_v41 = vsub.f32 %v4556_v48, %v1119_v20  ;;  %v4806_v23 = vpop.eup %3560 }
 0x38b   :  { %v1166_v21 = vmul.f32 1.442695, %v1141_v41  ;;  %v4812_v9 = vpop.eup %3562 }
 0x38c   :  { %v669_v57 = vpop.xlane.xlu0 %668  ;;  %v4808_v32 = vpop.xlane.xlu1 %1684  ;;  %1192 = vadd.xlane.f32.xlu0 %v4806_v23 }
 0x38d   :  { %v689_v11 = vsub.f32 %v4569_v43, %v669_v57  ;;  %3566 = vpow2.f32 %v1166_v21  ;;  %v1140_v43 = vsub.f32 %v4546_v13, %v1117_v16 }
 0x38f   :  { %v716_v58 = vmul.f32 1.442695, %v689_v11  ;;  %v4814_v33 = vpop.eup %3564  ;;  %v1164_v6 = vmul.f32 1.442695, %v1140_v43 }
 0x390   :  { %v1123_v52 = vpop.xlane.xlu0 %1122  ;;  %v663_v35 = vpop.xlane.xlu1 %662  ;;  %744 = vadd.xlane.f32.xlu0 %v4812_v9  ;;  %738 = vadd.xlane.f32.xlu1 %v4814_v33 }
 0x391   :  { %3568 = vpow2.f32 %v716_v58  ;;  %v1143_v48 = vsub.f32 %v4581_v56, %v1123_v52  ;;  %v686_v20 = vsub.f32 %v4579_v51, %v663_v35 }
 0x393   :  { %v1170_v41 = vmul.f32 1.442695, %v1143_v48  ;;  %v710_v21 = vmul.f32 1.442695, %v686_v20 }
 0x394   :  { %v4821_v57 = vpop.xlane.xlu0 %2254  ;;  %v4823_v11 = vpop.xlane.xlu1 %1682 }
 0x395   :  { %5496 = vst [vmem:[#allocation47_spill] sm:$0xff] %v4821_v57  ;;  %3570 = vpow2.f32 %v1170_v41 }
 0x396   :  { %3572 = vpow2.f32 %v710_v21 }
 0x397   :  { %v4825_v58 = vpop.eup %3566  ;;  %3574 = vpow2.f32 %v1164_v6 }
 0x398   :  { %v1121_v56 = vpop.xlane.xlu0 %1120  ;;  %v4827_v52 = vpop.xlane.xlu1 %1688  ;;  %1198 = vadd.xlane.f32.xlu0 %v4825_v58 }
 0x399   :  { %5497 = vst [vmem:[#allocation48_spill] sm:$0xff] %v4827_v52  ;;  %v1142_v48 = vsub.f32 %v4604_v46, %v1121_v56 }
 0x39b   :  { %v4830_v51 = vpop.eup %3568 }
 0x39c   :  { %v4832_v13 = vpop.xlane.xlu0 %2252  ;;  %v667_v35 = vpop.xlane.xlu1 %666  ;;  %748 = vadd.xlane.f32.xlu0 %v4830_v51 }
 0x39d   :  { %5498 = vst [vmem:[#allocation49_spill] sm:$0xff] %v4832_v13  ;;  %v688_v16 = vsub.f32 %v4615_v19, %v667_v35  ;;  %v1168_v13 = vmul.f32 1.442695, %v1142_v48 }
 0x39f   :  { %v4837_v20 = vpop.eup %3570  ;;  %v714_v43 = vmul.f32 1.442695, %v688_v16 }
 0x3a0   :  { %v4839_v41 = vpop.eup %3572  ;;  %v673_v21 = vpop.xlane.xlu0 %672  ;;  %1202 = vadd.xlane.f32.xlu0 %v4837_v20 }
 0x3a1   :  { %v4841_v57 = vpop.xlane.xlu1 %1686  ;;  %v691_v6 = vsub.f32 %v4629_v36, %v673_v21  ;;  %742 = vadd.xlane.f32.xlu1 %v4839_v41  ;;  %3576 = vpow2.f32 %v714_v43  ;;  %v4846_v19 = vpop.eup %3574 }
 0x3a2   :  { %5499 = vst [vmem:[#allocation50_spill] sm:$0xff] %v4841_v57 }
 0x3a3   :  { %v720_v29 = vmul.f32 1.442695, %v691_v6 }
 0x3a4   :  { %v4848_v46 = vpop.xlane.xlu0 %2258 }
 0x3a5   :  { %5500 = vst [vmem:[#allocation51_spill] sm:$0xff] %v4848_v46  ;;  %v1127_v56 = vpop.xlane.xlu1 %1126  ;;  %3578 = vpow2.f32 %v720_v29  ;;  %1196 = vadd.xlane.f32.xlu1 %v4846_v19 }
 0x3a6   :  { %v1145_v35 = vsub.f32 %v4638_v31, %v1127_v56  ;;  %3580 = vpow2.f32 %v1168_v13 }
 0x3a8   :  { %v1174_v16 = vmul.f32 1.442695, %v1145_v35  ;;  %v4852_v36 = vpop.xlane.xlu0 %2256 }
 0x3a9   :  { %5501 = vst [vmem:[#allocation52_spill] sm:$0xff] %v4852_v36  ;;  %v4854_v21 = vpop.xlane.xlu1 %1692 }
 0x3aa   :  { %5502 = vst [vmem:[#allocation53_spill] sm:$0xff] %v4854_v21  ;;  %3582 = vpow2.f32 %v1174_v16 }
 0x3ab   :  { %v4856_v48 = vpop.eup %3576 }
 0x3ac   :  { %v677_v43 = vpop.xlane.xlu0 %676  ;;  %746 = vadd.xlane.f32.xlu1 %v4856_v48 }
 0x3ad   :  { %v671_v6 = vpop.xlane.xlu1 %670  ;;  %v693_v28 = vsub.f32 %v4661_v54, %v677_v43 }
 0x3ae   :  { %v690_v29 = vsub.f32 %v4663_v4, %v671_v6 }
 0x3af   :  { %v4861_v46 = vpop.eup %3578  ;;  %v724_v31 = vmul.f32 1.442695, %v693_v28 }
 0x3b0   :  { %v718_v13 = vmul.f32 1.442695, %v690_v29  ;;  %v4863_v56 = vpop.eup %3580  ;;  %752 = vadd.xlane.f32.xlu0 %v4861_v46 }
 0x3b1   :  { %v1125_v35 = vpop.xlane.xlu1 %1124  ;;  %3584 = vpow2.f32 %v724_v31  ;;  %1200 = vadd.xlane.f32.xlu1 %v4863_v56 }
 0x3b2   :  { %v1144_v16 = vsub.f32 %v4671_v1, %v1125_v35  ;;  %3586 = vpow2.f32 %v718_v13 }
 0x3b4   :  { %v1172_v54 = vmul.f32 1.442695, %v1144_v16  ;;  %v4868_v43 = vpop.eup %3582 }
 0x3b5   :  { %v4870_v36 = vpop.xlane.xlu1 %1690  ;;  %1206 = vadd.xlane.f32.xlu1 %v4868_v43 }
 0x3b6   :  { %5503 = vst [vmem:[#allocation54_spill] sm:$0xff] %v4870_v36  ;;  %3588 = vpow2.f32 %v1172_v54 }
 0x3b9   :  { %v1131_v4 = vpop.xlane.xlu1 %1130 }
 0x3ba   :  { %v1147_v54 = vsub.f32 %v4688_v45, %v1131_v4  ;;  %v5506_v45 = vld [vmem:[#allocation5_spill] sm:$0xff]  ;;  %v4907_v4 = vpop.xlane.xlu0 %2262 }
 0x3bb   :  { %v4873_v28 = vpop.eup %3584 }
 0x3bc   :  { %v4875_v6 = vpop.eup %3586  ;;  %756 = vadd.xlane.f32.xlu0 %v4873_v28  ;;  %v1178_v7 = vmul.f32 1.442695, %v1147_v54 }
 0x3bd   :  { %v4878_v29 = vpop.xlane.xlu1 %1696  ;;  %750 = vadd.xlane.f32.xlu1 %v4875_v6 }
 0x3be   :  { %5504 = vst [vmem:[#allocation55_spill] sm:$0xff] %v4878_v29  ;;  %v1701_v29 = vsub.f32 %v4323_v3, %v4709_v47 }
 0x3c0   :  { %v4881_v1 = vpop.eup %3588  ;;  %v1720_v52 = vmul.f32 1.442695, %v1701_v29 }
 0x3c1   :  { %v675_v31 = vpop.xlane.xlu1 %674  ;;  %1204 = vadd.xlane.f32.xlu1 %v4881_v1 }
 0x3c2   :  { %v692_v13 = vsub.f32 %v4697_v18, %v675_v31 }
 0x3c4   :  { %v722_v35 = vmul.f32 1.442695, %v692_v13  ;;  %v4910_v13 = vpop.xlane.xlu0 %2260 }
 0x3c5   :  { %v1129_v16 = vpop.xlane.xlu1 %1128  ;;  %5510 = vst [vmem:[#allocation57_spill] sm:$0xff] %v4910_v13 }
 0x3c6   :  { %3590 = vpow2.f32 %v722_v35  ;;  %v1146_v21 = vsub.f32 %v4700_v63, %v1129_v16  ;;  %v5511_v16 = vld [vmem:[#allocation8_spill] sm:$0xff] }
 0x3c8   :  { %v1176_v36 = vmul.f32 1.442695, %v1146_v21 }
 0x3c9   :  { %v4892_v18 = vpop.xlane.xlu1 %1694 }
 0x3ca   :  { %3592 = vpow2.f32 %v1176_v36  ;;  %5505 = vst [vmem:[#allocation56_spill] sm:$0xff] %v4892_v18  ;;  %v5515_v18 = vld [vmem:[#allocation13_spill] sm:$0xff] }
 0x3cb   :  { %3594 = vpow2.f32 %v1178_v7 }
 0x3cc   :  { %3596 = vpow2.f32 %v1720_v52  ;;  %v5508_v52 = vld [vmem:[#allocation17_spill] sm:$0xff] }
 0x3cd   :  { %v1700_v36 = vsub.f32 %v5508_v52, %v4717_v39  ;;  %5509 = vst [vmem:[#allocation17_spill] sm:$0xff] %v4907_v4  ;;  %v5513_v52 = vld [vmem:[#allocation14_spill] sm:$0xff] }
 0x3cf   :  { %v1718_v31 = vmul.f32 1.442695, %v1700_v36  ;;  %v3365_v36 = vunpack.i.l.bf16 %v5513_v52 }
 0x3d0   :  { %v4889_v26 = vpop.eup %3590 }
 0x3d1   :  { %754 = vadd.xlane.f32.xlu1 %v4889_v26 }
 0x3d2   :  { %3463 = vrot.lane.b32.xlu0 %v5506_v45, %s3814_s3 }
 0x3d4   :  { %v4896_v63 = vpop.eup %3592 }
 0x3d5   :  { %1208 = vadd.xlane.f32.xlu1 %v4896_v63  ;;  %v727_v3 = vpop.xlane.xlu1 %726  ;;  %v4899_v47 = vpop.eup %3594 }
 0x3d6   :  { %3598 = vrcp.f32 %v727_v3  ;;  %v4902_v7 = vpop.eup %3596 }
 0x3d7   :  { %5507 = vst [vmem:[#allocation5_spill] sm:$0xff] %v4902_v7  ;;  %3600 = vpow2.f32 %v1718_v31 }
 0x3d9   :  { %1210 = vadd.xlane.f32.xlu1 %v4899_v47 }
 0x3dd   :  { %1752 = vadd.xlane.f32.xlu1 %v4902_v7 }
 0x3e0   :  { %v3599_v21 = vpop.eup %3598 }
 0x3e1   :  { %v759_v29 = vmul.f32 %v3599_v21, %v4707_v22  ;;  %v4914_v45 = vpop.eup %3600  ;;  %v3366_v22 = vunpack.i.h.bf16 %v5513_v52 }
 0x3e2   :  { %5512 = vst [vmem:[#allocation8_spill] sm:$0xff] %v4914_v45 }
 0x3e3   :  { %2974 = vmatprep.mubr.f32.mxu0 %v759_v29  ;;  %v3258_v4 = vpack.c.bf16 %v3366_v22, %v3365_v36  ;;  %v5517_v36 = vld [vmem:[#allocation6_spill] sm:$0xff] }
 0x3e9   :  { %v729_v35 = vpop.xlane.xlu0 %728 }
 0x3ea   :  { %3602 = vrcp.f32 %v729_v35  ;;  %v5514_v35 = vld [vmem:[#allocation15_spill] sm:$0xff] }
 0x3eb   :  { %v3376_v7 = vunpack.i.h.bf16 %v5514_v35  ;;  %v3375_v13 = vunpack.i.l.bf16 %v5514_v35 }
 0x3ed   :  { %v733_v54 = vpop.xlane.xlu0 %732 }
 0x3ee   :  { %3468 = vrot.lane.b32.xlu1 %v5511_v16, %s3808_s16 }
 0x3f1   :  { %1750 = vadd.xlane.f32.xlu0 %v4914_v45  ;;  %v1183_v39 = vpop.xlane.xlu0 %1182  ;;  %v1181_v3 = vpop.xlane.xlu1 %1180 }
 0x3f2   :  { %3604 = vrcp.f32 %v1183_v39  ;;  %v3262_v39 = vpack.c.bf16 %v3376_v7, %v3375_v13  ;;  %v5516_v7 = vld [vmem:[#allocation23_spill] sm:$0xff] }
 0x3f3   :  { %3606 = vrcp.f32 %v1181_v3  ;;  %v1702_v3 = vsub.f32 %v4493_v17, %v4772_v61  ;;  %v1703_v13 = vsub.f32 %v5516_v7, %v4757_v59 }
 0x3f4   :  { %v3603_v21 = vpop.eup %3602 }
 0x3f5   :  { %v1187_v29 = vpop.xlane.xlu0 %1186  ;;  %v761_v31 = vmul.f32 %v3603_v21, %v4725_v42  ;;  %v4927_v42 = vpop.xlane.xlu1 %1748  ;;  %v1724_v17 = vmul.f32 1.442695, %v1703_v13 }
 0x3f6   :  { %3608 = vrcp.f32 %v1187_v29 }
 0x3f7   :  { %2975 = vmatmul.mubr.f32.vlgmr.msra.gmra.mrb[16].mxu0 %v761_v31 }
 0x3f8   :  { %3257 = vmatpush3.bf16.msra.mxu0 %v5515_v18 }
 0x3f9   :  { %3259 = vmatprep.subr.bf16.mxu0 %v3258_v4  ;;  %v4923_v45 = vpop.xlane.xlu0 %1746 }
 0x3fc   :  { %v3605_v57 = vpop.eup %3604  ;;  %3261 = vmatpush3.bf16.msra.mxu0 %v3258_v4  ;;  %v1722_v4 = vmul.f32 1.442695, %v1702_v3 }
 0x3fd   :  { %v3607_v52 = vpop.eup %3606  ;;  %3263 = vmatprep.subr.bf16.mxu0 %v3262_v39  ;;  %v1185_v21 = vpop.xlane.xlu0 %1184  ;;  %v1215_v31 = vmul.f32 %v3605_v57, %v4739_v24 }
 0x3fe   :  { %3610 = vrcp.f32 %v1185_v21  ;;  %v1213_v18 = vmul.f32 %v3607_v52, %v4741_v50 }
 0x3ff   :  { %3612 = vrcp.f32 %v733_v54 }
 0x400   :  { %3030 = vmatprep.mubr.f32.mxu1 %v1213_v18  ;;  %3265 = vmatpush3.bf16.msra.mxu0 %v3262_v39  ;;  %v3609_v24 = vpop.eup %3608 }
 0x401   :  { %3031 = vmatmul.mubr.f32.vlgmr.msra.gmra.mrb[16].mxu1 %v1215_v31  ;;  %v731_v22 = vpop.xlane.xlu1 %730  ;;  %v737_v61 = vpop.xlane.xlu0 %736  ;;  %v1219_v29 = vmul.f32 %v3609_v24, %v4748_v53  ;;  %v5518_v31 = vld [vmem:[#allocation18_spill] sm:$0xff] }
 0x402   :  { %3614 = vrcp.f32 %v731_v22  ;;  %v2266_v18 = vsub.f32 %v5518_v31, %v4721_v5 }
 0x403   :  { %3616 = vpow2.f32 %v1722_v4 }
 0x404   :  { %3618 = vpow2.f32 %v1724_v17  ;;  %v2284_v13 = vmul.f32 1.442695, %v2266_v18 }
 0x405   :  { %v1191_v35 = vpop.xlane.xlu0 %1190  ;;  %3620 = vrcp.f32 %v737_v61 }
 0x407   :  { %3473 = vrot.lane.b32.xlu0 %v5517_v36, %s3814_s3 }
 0x408   :  { %v3611_v57 = vpop.eup %3610 }
 0x409   :  { %v1217_v50 = vmul.f32 %v3611_v57, %v4761_v10  ;;  %v3613_v59 = vpop.eup %3612  ;;  %v741_v53 = vpop.xlane.xlu0 %740 }
 0x40a   :  { %v765_v21 = vmul.f32 %v3613_v59, %v4731_v49 }
 0x40b   :  { %3033 = vmatprep.mubr.f32.mxu1 %v1217_v50 }
 0x40c   :  { %3034 = vmatmul.mubr.f32.gmra.mrb[18].mxu1 %v1219_v29  ;;  %v3615_v39 = vpop.eup %3614 }
 0x40d   :  { %v735_v54 = vpop.xlane.xlu1 %734  ;;  %v763_v52 = vmul.f32 %v3615_v39, %v4770_v44  ;;  %v4938_v3 = vpop.eup %3616  ;;  %v5519_v44 = vld [vmem:[#allocation16_spill] sm:$0xff] }
 0x40e   :  { %3622 = vrcp.f32 %v735_v54  ;;  %v4944_v7 = vpop.eup %3618  ;;  %v2267_v4 = vsub.f32 %v5519_v44, %v4712_v38 }
 0x40f   :  { %2977 = vmatprep.mubr.f32.mxu0 %v763_v52  ;;  %3624 = vrcp.f32 %v1191_v35  ;;  %v3621_v22 = vpop.eup %3620 }
 0x410   :  { %2978 = vmatmul.mubr.f32.gmra.mrb[18].mxu0 %v765_v21  ;;  %v2286_v5 = vmul.f32 1.442695, %v2267_v4  ;;  %v769_v24 = vmul.f32 %v3621_v22, %v4768_v30  ;;  %v5520_v30 = vld [vmem:[#allocation9_spill] sm:$0xff] }
 0x411   :  { %v1189_v10 = vpop.xlane.xlu1 %1188 }
 0x412   :  { %1754 = vadd.xlane.f32.xlu1 %v4938_v3  ;;  %3626 = vrcp.f32 %v1189_v10 }
 0x413   :  { %3628 = vpow2.f32 %v2284_v13  ;;  %v1704_v13 = vsub.f32 %v4548_v34, %v4797_v25 }
 0x415   :  { %v1195_v49 = vpop.xlane.xlu0 %1194 }
 0x416   :  { %1756 = vadd.xlane.f32.xlu1 %v4944_v7  ;;  %3630 = vrcp.f32 %v1195_v49  ;;  %v1726_v49 = vmul.f32 1.442695, %v1704_v13 }
 0x418   :  { %v3623_v17 = vpop.eup %3622 }
 0x419   :  { %v1193_v61 = vpop.xlane.xlu0 %1192  ;;  %v767_v36 = vmul.f32 %v3623_v17, %v4789_v12  ;;  %v3625_v57 = vpop.eup %3624 }
 0x41a   :  { %3632 = vrcp.f32 %v1193_v61  ;;  %v1223_v35 = vmul.f32 %v3625_v57, %v4776_v2 }
 0x41b   :  { %2980 = vmatprep.mubr.f32.mxu0 %v767_v36  ;;  %3634 = vpow2.f32 %v2286_v5 }
 0x41c   :  { %v3627_v50 = vpop.eup %3626  ;;  %2981 = vmatmul.mubr.f32.gmra.mrb[20].mxu0 %v769_v24  ;;  %3636 = vrcp.f32 %v741_v53 }
 0x41d   :  { %v739_v29 = vpop.xlane.xlu1 %738  ;;  %v1221_v38 = vmul.f32 %v3627_v50, %v4795_v15  ;;  %v4953_v59 = vpop.eup %3628 }
 0x41e   :  { %3638 = vrcp.f32 %v739_v29  ;;  %v745_v31 = vpop.xlane.xlu0 %744 }
 0x41f   :  { %3036 = vmatprep.mubr.f32.mxu1 %v1221_v38  ;;  %3640 = vrcp.f32 %v745_v31 }
 0x420   :  { %3037 = vmatmul.mubr.f32.gmra.mrb[20].mxu1 %v1223_v35  ;;  %v3631_v12 = vpop.eup %3630 }
 0x421   :  { %v1227_v52 = vmul.f32 %v3631_v12, %v4800_v8 }
 0x424   :  { %v3633_v39 = vpop.eup %3632 }
 0x425   :  { %v1225_v54 = vmul.f32 %v3633_v39, %v4806_v23  ;;  %v4960_v15 = vpop.eup %3634  ;;  %v1199_v23 = vpop.xlane.xlu0 %1198 }
 0x426   :  { %2316 = vadd.xlane.f32.xlu0 %v4953_v59  ;;  %v3637_v2 = vpop.eup %3636 }
 0x427   :  { %3478 = vrot.lane.b32.xlu1 %v5520_v30, %s3808_s16  ;;  %3039 = vmatprep.mubr.f32.mxu1 %v1225_v54  ;;  %v773_v53 = vmul.f32 %v3637_v2, %v4783_v27  ;;  %v1705_v27 = vsub.f32 %v4518_v37, %v4785_v40  ;;  %v5521_v37 = vld [vmem:[#allocation7_spill] sm:$0xff] }
 0x428   :  { %3040 = vmatmul.mubr.f32.gmra.mrb[22].mxu1 %v1227_v52  ;;  %v3639_v21 = vpop.eup %3638 }
 0x429   :  { %v771_v18 = vmul.f32 %v3639_v21, %v4814_v33  ;;  %v749_v44 = vpop.xlane.xlu0 %748  ;;  %v3641_v4 = vpop.eup %3640  ;;  %v1728_v57 = vmul.f32 1.442695, %v1705_v27 }
 0x42a   :  { %2318 = vadd.xlane.f32.xlu0 %v4960_v15  ;;  %v777_v36 = vmul.f32 %v3641_v4, %v4812_v9 }
 0x42b   :  { %2983 = vmatprep.mubr.f32.mxu0 %v771_v18 }
 0x42c   :  { %2984 = vmatmul.mubr.f32.gmra.mrb[22].mxu0 %v773_v53 }
 0x42d   :  { %v1203_v17 = vpop.xlane.xlu0 %1202 }
 0x42e   :  { %v743_v10 = vpop.xlane.xlu1 %742 }
 0x42f   :  { %3642 = vrcp.f32 %v743_v10 }
 0x430   :  { %3644 = vrcp.f32 %v1199_v23 }
 0x432   :  { %v1197_v8 = vpop.xlane.xlu1 %1196 }
 0x433   :  { %3646 = vrcp.f32 %v1197_v8 }
 0x434   :  { %3648 = vrcp.f32 %v749_v44 }
 0x439   :  { %v3643_v22 = vpop.eup %3642  ;;  %v747_v33 = vpop.xlane.xlu1 %746 }
 0x43a   :  { %3650 = vrcp.f32 %v747_v33  ;;  %v775_v5 = vmul.f32 %v3643_v22, %v4839_v41  ;;  %v3645_v61 = vpop.eup %3644 }
 0x43b   :  { %3652 = vpow2.f32 %v1726_v49  ;;  %v1231_v50 = vmul.f32 %v3645_v61, %v4825_v58 }
 0x43c   :  { %2986 = vmatprep.mubr.f32.mxu0 %v775_v5  ;;  %3654 = vrcp.f32 %v1203_v17 }
 0x43d   :  { %v3647_v24 = vpop.eup %3646  ;;  %2987 = vmatmul.mubr.f32.gmra.mrb[24].mxu0 %v777_v36  ;;  %v753_v41 = vpop.xlane.xlu0 %752 }
 0x43e   :  { %v1201_v34 = vpop.xlane.xlu1 %1200  ;;  %v1229_v25 = vmul.f32 %v3647_v24, %v4846_v19  ;;  %v3649_v40 = vpop.eup %3648 }
 0x43f   :  { %3656 = vrcp.f32 %v1201_v34  ;;  %v781_v19 = vmul.f32 %v3649_v40, %v4830_v51 }
 0x440   :  { %3042 = vmatprep.mubr.f32.mxu1 %v1229_v25  ;;  %3483 = vrot.lane.b32.xlu0 %v5521_v37, %s3814_s3  ;;  %3658 = vpow2.f32 %v1728_v57 }
 0x441   :  { %3043 = vmatmul.mubr.f32.gmra.mrb[24].mxu1 %v1231_v50  ;;  %3660 = vrcp.f32 %v753_v41 }
 0x442   :  { %v1207_v29 = vpop.xlane.xlu1 %1206 }
 0x444   :  { %v3651_v9 = vpop.eup %3650 }
 0x445   :  { %v779_v38 = vmul.f32 %v3651_v9, %v4856_v48  ;;  %v4976_v35 = vpop.eup %3652  ;;  %v5522_v48 = vld [vmem:[#allocation22_spill] sm:$0xff] }
 0x446   :  { %v3655_v12 = vpop.eup %3654  ;;  %v2268_v21 = vsub.f32 %v5522_v48, %v4750_v55 }
 0x447   :  { %2989 = vmatprep.mubr.f32.mxu0 %v779_v38  ;;  %v1235_v2 = vmul.f32 %v3655_v12, %v4837_v20  ;;  %v5525_v38 = vld [vmem:[#allocation30_spill] sm:$0xff] }
 0x448   :  { %2990 = vmatmul.mubr.f32.gmra.mrb[26].mxu0 %v781_v19  ;;  %v2288_v8 = vmul.f32 1.442695, %v2268_v21  ;;  %v1706_v19 = vsub.f32 %v5525_v38, %v4823_v11  ;;  %v5537_v38 = vld [vmem:[#allocation26_spill] sm:$0xff] }
 0x449   :  { %v3657_v39 = vpop.eup %3656  ;;  %v757_v58 = vpop.xlane.xlu0 %756 }
 0x44a   :  { %v751_v54 = vpop.xlane.xlu1 %750  ;;  %v1233_v52 = vmul.f32 %v3657_v39, %v4863_v56  ;;  %v4984_v31 = vpop.eup %3658  ;;  %v5523_v56 = vld [vmem:[#allocation20_spill] sm:$0xff]  ;;  %v1730_v39 = vmul.f32 1.442695, %v1706_v19 }
 0x44b   :  { %1758 = vadd.xlane.f32.xlu1 %v4976_v35  ;;  %3662 = vrcp.f32 %v751_v54  ;;  %v2269_v23 = vsub.f32 %v5523_v56, %v4733_v60  ;;  %v3661_v55 = vpop.eup %3660 }
 0x44c   :  { %3045 = vmatprep.mubr.f32.mxu1 %v1233_v52  ;;  %3664 = vrcp.f32 %v1207_v29  ;;  %v785_v49 = vmul.f32 %v3661_v55, %v4861_v46  ;;  %v5524_v46 = vld [vmem:[#allocation10_spill] sm:$0xff] }
 0x44d   :  { %3046 = vmatmul.mubr.f32.gmra.mrb[26].mxu1 %v1235_v2  ;;  %v3464_v51 = vpop.permute.xlu0 %3463  ;;  %v2290_v13 = vmul.f32 1.442695, %v2269_v23  ;;  %v5527_v2 = vld [vmem:[#allocation25_spill] sm:$0xff] }
 0x44e   :  { %v3466_v18 = vunpack.i.h.bf16 %v3464_v51  ;;  %v3465_v53 = vunpack.i.l.bf16 %v3464_v51  ;;  %v1205_v10 = vpop.xlane.xlu1 %1204  ;;  %v2270_v48 = vsub.f32 %v5527_v2, %v4778_v62  ;;  %v5529_v62 = vld [vmem:[#allocation11_spill] sm:$0xff] }
 0x44f   :  { %1760 = vadd.xlane.f32.xlu1 %v4984_v31  ;;  %3666 = vrcp.f32 %v1205_v10 }
 0x450   :  { %v4989_v20 = vpack.c.bf16 %v3466_v18, %v3465_v53  ;;  %3668 = vpow2.f32 %v2288_v8  ;;  %v2292_v18 = vmul.f32 1.442695, %v2270_v48 }
 0x451   :  { %3670 = vpow2.f32 %v2290_v13 }
 0x452   :  { %3318 = vmatprep.subr.bf16.mxu1 %v4989_v20  ;;  %3672 = vrcp.f32 %v4923_v45 }
 0x453   :  { %3326 = vmatpush3.bf16.msra.mxu1 %v4989_v20  ;;  %3674 = vrcp.f32 %v757_v58 }
 0x455   :  { %v3663_v44 = vpop.eup %3662 }
 0x456   :  { %v783_v4 = vmul.f32 %v3663_v44, %v4875_v6  ;;  %v3665_v22 = vpop.eup %3664  ;;  %v5530_v44 = vld [vmem:[#allocation50_spill] sm:$0xff] }
 0x457   :  { %v1239_v27 = vmul.f32 %v3665_v22, %v4868_v43 }
 0x458   :  { %2992 = vmatprep.mubr.f32.mxu0 %v783_v4  ;;  %v5531_v4 = vld [vmem:[#allocation33_spill] sm:$0xff] }
 0x459   :  { %v3667_v33 = vpop.eup %3666  ;;  %2993 = vmatmul.mubr.f32.gmra.mrb[28].mxu0 %v785_v49  ;;  %v1708_v49 = vsub.f32 %v5531_v4, %v5530_v44 }
 0x45a   :  { %v1237_v60 = vmul.f32 %v3667_v33, %v4881_v1  ;;  %v4998_v5 = vpop.eup %3668  ;;  %v5532_v33 = vld [vmem:[#allocation48_spill] sm:$0xff] }
 0x45b   :  { %v5003_v61 = vpop.eup %3670 }
 0x45c   :  { %3048 = vmatprep.mubr.f32.mxu1 %v1237_v60  ;;  %v3673_v1 = vpop.eup %3672  ;;  %v5533_v60 = vld [vmem:[#allocation31_spill] sm:$0xff] }
 0x45d   :  { %3049 = vmatmul.mubr.f32.gmra.mrb[28].mxu1 %v1239_v27  ;;  %v3675_v45 = vpop.eup %3674  ;;  %v1779_v57 = vmul.f32 %v3673_v1, %v4755_v0  ;;  %v5526_v0 = vld [vmem:[#allocation28_spill] sm:$0xff]  ;;  %v1709_v27 = vsub.f32 %v5533_v60, %v5532_v33 }
 0x45e   :  { %v755_v17 = vpop.xlane.xlu1 %754  ;;  %v789_v25 = vmul.f32 %v3675_v45, %v4873_v28  ;;  %v1707_v28 = vsub.f32 %v5526_v0, %v4808_v32 }
 0x45f   :  { %3676 = vrcp.f32 %v755_v17  ;;  %2320 = vadd.xlane.f32.xlu0 %v4998_v5  ;;  %v1734_v17 = vmul.f32 1.442695, %v1708_v49  ;;  %v5541_v49 = vld [vmem:[#allocation53_spill] sm:$0xff] }
 0x460   :  { %3488 = vrot.lane.b32.xlu1 %v5524_v46, %s3808_s16  ;;  %v1732_v58 = vmul.f32 1.442695, %v1707_v28 }
 0x462   :  { %v1209_v6 = vpop.xlane.xlu1 %1208 }
 0x463   :  { %3678 = vrcp.f32 %v1209_v6  ;;  %2322 = vadd.xlane.f32.xlu0 %v5003_v61  ;;  %v1736_v6 = vmul.f32 1.442695, %v1709_v27 }
 0x466   :  { %v1211_v43 = vpop.xlane.xlu1 %1210 }
 0x467   :  { %3680 = vrcp.f32 %v1211_v43 }
 0x468   :  { %3682 = vpow2.f32 %v1730_v39  ;;  %v5538_v39 = vld [vmem:[#allocation12_spill] sm:$0xff] }
 0x469   :  { %v3677_v36 = vpop.eup %3676  ;;  %3684 = vpow2.f32 %v1732_v58 }
 0x46a   :  { %v5006_v24 = vpop.xlane.xlu1 %1752  ;;  %v787_v34 = vmul.f32 %v3677_v36, %v4889_v26  ;;  %3686 = vpow2.f32 %v2292_v18 }
 0x46c   :  { %2995 = vmatprep.mubr.f32.mxu0 %v787_v34 }
 0x46d   :  { %v3679_v50 = vpop.eup %3678  ;;  %2996 = vmatmul.mubr.f32.gmra.mrb[30].mxu0 %v789_v25 }
 0x46e   :  { %3086 = vmatprep.mubr.f32.mxu0 %v1779_v57  ;;  %v3469_v37 = vpop.permute.xlu1 %3468  ;;  %v1241_v40 = vmul.f32 %v3679_v50, %v4896_v63  ;;  %v5534_v50 = vld [vmem:[#allocation46_spill] sm:$0xff] }
 0x46f   :  { %v3471_v9 = vunpack.i.h.bf16 %v3469_v37  ;;  %v3470_v41 = vunpack.i.l.bf16 %v3469_v37  ;;  %v5535_v37 = vld [vmem:[#allocation27_spill] sm:$0xff] }
 0x470   :  { %3051 = vmatprep.mubr.f32.mxu1 %v1241_v40  ;;  %v2272_v40 = vsub.f32 %v5535_v37, %v5534_v50 }
 0x471   :  { %v3681_v29 = vpop.eup %3680  ;;  %v3266_v12 = vpack.c.bf16 %v3471_v9, %v3470_v41 }
 0x472   :  { %v1243_v26 = vmul.f32 %v3681_v29, %v4899_v47  ;;  %v5021_v54 = vpop.eup %3682  ;;  %v5536_v29 = vld [vmem:[#allocation45_spill] sm:$0xff] }
 0x473   :  { %3267 = vmatprep.subr.bf16.mxu0 %v3266_v12  ;;  %v5028_v21 = vpop.eup %3684  ;;  %v2273_v19 = vsub.f32 %v5537_v38, %v5536_v29  ;;  %v5544_v29 = vld [vmem:[#allocation32_spill] sm:$0xff] }
 0x474   :  { %3052 = vmatmul.mubr.f32.gmra.mrb[30].mxu1 %v1243_v26  ;;  %3269 = vmatpush3.bf16.msra.mxu0 %v3266_v12  ;;  %v5035_v10 = vpop.eup %3686  ;;  %v2296_v12 = vmul.f32 1.442695, %v2272_v40 }
 0x475   :  { %v2298_v26 = vmul.f32 1.442695, %v2273_v19 }
 0x479   :  { %3493 = vrot.lane.b32.xlu0 %v5511_v16, %s3814_s3  ;;  %v5528_v16 = vld [vmem:[#allocation24_spill] sm:$0xff] }
 0x47a   :  { %v2271_v51 = vsub.f32 %v5528_v16, %v4763_v14 }
 0x47c   :  { %v2294_v53 = vmul.f32 1.442695, %v2271_v51 }
 0x47e   :  { %v5019_v63 = vpop.xlane.xlu0 %1750  ;;  %3688 = vpow2.f32 %v2294_v53 }
 0x47f   :  { %3690 = vpow2.f32 %v1734_v17 }
 0x482   :  { %v3474_v11 = vpop.permute.xlu0 %3473 }
 0x483   :  { %v3476_v52 = vunpack.i.h.bf16 %v3474_v11  ;;  %v3475_v47 = vunpack.i.l.bf16 %v3474_v11 }
 0x484   :  { %1762 = vadd.xlane.f32.xlu1 %v5021_v54 }
 0x485   :  { %v5026_v32 = vpack.c.bf16 %v3476_v52, %v3475_v47 }
 0x487   :  { %3319 = vmatprep.subr.bf16.mxu1 %v5026_v32 }
 0x488   :  { %1764 = vadd.xlane.f32.xlu1 %v5028_v21  ;;  %3327 = vmatpush3.bf16.msra.mxu1 %v5026_v32  ;;  %v5040_v56 = vpop.eup %3688 }
 0x489   :  { %v5055_v45 = vpop.eup %3690 }
 0x498   :  { %2324 = vadd.xlane.f32.xlu0 %v5035_v10 }
 0x499   :  { %3498 = vrot.lane.b32.xlu1 %v5529_v62, %s3808_s16 }
 0x49c   :  { %2326 = vadd.xlane.f32.xlu0 %v5040_v56 }
 0x49f   :  { %v5043_v23 = vpop.xlane.xlu1 %1754 }
 0x4a3   :  { %v5045_v8 = vpop.xlane.xlu1 %1756 }
 0x4a7   :  { %v3479_v14 = vpop.permute.xlu1 %3478 }
 0x4a8   :  { %v3481_v55 = vunpack.i.h.bf16 %v3479_v14  ;;  %v3480_v13 = vunpack.i.l.bf16 %v3479_v14  ;;  %v5539_v14 = vld [vmem:[#allocation54_spill] sm:$0xff] }
 0x4aa   :  { %v3270_v22 = vpack.c.bf16 %v3481_v55, %v3480_v13  ;;  %v5540_v55 = vld [vmem:[#allocation38_spill] sm:$0xff] }
 0x4ab   :  { %v1710_v13 = vsub.f32 %v5540_v55, %v5539_v14  ;;  %v5547_v55 = vld [vmem:[#allocation56_spill] sm:$0xff] }
 0x4ac   :  { %3271 = vmatprep.subr.bf16.mxu0 %v3270_v22 }
 0x4ad   :  { %3273 = vmatpush3.bf16.msra.mxu0 %v3270_v22  ;;  %v5542_v22 = vld [vmem:[#allocation36_spill] sm:$0xff]  ;;  %v1738_v60 = vmul.f32 1.442695, %v1710_v13  ;;  %v5548_v13 = vld [vmem:[#allocation41_spill] sm:$0xff] }
 0x4ae   :  { %v1711_v33 = vsub.f32 %v5542_v22, %v5541_v49  ;;  %v5549_v22 = vld [vmem:[#allocation52_spill] sm:$0xff] }
 0x4b0   :  { %v1740_v17 = vmul.f32 1.442695, %v1711_v33  ;;  %v5550_v33 = vld [vmem:[#allocation35_spill] sm:$0xff] }
 0x4b2   :  { %3503 = vrot.lane.b32.xlu0 %v5520_v30, %s3814_s3 }
 0x4b3   :  { %v2317_v43 = vpop.xlane.xlu0 %2316 }
 0x4b4   :  { %3692 = vrcp.f32 %v2317_v43 }
 0x4b5   :  { %3694 = vpow2.f32 %v1736_v6 }
 0x4b6   :  { %3696 = vpow2.f32 %v2296_v12 }
 0x4b7   :  { %v5053_v1 = vpop.xlane.xlu0 %2318  ;;  %3698 = vpow2.f32 %v2298_v26  ;;  %v5545_v26 = vld [vmem:[#allocation47_spill] sm:$0xff] }
 0x4b8   :  { %3700 = vpow2.f32 %v1738_v60  ;;  %v2276_v60 = vsub.f32 %v5550_v33, %v5549_v22 }
 0x4b9   :  { %3702 = vpow2.f32 %v1740_v17 }
 0x4ba   :  { %v2304_v17 = vmul.f32 1.442695, %v2276_v60 }
 0x4bb   :  { %v3484_v36 = vpop.permute.xlu0 %3483 }
 0x4bc   :  { %v3486_v34 = vunpack.i.h.bf16 %v3484_v36  ;;  %v3485_v25 = vunpack.i.l.bf16 %v3484_v36 }
 0x4bd   :  { %1766 = vadd.xlane.f32.xlu1 %v5055_v45 }
 0x4be   :  { %v3693_v57 = vpop.eup %3692  ;;  %v5060_v9 = vpack.c.bf16 %v3486_v34, %v3485_v25 }
 0x4bf   :  { %v5062_v41 = vpop.eup %3694  ;;  %v2349_v30 = vmul.f32 %v3693_v57, %v4953_v59 }
 0x4c0   :  { %3320 = vmatprep.subr.bf16.mxu1 %v5060_v9  ;;  %v5072_v59 = vpop.eup %3696 }
 0x4c1   :  { %1768 = vadd.xlane.f32.xlu1 %v5062_v41  ;;  %3328 = vmatpush3.bf16.msra.mxu1 %v5060_v9  ;;  %v5077_v58 = vpop.eup %3698 }
 0x4c2   :  { %3145 = vmatprep.mubr.f32.mxu1 %v2349_v30  ;;  %v5106_v25 = vpop.eup %3700 }
 0x4c3   :  { %v5117_v12 = vpop.eup %3702 }
 0x4ca   :  { %v2976_v0 = vpop.f32.mrb[16].mxu0 }
 0x4cb   :  { %937 = vst.msk [vmem:[#allocation2 + $0x8] sm:$0xff] %vm935_vm2, %v2976_v0  ;;  %v856_v28 = vpop.f32.mrb[17].mxu0  ;;  %v5546_v0 = vld [vmem:[#allocation29_spill] sm:$0xff] }
 0x4cc   :  { %936 = vst.msk [vmem:[#allocation2] sm:$0xff] %vm935_vm2, %v856_v28  ;;  %v2275_v28 = vsub.f32 %v5546_v0, %v5545_v26 }
 0x4ce   :  { %v2302_v14 = vmul.f32 1.442695, %v2275_v28 }
 0x4d1   :  { %2328 = vadd.xlane.f32.xlu0 %v5072_v59 }
 0x4d2   :  { %3508 = vrot.lane.b32.xlu1 %v5538_v39, %s3808_s16  ;;  %s3815_s16 = smov 16  }
 0x4d4   :  { %v5079_v11 = vpop.f32.mrb[16].mxu1 }
 0x4d5   :  { %2330 = vadd.xlane.f32.xlu0 %v5077_v58  ;;  %v5082_v52 = vpop.f32.mrb[17].mxu1 }
 0x4d8   :  { %v5084_v47 = vpop.xlane.xlu1 %1758 }
 0x4dc   :  { %v5086_v2 = vpop.xlane.xlu1 %1760 }
 0x4df   :  { %v5088_v16 = vpop.f32.mrb[18].mxu1 }
 0x4e0   :  { %v3489_v48 = vpop.permute.xlu1 %3488  ;;  %v5090_v53 = vpop.f32.mrb[19].mxu1 }
 0x4e1   :  { %v3491_v51 = vunpack.i.h.bf16 %v3489_v48  ;;  %v3490_v18 = vunpack.i.l.bf16 %v3489_v48 }
 0x4e3   :  { %v3274_v44 = vpack.c.bf16 %v3491_v51, %v3490_v18  ;;  %v2979_v4 = vpop.f32.mrb[18].mxu0 }
 0x4e4   :  { %939 = vst.msk [vmem:[#allocation2 + $0x18] sm:$0xff] %vm935_vm2, %v2979_v4  ;;  %v866_v27 = vpop.f32.mrb[19].mxu0 }
 0x4e5   :  { %3275 = vmatprep.subr.bf16.mxu0 %v3274_v44  ;;  %938 = vst.msk [vmem:[#allocation2 + $0x10] sm:$0xff] %vm935_vm2, %v866_v27 }
 0x4e6   :  { %3277 = vmatpush3.bf16.msra.mxu0 %v3274_v44  ;;  %v1712_v44 = vsub.f32 %v5548_v13, %v5547_v55 }
 0x4e8   :  { %v1742_v27 = vmul.f32 1.442695, %v1712_v44 }
 0x4eb   :  { %3513 = vrot.lane.b32.xlu0 %v5524_v46, %s3814_s3  ;;  %v5543_v46 = vld [vmem:[#allocation49_spill] sm:$0xff] }
 0x4ec   :  { %v5100_v6 = vpop.xlane.xlu0 %2320  ;;  %v2274_v38 = vsub.f32 %v5544_v29, %v5543_v46  ;;  %v5554_v46 = vld [vmem:[#allocation34_spill] sm:$0xff] }
 0x4ee   :  { %v2300_v48 = vmul.f32 1.442695, %v2274_v38 }
 0x4ef   :  { %v2982_v43 = vpop.f32.mrb[20].mxu0 }
 0x4f0   :  { %v5102_v36 = vpop.xlane.xlu0 %2322  ;;  %941 = vst.msk [vmem:[#allocation2 + $0x28] sm:$0xff] %vm935_vm2, %v2982_v43  ;;  %v876_v34 = vpop.f32.mrb[21].mxu0  ;;  %3704 = vpow2.f32 %v2300_v48  ;;  %v5551_v43 = vld [vmem:[#allocation55_spill] sm:$0xff] }
 0x4f1   :  { %940 = vst.msk [vmem:[#allocation2 + $0x20] sm:$0xff] %vm935_vm2, %v876_v34  ;;  %3706 = vpow2.f32 %v2302_v14  ;;  %v5552_v34 = vld [vmem:[#allocation40_spill] sm:$0xff] }
 0x4f2   :  { %3708 = vpow2.f32 %v1742_v27  ;;  %v5556_v27 = vld [vmem:[#allocation42_spill] sm:$0xff] }
 0x4f3   :  { %v5108_v57 = vpop.f32.mrb[20].mxu1  ;;  %3710 = vpow2.f32 %v2304_v17  ;;  %v5557_v17 = vld [vmem:[#allocation19_spill] sm:$0xff] }
 0x4f4   :  { %v3494_v50 = vpop.permute.xlu0 %3493  ;;  %v5110_v30 = vpop.f32.mrb[21].mxu1 }
 0x4f5   :  { %v3496_v37 = vunpack.i.h.bf16 %v3494_v50  ;;  %v3495_v40 = vunpack.i.l.bf16 %v3494_v50  ;;  %v1713_v50 = vsub.f32 %v5552_v34, %v5551_v43  ;;  %v2264_v43 = vsub.f32 %v5557_v17, %v5556_v27  ;;  %v5562_v27 = vld [vmem:[#allocation37_spill] sm:$0xff] }
 0x4f6   :  { %1770 = vadd.xlane.f32.xlu1 %v5106_v25 }
 0x4f7   :  { %v5115_v19 = vpack.c.bf16 %v3496_v37, %v3495_v40  ;;  %v5553_v40 = vld [vmem:[#allocation51_spill] sm:$0xff]  ;;  %v1744_v38 = vmul.f32 1.442695, %v1713_v50 }
 0x4f8   :  { %v2277_v29 = vsub.f32 %v5554_v46, %v5553_v40 }
 0x4f9   :  { %3321 = vmatprep.subr.bf16.mxu1 %v5115_v19  ;;  %3712 = vpow2.f32 %v1744_v38  ;;  %v5559_v38 = vld [vmem:[#allocation43_spill] sm:$0xff] }
 0x4fa   :  { %1772 = vadd.xlane.f32.xlu1 %v5117_v12  ;;  %3329 = vmatpush3.bf16.msra.mxu1 %v5115_v19  ;;  %v5136_v37 = vpop.eup %3704  ;;  %v2306_v0 = vmul.f32 1.442695, %v2277_v29  ;;  %v2280_v29 = vmul.f32 1.442695, %v2264_v43 }
 0x4fb   :  { %v5124_v51 = vpop.f32.mrb[22].mxu1  ;;  %v5143_v26 = vpop.eup %3706 }
 0x4fc   :  { %v5126_v18 = vpop.f32.mrb[23].mxu1  ;;  %v5148_v48 = vpop.eup %3708  ;;  %3714 = vpow2.f32 %v2306_v0  ;;  %v5560_v0 = vld [vmem:[#allocation21_spill] sm:$0xff] }
 0x4fd   :  { %v5157_v44 = vpop.eup %3710  ;;  %3716 = vpow2.f32 %v2280_v29 }
 0x4fe   :  { %5555 = vst [vmem:[#allocation14_spill] sm:$0xff] %v5157_v44 }
 0x4ff   :  { %v2985_v4 = vpop.f32.mrb[22].mxu0 }
 0x500   :  { %943 = vst.msk [vmem:[#allocation2 + $0x38] sm:$0xff] %vm935_vm2, %v2985_v4  ;;  %v886_v49 = vpop.f32.mrb[23].mxu0 }
 0x501   :  { %942 = vst.msk [vmem:[#allocation2 + $0x30] sm:$0xff] %vm935_vm2, %v886_v49 }
 0x503   :  { %v5162_v22 = vpop.eup %3712 }
 0x506   :  { %v5167_v40 = vpop.eup %3714 }
 0x507   :  { %5558 = vst [vmem:[#allocation15_spill] sm:$0xff] %v5167_v40 }
 0x50a   :  { %2332 = vadd.xlane.f32.xlu0 %v5136_v37 }
 0x50b   :  { %3518 = vrot.lane.b32.xlu1 %v5529_v62, %s3814_s3 }
 0x50e   :  { %2334 = vadd.xlane.f32.xlu0 %v5143_v26 }
 0x510   :  { %v2988_v14 = vpop.f32.mrb[24].mxu0 }
 0x511   :  { %v5146_v28 = vpop.xlane.xlu1 %1762  ;;  %945 = vst.msk [vmem:[#allocation2 + $0x48] sm:$0xff] %vm935_vm2, %v2988_v14  ;;  %v896_v55 = vpop.f32.mrb[25].mxu0  ;;  %v2265_v14 = vsub.f32 %v5560_v0, %v5559_v38 }
 0x512   :  { %1774 = vadd.xlane.f32.xlu0 %v5148_v48  ;;  %944 = vst.msk [vmem:[#allocation2 + $0x40] sm:$0xff] %vm935_vm2, %v896_v55 }
 0x514   :  { %v5153_v62 = vpop.f32.mrb[24].mxu1 }
 0x515   :  { %v5155_v13 = vpop.xlane.xlu1 %1764  ;;  %v5159_v4 = vpop.f32.mrb[25].mxu1 }
 0x516   :  { %2336 = vadd.xlane.f32.xlu0 %v5157_v44 }
 0x519   :  { %v3499_v49 = vpop.permute.xlu1 %3498 }
 0x51a   :  { %v3501_v33 = vunpack.i.h.bf16 %v3499_v49  ;;  %v3500_v60 = vunpack.i.l.bf16 %v3499_v49  ;;  %1776 = vadd.xlane.f32.xlu0 %v5162_v22 }
 0x51b   :  { %v2991_v50 = vpop.f32.mrb[26].mxu0 }
 0x51c   :  { %v3278_v34 = vpack.c.bf16 %v3501_v33, %v3500_v60  ;;  %947 = vst.msk [vmem:[#allocation2 + $0x58] sm:$0xff] %vm935_vm2, %v2991_v50  ;;  %v906_v46 = vpop.f32.mrb[27].mxu0  ;;  %v2282_v33 = vmul.f32 1.442695, %v2265_v14  ;;  %v5561_v60 = vld [vmem:[#allocation17_spill] sm:$0xff] }
 0x51d   :  { %946 = vst.msk [vmem:[#allocation2 + $0x50] sm:$0xff] %vm935_vm2, %v906_v46  ;;  %v2279_v17 = vsub.f32 %v5562_v27, %v5561_v60 }
 0x51e   :  { %3279 = vmatprep.subr.bf16.mxu0 %v3278_v34  ;;  %2338 = vadd.xlane.f32.xlu0 %v5167_v40  ;;  %3718 = vpow2.f32 %v2282_v33 }
 0x51f   :  { %3281 = vmatpush3.bf16.msra.mxu0 %v3278_v34  ;;  %v2310_v46 = vmul.f32 1.442695, %v2279_v17  ;;  %v5184_v34 = vpop.eup %3716 }
 0x520   :  { %v5174_v55 = vpop.f32.mrb[26].mxu1 }
 0x521   :  { %v5176_v49 = vpop.f32.mrb[27].mxu1  ;;  %3720 = vpow2.f32 %v2310_v46 }
 0x525   :  { %v5180_v50 = vpop.xlane.xlu0 %2324 }
 0x528   :  { %v5193_v27 = vpop.eup %3718 }
 0x529   :  { %v5182_v44 = vpop.xlane.xlu0 %2326  ;;  %5563 = vst [vmem:[#allocation13_spill] sm:$0xff] %v5193_v27 }
 0x52b   :  { %v5202_v46 = vpop.eup %3720 }
 0x52c   :  { %v2994_v43 = vpop.f32.mrb[28].mxu0  ;;  %5564 = vst [vmem:[#allocation23_spill] sm:$0xff] %v5202_v46 }
 0x52d   :  { %949 = vst.msk [vmem:[#allocation2 + $0x68] sm:$0xff] %vm935_vm2, %v2994_v43  ;;  %v916_v38 = vpop.f32.mrb[29].mxu0  ;;  %v3504_v0 = vpop.permute.xlu0 %3503 }
 0x52e   :  { %948 = vst.msk [vmem:[#allocation2 + $0x60] sm:$0xff] %vm935_vm2, %v916_v38  ;;  %v3506_v29 = vunpack.i.h.bf16 %v3504_v0  ;;  %v3505_v14 = vunpack.i.l.bf16 %v3504_v0  ;;  %v5565_v38 = vld [vmem:[#allocation57_spill] sm:$0xff]  ;;  %v5566_v0 = vld [vmem:[#allocation39_spill] sm:$0xff] }
 0x52f   :  { %2312 = vadd.xlane.f32.xlu1 %v5184_v34 }
 0x530   :  { %v5189_v60 = vpack.c.bf16 %v3506_v29, %v3505_v14  ;;  %v5191_v33 = vpop.f32.mrb[28].mxu1  ;;  %v2278_v29 = vsub.f32 %v5566_v0, %v5565_v38 }
 0x531   :  { %v5195_v17 = vpop.f32.mrb[29].mxu1 }
 0x532   :  { %3322 = vmatprep.subr.bf16.mxu1 %v5189_v60 }
 0x533   :  { %2314 = vadd.xlane.f32.xlu1 %v5193_v27  ;;  %3330 = vmatpush3.bf16.msra.mxu1 %v5189_v60  ;;  %v2308_v27 = vmul.f32 1.442695, %v2278_v29 }
 0x534   :  { %3523 = vrot.lane.b32.xlu0 %v5538_v39, %s3814_s3 }
 0x535   :  { %3722 = vpow2.f32 %v2308_v27 }
 0x536   :  { %3724 = vrcp.f32 %v4927_v42 }
 0x537   :  { %2342 = vadd.xlane.f32.xlu1 %v5202_v46  ;;  %3726 = vrcp.f32 %v5019_v63 }
 0x538   :  { %3728 = vrcp.f32 %v5006_v24 }
 0x539   :  { %3730 = vrcp.f32 %v5043_v23  ;;  %v5567_v23 = vld [vmem:[#allocation44_spill] sm:$0xff] }
 0x53a   :  { %3732 = vrcp.f32 %v5045_v8 }
 0x53b   :  { %3734 = vrcp.f32 %v5084_v47 }
 0x53c   :  { %3736 = vrcp.f32 %v5086_v2  ;;  %v5569_v2 = vld [vmem:[#allocation5_spill] sm:$0xff] }
 0x53d   :  { %3738 = vrcp.f32 %v5146_v28 }
 0x53e   :  { %3740 = vrcp.f32 %v5155_v13 }
 0x53f   :  { %v5223_v38 = vpop.eup %3722 }
 0x540   :  { %v2997_v43 = vpop.f32.mrb[30].mxu0  ;;  %v3725_v24 = vpop.eup %3724 }
 0x541   :  { %951 = vst.msk [vmem:[#allocation2 + $0x78] sm:$0xff] %vm935_vm2, %v2997_v43  ;;  %v926_v14 = vpop.f32.mrb[31].mxu0  ;;  %v3727_v63 = vpop.eup %3726  ;;  %v1781_v8 = vmul.f32 %v3725_v24, %v5567_v23 }
 0x542   :  { %950 = vst.msk [vmem:[#allocation2 + $0x70] sm:$0xff] %vm935_vm2, %v926_v14 }
 0x547   :  { %v5209_v40 = vpop.f32.mrb[30].mxu1 }
 0x548   :  { %1453 = vrot.lane.b32.xlu1 %v5082_v52, %s3815_s16  ;;  %v5213_v39 = vpop.f32.mrb[31].mxu1 }
 0x54a   :  { %v1767_v46 = vpop.xlane.xlu1 %1766 }
 0x54b   :  { %3742 = vrcp.f32 %v1767_v46 }
 0x54c   :  { %1457 = vrot.lane.b32.xlu1 %v5090_v53, %s3815_s16  ;;  %v5568_v53 = vld [vmem:[#allocation8_spill] sm:$0xff] }
 0x54e   :  { %v1769_v43 = vpop.xlane.xlu1 %1768 }
 0x54f   :  { %3744 = vrcp.f32 %v1769_v43 }
 0x550   :  { %1459 = vrot.lane.b32.xlu1 %v5088_v16, %s3815_s16  ;;  %v3729_v16 = vpop.eup %3728 }
 0x551   :  { %v3731_v47 = vpop.eup %3730 }
 0x552   :  { %v3509_v52 = vpop.permute.xlu1 %3508  ;;  %v3733_v28 = vpop.eup %3732  ;;  %v1787_v29 = vmul.f32 %v3731_v47, %v4938_v3 }
 0x553   :  { %v3511_v27 = vunpack.i.h.bf16 %v3509_v52  ;;  %v3510_v0 = vunpack.i.l.bf16 %v3509_v52  ;;  %2340 = vadd.xlane.f32.xlu0 %v5223_v38  ;;  %v3735_v14 = vpop.eup %3734 }
 0x554   :  { %1461 = vrot.lane.b32.xlu1 %v5110_v30, %s3815_s16  ;;  %v1783_v30 = vmul.f32 %v3727_v63, %v5568_v53  ;;  %v1791_v13 = vmul.f32 %v3735_v14, %v4976_v35 }
 0x555   :  { %v3282_v42 = vpack.c.bf16 %v3511_v27, %v3510_v0 }
 0x557   :  { %3283 = vmatprep.subr.bf16.mxu0 %v3282_v42 }
 0x558   :  { %1463 = vrot.lane.b32.xlu1 %v5108_v57, %s3815_s16  ;;  %3285 = vmatpush3.bf16.msra.mxu0 %v3282_v42  ;;  %v1785_v57 = vmul.f32 %v3729_v16, %v5569_v2 }
 0x559   :  { %3287 = vmatprep.subr.bf16.mxu0 %v4989_v20 }
 0x55b   :  { %3087 = vmatmul.mubr.f32.vlgmr.msra.gmra.mrb[32].mxu0 %v1781_v8 }
 0x55c   :  { %1467 = vrot.lane.b32.xlu1 %v5124_v51, %s3815_s16  ;;  %3089 = vmatprep.mubr.f32.mxu0 %v1783_v30  ;;  %v3737_v51 = vpop.eup %3736 }
 0x55d   :  { %3289 = vmatpush3.bf16.msra.mxu0 %v4989_v20  ;;  %v1789_v20 = vmul.f32 %v3733_v28, %v4944_v7  ;;  %v3739_v46 = vpop.eup %3738 }
 0x55e   :  { %3291 = vmatprep.subr.bf16.mxu0 %v5026_v32  ;;  %v5244_v52 = vpop.xlane.xlu0 %2328  ;;  %v1795_v7 = vmul.f32 %v3739_v46, %v5021_v54 }
 0x55f   :  { %3090 = vmatmul.mubr.f32.gmra.mrb[34].mxu0 %v1785_v57 }
 0x560   :  { %1471 = vrot.lane.b32.xlu1 %v5153_v62, %s3815_s16  ;;  %3092 = vmatprep.mubr.f32.mxu0 %v1787_v29  ;;  %v1793_v62 = vmul.f32 %v3737_v51, %v4984_v31 }
 0x561   :  { %3293 = vmatpush3.bf16.msra.mxu0 %v5026_v32  ;;  %v3741_v32 = vpop.eup %3740 }
 0x562   :  { %3295 = vmatprep.subr.bf16.mxu0 %v5060_v9  ;;  %v5252_v3 = vpop.xlane.xlu0 %2330  ;;  %v3743_v35 = vpop.eup %3742 }
 0x563   :  { %3093 = vmatmul.mubr.f32.gmra.mrb[36].mxu0 %v1789_v20  ;;  %v1799_v54 = vmul.f32 %v3743_v35, %v5055_v45 }
 0x564   :  { %1475 = vrot.lane.b32.xlu1 %v5174_v55, %s3815_s16  ;;  %3095 = vmatprep.mubr.f32.mxu0 %v1791_v13  ;;  %v3745_v55 = vpop.eup %3744 }
 0x565   :  { %3297 = vmatpush3.bf16.msra.mxu0 %v5060_v9  ;;  %v1797_v9 = vmul.f32 %v3741_v32, %v5028_v21 }
 0x566   :  { %3299 = vmatprep.subr.bf16.mxu0 %v5115_v19  ;;  %v3514_v43 = vpop.permute.xlu0 %3513 }
 0x567   :  { %3096 = vmatmul.mubr.f32.gmra.mrb[38].mxu0 %v1793_v62  ;;  %v3516_v27 = vunpack.i.h.bf16 %v3514_v43  ;;  %v3515_v0 = vunpack.i.l.bf16 %v3514_v43  ;;  %v5570_v43 = vld [vmem:[#allocation14_spill] sm:$0xff] }
 0x568   :  { %1479 = vrot.lane.b32.xlu1 %v5191_v33, %s3815_s16  ;;  %3098 = vmatprep.mubr.f32.mxu0 %v1795_v7 }
 0x569   :  { %3301 = vmatpush3.bf16.msra.mxu0 %v5115_v19  ;;  %v3306_v31 = vpack.c.bf16 %v3516_v27, %v3515_v0  ;;  %1455 = vrot.lane.b32.xlu0 %v5079_v11, %s3815_s16  ;;  %v1801_v19 = vmul.f32 %v3745_v55, %v5062_v41  ;;  %v5572_v0 = vld [vmem:[#allocation13_spill] sm:$0xff] }
 0x56a   :  { %3303 = vmatprep.subr.bf16.mxu0 %v5189_v60 }
 0x56b   :  { %3099 = vmatmul.mubr.f32.gmra.mrb[40].mxu0 %v1797_v9  ;;  %3323 = vmatprep.subr.bf16.mxu1 %v3306_v31 }
 0x56c   :  { %1483 = vrot.lane.b32.xlu1 %v5209_v40, %s3815_s16  ;;  %3101 = vmatprep.mubr.f32.mxu0 %v1799_v54 }
 0x56d   :  { %3305 = vmatpush3.bf16.msra.mxu0 %v5189_v60  ;;  %3331 = vmatpush3.bf16.msra.mxu1 %v3306_v31 }
 0x56e   :  { %3307 = vmatprep.subr.bf16.mxu0 %v3306_v31  ;;  %1465 = vrot.lane.b32.xlu0 %v5126_v18, %s3815_s16 }
 0x56f   :  { %3102 = vmatmul.mubr.f32.gmra.mrb[42].mxu0 %v1801_v19 }
 0x571   :  { %3309 = vmatpush3.bf16.msra.mxu0 %v3306_v31 }
 0x572   :  { %1469 = vrot.lane.b32.xlu0 %v5159_v4, %s3815_s16 }
 0x576   :  { %1473 = vrot.lane.b32.xlu0 %v5176_v49, %s3815_s16 }
 0x57a   :  { %1477 = vrot.lane.b32.xlu0 %v5195_v17, %s3815_s16 }
 0x57e   :  { %1481 = vrot.lane.b32.xlu0 %v5213_v39, %s3815_s16 }
 0x583   :  { %v1771_v21 = vpop.xlane.xlu1 %1770 }
 0x584   :  { %3746 = vrcp.f32 %v1771_v21 }
 0x587   :  { %v1773_v45 = vpop.xlane.xlu1 %1772 }
 0x588   :  { %3748 = vrcp.f32 %v1773_v45 }
 0x58b   :  { %v3519_v41 = vpop.permute.xlu1 %3518 }
 0x58c   :  { %v3521_v11 = vunpack.i.h.bf16 %v3519_v41  ;;  %v3520_v18 = vunpack.i.l.bf16 %v3519_v41 }
 0x58e   :  { %v3747_v40 = vpop.eup %3746  ;;  %v3310_v60 = vpack.c.bf16 %v3521_v11, %v3520_v18 }
 0x58f   :  { %v1803_v4 = vmul.f32 %v3747_v40, %v5106_v25 }
 0x590   :  { %3311 = vmatprep.subr.bf16.mxu0 %v3310_v60  ;;  %3324 = vmatprep.subr.bf16.mxu1 %v3310_v60 }
 0x591   :  { %3104 = vmatprep.mubr.f32.mxu0 %v1803_v4  ;;  %3313 = vmatpush3.bf16.msra.mxu0 %v3310_v60 }
 0x592   :  { %v3749_v49 = vpop.eup %3748  ;;  %3332 = vmatpush3.bf16.msra.mxu1 %v3310_v60 }
 0x593   :  { %v1805_v33 = vmul.f32 %v3749_v49, %v5117_v12 }
 0x595   :  { %3105 = vmatmul.mubr.f32.gmra.mrb[44].mxu0 %v1805_v33 }
 0x597   :  { %v2333_v17 = vpop.xlane.xlu0 %2332 }
 0x59b   :  { %v2335_v39 = vpop.xlane.xlu0 %2334 }
 0x59f   :  { %v1775_v42 = vpop.xlane.xlu0 %1774 }
 0x5a0   :  { %3750 = vrcp.f32 %v1775_v42 }
 0x5a3   :  { %v2337_v24 = vpop.xlane.xlu0 %2336 }
 0x5a7   :  { %v1777_v63 = vpop.xlane.xlu0 %1776 }
 0x5a8   :  { %3752 = vrcp.f32 %v1777_v63 }
 0x5a9   :  { %3754 = vrcp.f32 %v5053_v1 }
 0x5aa   :  { %v3751_v23 = vpop.eup %3750  ;;  %3756 = vrcp.f32 %v5100_v6 }
 0x5ab   :  { %v2339_v25 = vpop.xlane.xlu0 %2338  ;;  %v1807_v8 = vmul.f32 %v3751_v23, %v5148_v48  ;;  %3758 = vrcp.f32 %v5102_v36 }
 0x5ac   :  { %3760 = vrcp.f32 %v5180_v50 }
 0x5ad   :  { %3107 = vmatprep.mubr.f32.mxu0 %v1807_v8  ;;  %3762 = vrcp.f32 %v5182_v44 }
 0x5ae   :  { %3764 = vrcp.f32 %v5244_v52 }
 0x5af   :  { %v3524_v12 = vpop.permute.xlu0 %3523  ;;  %3766 = vrcp.f32 %v5252_v3 }
 0x5b0   :  { %v3526_v16 = vunpack.i.h.bf16 %v3524_v12  ;;  %v3525_v53 = vunpack.i.l.bf16 %v3524_v12  ;;  %3768 = vrcp.f32 %v2333_v17  ;;  %v5573_v17 = vld [vmem:[#allocation23_spill] sm:$0xff] }
 0x5b1   :  { %3770 = vrcp.f32 %v2335_v39 }
 0x5b2   :  { %v3753_v30 = vpop.eup %3752  ;;  %v3314_v1 = vpack.c.bf16 %v3526_v16, %v3525_v53  ;;  %3772 = vrcp.f32 %v2337_v24 }
 0x5b3   :  { %v3755_v47 = vpop.eup %3754  ;;  %v1809_v6 = vmul.f32 %v3753_v30, %v5162_v22 }
 0x5b4   :  { %v3757_v2 = vpop.eup %3756  ;;  %3315 = vmatprep.subr.bf16.mxu0 %v3314_v1  ;;  %3325 = vmatprep.subr.bf16.mxu1 %v3314_v1  ;;  %v2351_v36 = vmul.f32 %v3755_v47, %v4960_v15 }
 0x5b5   :  { %3108 = vmatmul.mubr.f32.gmra.mrb[46].mxu0 %v1809_v6  ;;  %3333 = vmatpush3.bf16.msra.mxu1 %v3314_v1  ;;  %v3759_v48 = vpop.eup %3758  ;;  %v2353_v44 = vmul.f32 %v3757_v2, %v4998_v5 }
 0x5b6   :  { %3317 = vmatpush3.bf16.msra.mxu0 %v3314_v1  ;;  %v3761_v50 = vpop.eup %3760  ;;  %v2355_v22 = vmul.f32 %v3759_v48, %v5003_v61 }
 0x5b7   :  { %v3763_v57 = vpop.eup %3762  ;;  %v2357_v29 = vmul.f32 %v3761_v50, %v5035_v10 }
 0x5b8   :  { %3146 = vmatmul.mubr.f32.vlgmr.msra.gmra.mrb[32].mxu1 %v2351_v36  ;;  %v3765_v14 = vpop.eup %3764  ;;  %v2359_v15 = vmul.f32 %v3763_v57, %v5040_v56 }
 0x5b9   :  { %3148 = vmatprep.mubr.f32.mxu1 %v2353_v44  ;;  %v3767_v52 = vpop.eup %3766  ;;  %v2361_v20 = vmul.f32 %v3765_v14, %v5072_v59 }
 0x5ba   :  { %v3769_v51 = vpop.eup %3768  ;;  %v2363_v61 = vmul.f32 %v3767_v52, %v5077_v58 }
 0x5bb   :  { %v3771_v13 = vpop.eup %3770  ;;  %v2365_v10 = vmul.f32 %v3769_v51, %v5136_v37  ;;  %v5571_v37 = vld [vmem:[#allocation15_spill] sm:$0xff] }
 0x5bc   :  { %v2313_v28 = vpop.xlane.xlu1 %2312  ;;  %3149 = vmatmul.mubr.f32.gmra.mrb[34].mxu1 %v2355_v22  ;;  %v3773_v3 = vpop.eup %3772  ;;  %v2367_v56 = vmul.f32 %v3771_v13, %v5143_v26 }
 0x5bd   :  { %3774 = vrcp.f32 %v2313_v28  ;;  %3151 = vmatprep.mubr.f32.mxu1 %v2357_v29  ;;  %v2369_v35 = vmul.f32 %v3773_v3, %v5570_v43 }
 0x5be   :  { %3776 = vrcp.f32 %v2339_v25 }
 0x5c0   :  { %v2315_v5 = vpop.xlane.xlu1 %2314  ;;  %3152 = vmatmul.mubr.f32.gmra.mrb[36].mxu1 %v2359_v15 }
 0x5c1   :  { %3778 = vrcp.f32 %v2315_v5  ;;  %3154 = vmatprep.mubr.f32.mxu1 %v2361_v20 }
 0x5c4   :  { %v2343_v46 = vpop.xlane.xlu1 %2342  ;;  %3155 = vmatmul.mubr.f32.gmra.mrb[38].mxu1 %v2363_v61 }
 0x5c5   :  { %3157 = vmatprep.mubr.f32.mxu1 %v2365_v10  ;;  %3780 = vrcp.f32 %v2343_v46 }
 0x5c7   :  { %v3775_v62 = vpop.eup %3774 }
 0x5c8   :  { %v3777_v32 = vpop.eup %3776  ;;  %v1454_v7 = vpop.permute.xlu1 %1453  ;;  %v2345_v59 = vmul.f32 %v3775_v62, %v5184_v34  ;;  %3158 = vmatmul.mubr.f32.gmra.mrb[40].mxu1 %v2367_v56 }
 0x5c9   :  { %1502 = vst.msk [vmem:[#allocation2] sm:$0xff] %vm1501_vm3, %v1454_v7  ;;  %3160 = vmatprep.mubr.f32.mxu1 %v2369_v35  ;;  %v2371_v27 = vmul.f32 %v3777_v32, %v5571_v37 }
 0x5ca   :  { %3142 = vmatprep.mubr.f32.mxu0 %v2345_v59 }
 0x5cb   :  { %v3779_v58 = vpop.eup %3778 }
 0x5cc   :  { %v2347_v9 = vmul.f32 %v3779_v58, %v5572_v0  ;;  %v1458_v55 = vpop.permute.xlu1 %1457  ;;  %3161 = vmatmul.mubr.f32.gmra.mrb[42].mxu1 %v2371_v27 }
 0x5cd   :  { %1504 = vst.msk [vmem:[#allocation2 + $0x10] sm:$0xff] %vm1501_vm3, %v1458_v55 }
 0x5ce   :  { %3143 = vmatmul.mubr.f32.vlgmr.msra.gmra.mrb[48].mxu0 %v2347_v9 }
 0x5cf   :  { %v3781_v40 = vpop.eup %3780 }
 0x5d0   :  { %v1460_v26 = vpop.permute.xlu1 %1459  ;;  %v2375_v39 = vmul.f32 %v3781_v40, %v5573_v17 }
 0x5d1   :  { %1505 = vst.msk [vmem:[#allocation2 + $0x18] sm:$0xff] %vm1501_vm3, %v1460_v26 }
 0x5d4   :  { %v1462_v34 = vpop.permute.xlu1 %1461 }
 0x5d5   :  { %1506 = vst.msk [vmem:[#allocation2 + $0x20] sm:$0xff] %vm1501_vm3, %v1462_v34 }
 0x5d8   :  { %v1464_v31 = vpop.permute.xlu1 %1463 }
 0x5d9   :  { %1507 = vst.msk [vmem:[#allocation2 + $0x28] sm:$0xff] %vm1501_vm3, %v1464_v31 }
 0x5dc   :  { %v1468_v54 = vpop.permute.xlu1 %1467 }
 0x5dd   :  { %1509 = vst.msk [vmem:[#allocation2 + $0x38] sm:$0xff] %vm1501_vm3, %v1468_v54 }
 0x5e0   :  { %v1472_v19 = vpop.permute.xlu1 %1471  ;;  %v2341_v21 = vpop.xlane.xlu0 %2340 }
 0x5e1   :  { %1511 = vst.msk [vmem:[#allocation2 + $0x48] sm:$0xff] %vm1501_vm3, %v1472_v19  ;;  %3782 = vrcp.f32 %v2341_v21 }
 0x5e4   :  { %v1476_v45 = vpop.permute.xlu1 %1475  ;;  %v1456_v41 = vpop.permute.xlu0 %1455 }
 0x5e5   :  { %1513 = vst.msk [vmem:[#allocation2 + $0x58] sm:$0xff] %vm1501_vm3, %v1476_v45  ;;  %1503 = vst.msk [vmem:[#allocation2 + $0x8] sm:$0xff] %vm1501_vm3, %v1456_v41 }
 0x5e8   :  { %v1480_v11 = vpop.permute.xlu1 %1479  ;;  %v1466_v18 = vpop.permute.xlu0 %1465 }
 0x5e9   :  { %1515 = vst.msk [vmem:[#allocation2 + $0x68] sm:$0xff] %vm1501_vm3, %v1480_v11  ;;  %1508 = vst.msk [vmem:[#allocation2 + $0x30] sm:$0xff] %vm1501_vm3, %v1466_v18 }
 0x5eb   :  { %v3783_v60 = vpop.eup %3782 }
 0x5ec   :  { %v1484_v4 = vpop.permute.xlu1 %1483  ;;  %v1470_v49 = vpop.permute.xlu0 %1469  ;;  %v2373_v33 = vmul.f32 %v3783_v60, %v5223_v38 }
 0x5ed   :  { %1517 = vst.msk [vmem:[#allocation2 + $0x78] sm:$0xff] %vm1501_vm3, %v1484_v4  ;;  %1510 = vst.msk [vmem:[#allocation2 + $0x40] sm:$0xff] %vm1501_vm3, %v1470_v49 }
 0x5ee   :  { %3163 = vmatprep.mubr.f32.mxu1 %v2373_v33 }
 0x5ef   :  { %3164 = vmatmul.mubr.f32.gmra.mrb[44].mxu1 %v2375_v39 }
 0x5f0   :  { %v1474_v42 = vpop.permute.xlu0 %1473 }
 0x5f1   :  { %1512 = vst.msk [vmem:[#allocation2 + $0x50] sm:$0xff] %vm1501_vm3, %v1474_v42 }
 0x5f4   :  { %v1478_v24 = vpop.permute.xlu0 %1477 }
 0x5f5   :  { %1514 = vst.msk [vmem:[#allocation2 + $0x60] sm:$0xff] %vm1501_vm3, %v1478_v24 }
 0x5f8   :  { %v1482_v63 = vpop.permute.xlu0 %1481 }
 0x5f9   :  { %1516 = vst.msk [vmem:[#allocation2 + $0x70] sm:$0xff] %vm1501_vm3, %v1482_v63 }
 0x62e   :  { %v3088_v23 = vpop.f32.mrb[32].mxu0 }
 0x62f   :  { %2021 = vrot.lane.b32.xlu1 %v3088_v23, %s3816_s21  ;;  %v1924_v38 = vpop.f32.mrb[33].mxu0 }
 0x630   :  { %2019 = vrot.lane.b32.xlu0 %v1924_v38, %s3816_s21 }
 0x632   :  { %v3091_v25 = vpop.f32.mrb[34].mxu0 }
 0x633   :  { %2025 = vrot.lane.b32.xlu1 %v3091_v25, %s3816_s21  ;;  %v1934_v8 = vpop.f32.mrb[35].mxu0 }
 0x634   :  { %2023 = vrot.lane.b32.xlu0 %v1934_v8, %s3816_s21 }
 0x636   :  { %v3094_v12 = vpop.f32.mrb[36].mxu0 }
 0x637   :  { %2029 = vrot.lane.b32.xlu1 %v3094_v12, %s3816_s21  ;;  %v1944_v16 = vpop.f32.mrb[37].mxu0 }
 0x638   :  { %2027 = vrot.lane.b32.xlu0 %v1944_v16, %s3816_s21 }
 0x63a   :  { %v3097_v53 = vpop.f32.mrb[38].mxu0 }
 0x63b   :  { %2033 = vrot.lane.b32.xlu1 %v3097_v53, %s3816_s21  ;;  %v1954_v30 = vpop.f32.mrb[39].mxu0 }
 0x63c   :  { %2031 = vrot.lane.b32.xlu0 %v1954_v30, %s3816_s21 }
 0x63e   :  { %v3100_v1 = vpop.f32.mrb[40].mxu0 }
 0x63f   :  { %2037 = vrot.lane.b32.xlu1 %v3100_v1, %s3816_s21  ;;  %v1964_v47 = vpop.f32.mrb[41].mxu0 }
 0x640   :  { %2035 = vrot.lane.b32.xlu0 %v1964_v47, %s3816_s21 }
 0x642   :  { %v3103_v6 = vpop.f32.mrb[42].mxu0 }
 0x643   :  { %2041 = vrot.lane.b32.xlu1 %v3103_v6, %s3816_s21  ;;  %v1974_v2 = vpop.f32.mrb[43].mxu0 }
 0x644   :  { %2039 = vrot.lane.b32.xlu0 %v1974_v2, %s3816_s21 }
 0x668   :  { %v3106_v36 = vpop.f32.mrb[44].mxu0 }
 0x669   :  { %2045 = vrot.lane.b32.xlu1 %v3106_v36, %s3816_s21  ;;  %v1984_v48 = vpop.f32.mrb[45].mxu0 }
 0x66a   :  { %2043 = vrot.lane.b32.xlu0 %v1984_v48, %s3816_s21 }
 0x688   :  { %v3109_v44 = vpop.f32.mrb[46].mxu0 }
 0x689   :  { %2049 = vrot.lane.b32.xlu1 %v3109_v44, %s3816_s21  ;;  %v1994_v50 = vpop.f32.mrb[47].mxu0 }
 0x68a   :  { %2047 = vrot.lane.b32.xlu0 %v1994_v50, %s3816_s21 }
 0x68b   :  { %v3147_v22 = vpop.f32.mrb[32].mxu1 }
 0x68c   :  { %v2500_v57 = vpop.f32.mrb[33].mxu1 }
 0x68f   :  { %v3150_v28 = vpop.f32.mrb[34].mxu1 }
 0x690   :  { %v2510_v29 = vpop.f32.mrb[35].mxu1 }
 0x693   :  { %v3153_v14 = vpop.f32.mrb[36].mxu1 }
 0x694   :  { %v2520_v15 = vpop.f32.mrb[37].mxu1 }
 0x697   :  { %v3156_v52 = vpop.f32.mrb[38].mxu1 }
 0x698   :  { %v2530_v5 = vpop.f32.mrb[39].mxu1 }
 0x69b   :  { %v3159_v20 = vpop.f32.mrb[40].mxu1 }
 0x69c   :  { %v2540_v51 = vpop.f32.mrb[41].mxu1 }
 0x69f   :  { %v3162_v61 = vpop.f32.mrb[42].mxu1 }
 0x6a0   :  { %v2550_v13 = vpop.f32.mrb[43].mxu1 }
 0x6a1   :  { %v2022_v46 = vpop.permute.xlu1 %2021  ;;  %v3144_v10 = vpop.f32.mrb[48].mxu0 }
 0x6a2   :  { %2069 = vst.msk [vmem:[#allocation2 + $0x8] sm:$0xff] %vm2067_vm4, %v2022_v46  ;;  %v2020_v3 = vpop.permute.xlu0 %2019  ;;  %2587 = vrot.lane.b32.xlu1 %v3144_v10, %s3817_s22  ;;  %v2490_v62 = vpop.f32.mrb[49].mxu0 }
 0x6a3   :  { %2068 = vst.msk [vmem:[#allocation2] sm:$0xff] %vm2067_vm4, %v2020_v3  ;;  %2585 = vrot.lane.b32.xlu0 %v2490_v62, %s3817_s22 }
 0x6a5   :  { %v2026_v56 = vpop.permute.xlu1 %2025 }
 0x6a6   :  { %2071 = vst.msk [vmem:[#allocation2 + $0x18] sm:$0xff] %vm2067_vm4, %v2026_v56  ;;  %v2024_v32 = vpop.permute.xlu0 %2023  ;;  %2591 = vrot.lane.b32.xlu1 %v3147_v22, %s3817_s22 }
 0x6a7   :  { %2070 = vst.msk [vmem:[#allocation2 + $0x10] sm:$0xff] %vm2067_vm4, %v2024_v32  ;;  %2589 = vrot.lane.b32.xlu0 %v2500_v57, %s3817_s22 }
 0x6a9   :  { %v2030_v7 = vpop.permute.xlu1 %2029 }
 0x6aa   :  { %2073 = vst.msk [vmem:[#allocation2 + $0x28] sm:$0xff] %vm2067_vm4, %v2030_v7  ;;  %v2028_v59 = vpop.permute.xlu0 %2027  ;;  %2595 = vrot.lane.b32.xlu1 %v3150_v28, %s3817_s22 }
 0x6ab   :  { %2072 = vst.msk [vmem:[#allocation2 + $0x20] sm:$0xff] %vm2067_vm4, %v2028_v59  ;;  %2593 = vrot.lane.b32.xlu0 %v2510_v29, %s3817_s22 }
 0x6ad   :  { %v2034_v43 = vpop.permute.xlu1 %2033 }
 0x6ae   :  { %2075 = vst.msk [vmem:[#allocation2 + $0x38] sm:$0xff] %vm2067_vm4, %v2034_v43  ;;  %v2032_v35 = vpop.permute.xlu0 %2031  ;;  %2599 = vrot.lane.b32.xlu1 %v3153_v14, %s3817_s22 }
 0x6af   :  { %2074 = vst.msk [vmem:[#allocation2 + $0x30] sm:$0xff] %vm2067_vm4, %v2032_v35  ;;  %2597 = vrot.lane.b32.xlu0 %v2520_v15, %s3817_s22 }
 0x6b1   :  { %v2038_v58 = vpop.permute.xlu1 %2037 }
 0x6b2   :  { %2077 = vst.msk [vmem:[#allocation2 + $0x48] sm:$0xff] %vm2067_vm4, %v2038_v58  ;;  %v2036_v37 = vpop.permute.xlu0 %2035  ;;  %2603 = vrot.lane.b32.xlu1 %v3156_v52, %s3817_s22 }
 0x6b3   :  { %2076 = vst.msk [vmem:[#allocation2 + $0x40] sm:$0xff] %vm2067_vm4, %v2036_v37  ;;  %2601 = vrot.lane.b32.xlu0 %v2530_v5, %s3817_s22 }
 0x6b5   :  { %v2042_v27 = vpop.permute.xlu1 %2041 }
 0x6b6   :  { %2079 = vst.msk [vmem:[#allocation2 + $0x58] sm:$0xff] %vm2067_vm4, %v2042_v27  ;;  %v2040_v0 = vpop.permute.xlu0 %2039  ;;  %2607 = vrot.lane.b32.xlu1 %v3159_v20, %s3817_s22 }
 0x6b7   :  { %2078 = vst.msk [vmem:[#allocation2 + $0x50] sm:$0xff] %vm2067_vm4, %v2040_v0  ;;  %2605 = vrot.lane.b32.xlu0 %v2540_v51, %s3817_s22 }
 0x6ba   :  { %2611 = vrot.lane.b32.xlu1 %v3162_v61, %s3817_s22 }
 0x6bb   :  { %2609 = vrot.lane.b32.xlu0 %v2550_v13, %s3817_s22 }
 0x6c2   :  { %v3165_v9 = vpop.f32.mrb[44].mxu1 }
 0x6c3   :  { %v2560_v55 = vpop.f32.mrb[45].mxu1  ;;  %2615 = vrot.lane.b32.xlu1 %v3165_v9, %s3817_s22 }
 0x6c4   :  { %2613 = vrot.lane.b32.xlu0 %v2560_v55, %s3817_s22 }
 0x6db   :  { %v2046_v26 = vpop.permute.xlu1 %2045 }
 0x6dc   :  { %2081 = vst.msk [vmem:[#allocation2 + $0x68] sm:$0xff] %vm2067_vm4, %v2046_v26  ;;  %v2044_v34 = vpop.permute.xlu0 %2043 }
 0x6dd   :  { %2080 = vst.msk [vmem:[#allocation2 + $0x60] sm:$0xff] %vm2067_vm4, %v2044_v34 }
 0x6fb   :  { %v2050_v31 = vpop.permute.xlu1 %2049 }
 0x6fc   :  { %2083 = vst.msk [vmem:[#allocation2 + $0x78] sm:$0xff] %vm2067_vm4, %v2050_v31  ;;  %v2048_v54 = vpop.permute.xlu0 %2047 }
 0x6fd   :  { %2082 = vst.msk [vmem:[#allocation2 + $0x70] sm:$0xff] %vm2067_vm4, %v2048_v54 }
 0x714   :  { %v2588_v19 = vpop.permute.xlu1 %2587 }
 0x715   :  { %2635 = vst.msk [vmem:[#allocation2 + $0x8] sm:$0xff] %vm2633_vm5, %v2588_v19  ;;  %v2586_v21 = vpop.permute.xlu0 %2585 }
 0x716   :  { %2634 = vst.msk [vmem:[#allocation2] sm:$0xff] %vm2633_vm5, %v2586_v21 }
 0x718   :  { %v2592_v45 = vpop.permute.xlu1 %2591 }
 0x719   :  { %2637 = vst.msk [vmem:[#allocation2 + $0x18] sm:$0xff] %vm2633_vm5, %v2592_v45  ;;  %v2590_v41 = vpop.permute.xlu0 %2589 }
 0x71a   :  { %2636 = vst.msk [vmem:[#allocation2 + $0x10] sm:$0xff] %vm2633_vm5, %v2590_v41 }
 0x71c   :  { %v2596_v11 = vpop.permute.xlu1 %2595 }
 0x71d   :  { %2639 = vst.msk [vmem:[#allocation2 + $0x28] sm:$0xff] %vm2633_vm5, %v2596_v11  ;;  %v2594_v18 = vpop.permute.xlu0 %2593 }
 0x71e   :  { %2638 = vst.msk [vmem:[#allocation2 + $0x20] sm:$0xff] %vm2633_vm5, %v2594_v18 }
 0x720   :  { %v2600_v40 = vpop.permute.xlu1 %2599 }
 0x721   :  { %2641 = vst.msk [vmem:[#allocation2 + $0x38] sm:$0xff] %vm2633_vm5, %v2600_v40  ;;  %v2598_v60 = vpop.permute.xlu0 %2597 }
 0x722   :  { %2640 = vst.msk [vmem:[#allocation2 + $0x30] sm:$0xff] %vm2633_vm5, %v2598_v60 }
 0x724   :  { %v2604_v4 = vpop.permute.xlu1 %2603 }
 0x725   :  { %2643 = vst.msk [vmem:[#allocation2 + $0x48] sm:$0xff] %vm2633_vm5, %v2604_v4  ;;  %v2602_v49 = vpop.permute.xlu0 %2601 }
 0x726   :  { %2642 = vst.msk [vmem:[#allocation2 + $0x40] sm:$0xff] %vm2633_vm5, %v2602_v49 }
 0x728   :  { %v2608_v33 = vpop.permute.xlu1 %2607 }
 0x729   :  { %2645 = vst.msk [vmem:[#allocation2 + $0x58] sm:$0xff] %vm2633_vm5, %v2608_v33  ;;  %v2606_v17 = vpop.permute.xlu0 %2605 }
 0x72a   :  { %2644 = vst.msk [vmem:[#allocation2 + $0x50] sm:$0xff] %vm2633_vm5, %v2606_v17 }
 0x72c   :  { %v2612_v39 = vpop.permute.xlu1 %2611 }
 0x72d   :  { %2647 = vst.msk [vmem:[#allocation2 + $0x68] sm:$0xff] %vm2633_vm5, %v2612_v39  ;;  %v2610_v42 = vpop.permute.xlu0 %2609 }
 0x72e   :  { %2646 = vst.msk [vmem:[#allocation2 + $0x60] sm:$0xff] %vm2633_vm5, %v2610_v42 }
 0x735   :  { %v2616_v24 = vpop.permute.xlu1 %2615 }
 0x736   :  { %2649 = vst.msk [vmem:[#allocation2 + $0x78] sm:$0xff] %vm2633_vm5, %v2616_v24  ;;  %v2614_v63 = vpop.permute.xlu0 %2613 }
 0x737   :  { %2648 = vst.msk [vmem:[#allocation2 + $0x70] sm:$0xff] %vm2633_vm5, %v2614_v63 }
 0x738   :  { %3795 = shalt.err (!%p3792_p4)
}
 0x739   :  { %s3796_s27 = scalar_lea.hbm %s5404_s4, 2048 }
 0x73a   :  { %p3797_p5 = scmp.ne.s32.totalorder %s5404_s4, %s3796_s27  ;;  %p3800_p6 = scmp.lt.u32.totalorder %s3796_s27, %s5404_s4 }
 0x73c   :  { %p3802_p7 = pnand %p3800_p6, %p3797_p5 }
 0x73e   :  { %3805 = shalt.err (!%p3802_p7)
}
 0x73f   :  { %s3819_s5 = smov 128   ;;  %s3820_s6 = smov 8  }
 0x740   :  { %2661 = dma.vmem_to_hbm [thread:$0]  %s2656_s24, 2048, %s5404_s4, [#allocation3], %s3819_s5, %s3819_s5, %s3820_s6  }
 0x741   :  { %3806 = dma.done.wait [#allocation3], 2048  }
 0x742   :  { %3807 = vsyncadd [#allocation3], 4294965248 }
 0x743   :  { %2665 = vsyncpa [#allocation3], 1 }

</bundles_post_ra>
